<compile_context>
chip_gen: v7x
topology: tpu7x:2x2x1
jax: 0.10.0
libtpu: 0.0.40
codegen_flags: <defaults>
</compile_context>

<pallas_src>
import functools
import math

import jax
import jax.numpy as jnp
from jax.experimental import pallas as pl
from jax.experimental.pallas import tpu as pltpu

EPS = 1e-12
NEG_INF = -10000.0


# ----------------------------- in-kernel helpers -----------------------------
def _recip(x):
    # EUP approximate reciprocal + one Newton step: ~exact, avoids a full f32 divide.
    r = pl.reciprocal(x, approx=True)
    return r * (2.0 - x * r)


def _erf(x):
    # Abramowitz & Stegun 7.1.26 (max abs err ~1.5e-7): exp/mul/add/select only.
    a1, a2, a3, a4, a5 = 0.254829592, -0.284496736, 1.421413741, -1.453152027, 1.061405429
    p = 0.3275911
    s = jnp.where(x >= 0.0, 1.0, -1.0)
    ax = jnp.abs(x)
    t = _recip(1.0 + p * ax)
    poly = ((((a5 * t + a4) * t + a3) * t + a2) * t + a1) * t
    return s * (1.0 - poly * jnp.exp(-ax * ax))


def _gelu(x):
    # BSARec ACT2FN["gelu"]: x * 0.5 * (1 + erf(x / sqrt(2)))
    return x * 0.5 * (1.0 + _erf(x * (1.0 / math.sqrt(2.0))))


def _layernorm(x, g, b):
    # TF-style LayerNorm (eps = 1e-12); rsqrt routes to the EUP.
    u = jnp.mean(x, axis=-1, keepdims=True)
    s = jnp.mean((x - u) ** 2, axis=-1, keepdims=True)
    return (x - u) * jax.lax.rsqrt(s + EPS) * g + b


# --------------------------------- the kernel --------------------------------
def csrec_encoder_kernel(
    lens_ref,                               # SMEM scalar prefetch: [B] valid lengths
    x_ref, uu_ref, vv_ref, sqrt_beta_ref,
    ln1_g_ref, ln1_b_ref,
    wq_ref, bq_ref, wk_ref, bk_ref, wv_ref, bv_ref,
    wo_ref, bo_ref, ln2_g_ref, ln2_b_ref,
    w1_ref, b1_ref, w2_ref, b2_ref,
    ln3_g_ref, ln3_b_ref,
    out_ref,
    h_ref,                                  # VMEM scratch: hidden-state carry [bb*S, H]
    *, num_layers, num_heads, alpha, bb, seq_len, matmul_dtype,
):
    S = seq_len
    R, H = h_ref.shape                      # R = bb * S folded rows
    hd = H // num_heads
    inter = w1_ref.shape[1]
    scale = 1.0 / math.sqrt(hd)
    cdt = matmul_dtype

    # ---- loop-invariant setup (hoisted; JAX does not CSE broadcast_in_dim) ----
    # Additive causal+padding masks generated in-kernel: no [B,S,S] HBM traffic.
    row = jax.lax.broadcasted_iota(jnp.int32, (S, S), 0)
    col = jax.lax.broadcasted_iota(jnp.int32, (S, S), 1)
    masks = []
    for b in range(bb):
        gb = pl.program_id(0) * bb + b
        ln = lens_ref[gb]
        vis = (col <= row) & (col < ln)
        masks.append(jnp.where(vis, 0.0, NEG_INF).astype(jnp.float32))

    beta2 = jnp.broadcast_to(sqrt_beta_ref[...] ** 2, (R, H))
    bq = jnp.broadcast_to(bq_ref[...], (R, H))
    bk = jnp.broadcast_to(bk_ref[...], (R, H))
    bv = jnp.broadcast_to(bv_ref[...], (R, H))
    bo = jnp.broadcast_to(bo_ref[...], (R, H))
    b1 = jnp.broadcast_to(b1_ref[...], (R, inter))
    b2 = jnp.broadcast_to(b2_ref[...], (R, H))
    ln1_g = jnp.broadcast_to(ln1_g_ref[...], (R, H))
    ln1_b = jnp.broadcast_to(ln1_b_ref[...], (R, H))
    ln2_g = jnp.broadcast_to(ln2_g_ref[...], (R, H))
    ln2_b = jnp.broadcast_to(ln2_b_ref[...], (R, H))
    ln3_g = jnp.broadcast_to(ln3_g_ref[...], (R, H))
    ln3_b = jnp.broadcast_to(ln3_b_ref[...], (R, H))

    # Weights: read once (DMA'd into VMEM exactly once per pallas_call).
    uu, vv = uu_ref[...], vv_ref[...]                       # f32 low-rank factors (tiny)
    wq, wk, wv, wo = wq_ref[...], wk_ref[...], wv_ref[...], wo_ref[...]   # bf16
    w1, w2 = w1_ref[...], w2_ref[...]                       # bf16

    h_ref[...] = x_ref[...].reshape(R, H)   # hidden state stays resident in VMEM

    # Fused + unrolled layer loop: one kernel launch for the whole encoder.
    @pl.loop(0, num_layers, unroll=True)
    def _(_layer):
        x = h_ref[...]                      # [R, H] f32
        xb = x.astype(cdt)

        # ---- FrequencyLayer (DSP branch): exact low-rank rfft->trunc->irfft ----
        low = jnp.dot(uu, jnp.dot(vv, x, preferred_element_type=jnp.float32),
                      preferred_element_type=jnp.float32)
        dsp = _layernorm(low + beta2 * (x - low) + x, ln1_g, ln1_b)

        # ---- MultiHeadAttention (GSP branch): dense QKV over all folded rows ----
        q = jnp.dot(xb, wq, preferred_element_type=jnp.float32) + bq
        k = jnp.dot(xb, wk, preferred_element_type=jnp.float32) + bk
        v = jnp.dot(xb, wv, preferred_element_type=jnp.float32) + bv

        attn_parts = []
        for b in range(bb):                 # static, small: per-sequence attention
            sl = slice(b * S, (b + 1) * S)
            qb, kb, vb = q[sl], k[sl], v[sl]
            attn_b = None
            for hh in range(num_heads):     # static head count -> static slices
                lo = hh * hd
                qh = qb[:, lo:lo + hd].astype(cdt)
                kh = kb[:, lo:lo + hd].astype(cdt)
                vh = vb[:, lo:lo + hd].astype(cdt)
                s = jax.lax.dot_general(qh, kh, (((1,), (1,)), ((), ())),
                                        preferred_element_type=jnp.float32)
                s = s * scale + masks[b]
                s = s - jnp.max(s, axis=-1, keepdims=True)
                p = jnp.exp(s)
                p = p * _recip(jnp.sum(p, axis=-1, keepdims=True))
                ctx = jnp.dot(p.astype(cdt), vh, preferred_element_type=jnp.float32)
                # Accumulate the output projection per head (sublane-aligned Wo slice):
                # no lane-partial ctx stores, no ctx VMEM scratch / round trip.
                contrib = jnp.dot(ctx.astype(cdt), wo[lo:lo + hd, :],
                                  preferred_element_type=jnp.float32)
                attn_b = contrib if attn_b is None else attn_b + contrib
            attn_parts.append(attn_b)
        attn = attn_parts[0] if bb == 1 else jnp.concatenate(attn_parts, axis=0)
        gsp = _layernorm(attn + bo + x, ln2_g, ln2_b)

        # ---- alpha mix -------------------------------------------------------
        mixed = alpha * dsp + (1.0 - alpha) * gsp

        # ---- FeedForward -----------------------------------------------------
        h1 = _gelu(jnp.dot(mixed.astype(cdt), w1, preferred_element_type=jnp.float32) + b1)
        h2 = jnp.dot(h1.astype(cdt), w2, preferred_element_type=jnp.float32) + b2
        h_ref[...] = _layernorm(h2 + mixed, ln3_g, ln3_b)

    out_ref[...] = h_ref[...].reshape(bb, S, H).astype(out_ref.dtype)
    # TODO(synk): at realistic S, tile the attention over KV blocks (flash-style
    # online softmax) and single-buffer the constant weight inputs via pl.ANY +
    # a one-time make_async_copy, to respect v7x's 64 MiB VMEM.


# ------------------------------ host-side glue --------------------------------
def lowpass_factors(seq_len, c):
    """Exact low-rank factorization U @ V of (irfft . zero-bins>=c . rfft) (norm='ortho').

    The operator is the orthogonal projector onto the first c real Fourier modes,
    so U = B^T, V = B with B the orthonormal cos/sin basis rows (rank <= 2c-1).
    The inner dim is zero-padded up to a multiple of 8 for sublane alignment.
    """
    S = seq_len
    kept = min(c, S // 2 + 1)
    n = jnp.arange(S, dtype=jnp.float32)
    rows = []
    for k in range(kept):
        if k == 0:
            rows.append(jnp.full((S,), 1.0 / math.sqrt(S), jnp.float32))
        elif (S % 2 == 0) and (k == S // 2):
            rows.append(jnp.where(jnp.arange(S) % 2 == 0, 1.0, -1.0) / math.sqrt(S))
        else:
            ang = 2.0 * math.pi * k * n / S
            rows.append(math.sqrt(2.0 / S) * jnp.cos(ang))
            rows.append(math.sqrt(2.0 / S) * jnp.sin(ang))
    v = jnp.stack(rows, axis=0).astype(jnp.float32)          # [r, S]
    r = v.shape[0]
    r_pad = max(8, ((r + 7) // 8) * 8)
    v = jnp.pad(v, ((0, r_pad - r), (0, 0)))
    return v.T, v                                            # U [S, r_pad], V [r_pad, S]


def csrec_encoder_forward(x, seq_lens, params, u_f, v_f, *, num_layers, num_heads,
                          alpha, bb=None, matmul_dtype=jnp.bfloat16):
    """Single fused pallas_call for the whole layer stack (bb sequences per grid step)."""
    B, S, H = x.shape
    if bb is None:
        bb = B
    assert B % bb == 0 and H % num_heads == 0
    R = bb * S
    inter = params["w1"].shape[1]
    cdt = matmul_dtype

    # Block-diagonal low-rank factors so the DSP matmul covers all bb folded sequences.
    eye_bb = jnp.eye(bb, dtype=jnp.float32)
    uu = jnp.kron(eye_bb, u_f)                               # [R, bb*r]
    vv = jnp.kron(eye_bb, v_f)                               # [bb*r, R]

    # bf16 MXU operands for the big matmuls (f32 accumulation inside the kernel).
    wq = params["wq"].astype(cdt)
    wk = params["wk"].astype(cdt)
    wv = params["wv"].astype(cdt)
    wo = params["wo"].astype(cdt)
    w1 = params["w1"].astype(cdt)
    w2 = params["w2"].astype(cdt)

    def const(shape):
        n = len(shape)
        return pl.BlockSpec(shape, lambda i, lens, _n=n: (0,) * _n)

    in_specs = [
        pl.BlockSpec((bb, S, H), lambda i, lens: (i, 0, 0)),   # x (bb sequences / step)
        const(uu.shape), const(vv.shape),                      # low-rank lp factors
        const((1, H)),                                         # sqrt_beta
        const((1, H)), const((1, H)),                          # LN1
        const((H, H)), const((1, H)),                          # Wq, bq
        const((H, H)), const((1, H)),                          # Wk, bk
        const((H, H)), const((1, H)),                          # Wv, bv
        const((H, H)), const((1, H)),                          # Wo, bo
        const((1, H)), const((1, H)),                          # LN2
        const((H, inter)), const((1, inter)),                  # FFN dense_1
        const((inter, H)), const((1, H)),                      # FFN dense_2
        const((1, H)), const((1, H)),                          # LN3
    ]

    kernel = functools.partial(csrec_encoder_kernel, num_layers=num_layers,
                               num_heads=num_heads, alpha=alpha, bb=bb,
                               seq_len=S, matmul_dtype=cdt)
    grid = (B // bb,)
    return pl.pallas_call(
        kernel,
        out_shape=jax.ShapeDtypeStruct((B, S, H), x.dtype),
        grid_spec=pltpu.PrefetchScalarGridSpec(
            num_scalar_prefetch=1,
            grid=grid,
            in_specs=in_specs,
            out_specs=pl.BlockSpec((bb, S, H), lambda i, lens: (i, 0, 0)),
            scratch_shapes=[pltpu.VMEM((R, H), jnp.float32)],   # hidden-state carry
        ),
        compiler_params=pltpu.CompilerParams(
            dimension_semantics=("parallel",) if grid[0] > 1 else ("arbitrary",),
            vmem_limit_bytes=32 * 1024 * 1024),
    )(
        seq_lens.astype(jnp.int32), x, uu, vv, params["sqrt_beta"],
        params["ln1_g"], params["ln1_b"],
        wq, params["bq"], wk, params["bk"], wv, params["bv"], wo, params["bo"],
        params["ln2_g"], params["ln2_b"],
        w1, params["b1"], w2, params["b2"],
        params["ln3_g"], params["ln3_b"],
    )


def csrec_encoder(hidden_states, seq_lens, params, u_f, v_f, *, num_layers, num_heads,
                  alpha, bb=None, matmul_dtype=jnp.bfloat16,
                  output_all_encoded_layers=False):
    """Mirrors CSRecEncoder.forward (deepcopy'd block => shared initial weights)."""
    all_encoder_layers = [hidden_states]
    if output_all_encoded_layers:
        h = hidden_states
        for _ in range(num_layers):
            h = csrec_encoder_forward(h, seq_lens, params, u_f, v_f, num_layers=1,
                                      num_heads=num_heads, alpha=alpha, bb=bb,
                                      matmul_dtype=matmul_dtype)
            all_encoder_layers.append(h)
    else:
        all_encoder_layers.append(
            csrec_encoder_forward(hidden_states, seq_lens, params, u_f, v_f,
                                  num_layers=num_layers, num_heads=num_heads,
                                  alpha=alpha, bb=bb, matmul_dtype=matmul_dtype))
    return all_encoder_layers


# ------------------------------ pure-JAX reference -----------------------------
def _ref_layernorm(x, g, b):
    u = x.mean(-1, keepdims=True)
    s = ((x - u) ** 2).mean(-1, keepdims=True)
    return (x - u) / jnp.sqrt(s + EPS) * g + b


def ref_block(x, mask, p, *, num_heads, alpha, c):
    B, S, H = x.shape
    hd = H // num_heads
    xf = jnp.fft.rfft(x, axis=1, norm="ortho")
    keep = (jnp.arange(xf.shape[1]) < c).astype(jnp.float32)[None, :, None]
    low = jnp.fft.irfft(xf * keep, n=S, axis=1, norm="ortho")
    high = x - low
    dsp = _ref_layernorm(low + (p["sqrt_beta"] ** 2) * high + x, p["ln1_g"], p["ln1_b"])

    q = (x @ p["wq"] + p["bq"]).reshape(B, S, num_heads, hd).transpose(0, 2, 1, 3)
    k = (x @ p["wk"] + p["bk"]).reshape(B, S, num_heads, hd).transpose(0, 2, 1, 3)
    v = (x @ p["wv"] + p["bv"]).reshape(B, S, num_heads, hd).transpose(0, 2, 1, 3)
    scores = jnp.einsum("bhqd,bhkd->bhqk", q, k) / math.sqrt(hd) + mask[:, None]
    probs = jax.nn.softmax(scores, axis=-1)
    ctx = jnp.einsum("bhqk,bhkd->bhqd", probs, v).transpose(0, 2, 1, 3).reshape(B, S, H)
    gsp = _ref_layernorm(ctx @ p["wo"] + p["bo"] + x, p["ln2_g"], p["ln2_b"])

    mixed = alpha * dsp + (1.0 - alpha) * gsp

    h1 = mixed @ p["w1"] + p["b1"]
    h1 = h1 * 0.5 * (1.0 + jax.scipy.special.erf(h1 / math.sqrt(2.0)))
    h2 = h1 @ p["w2"] + p["b2"]
    return _ref_layernorm(h2 + mixed, p["ln3_g"], p["ln3_b"])


# ----------------------------------- main --------------------------------------
if __name__ == "__main__":
    # synthetic "args": hidden_size=32, num_attention_heads=2, num_hidden_layers=2,
    # c=5, alpha=0.7, hidden_act='gelu'; batch=2, seq=8
    B, S, H = 2, 8, 32
    NUM_HEADS, NUM_LAYERS = 2, 2
    ARGS_C, ALPHA = 5, 0.7
    C = ARGS_C // 2 + 1
    INTER = 4 * H

    key = jax.random.PRNGKey(0)
    ks = jax.random.split(key, 20)

    def w(k, *shape):
        return 0.02 * jax.random.normal(k, shape, jnp.float32)

    params = {
        "sqrt_beta": jax.random.normal(ks[0], (1, H), jnp.float32),
        "ln1_g": jnp.ones((1, H), jnp.float32), "ln1_b": jnp.zeros((1, H), jnp.float32),
        "wq": w(ks[1], H, H), "bq": w(ks[2], 1, H),
        "wk": w(ks[3], H, H), "bk": w(ks[4], 1, H),
        "wv": w(ks[5], H, H), "bv": w(ks[6], 1, H),
        "wo": w(ks[7], H, H), "bo": w(ks[8], 1, H),
        "ln2_g": jnp.ones((1, H), jnp.float32), "ln2_b": jnp.zeros((1, H), jnp.float32),
        "w1": w(ks[9], H, INTER), "b1": w(ks[10], 1, INTER),
        "w2": w(ks[11], INTER, H), "b2": w(ks[12], 1, H),
        "ln3_g": jnp.ones((1, H), jnp.float32), "ln3_b": jnp.zeros((1, H), jnp.float32),
    }
    u_f, v_f = lowpass_factors(S, C)

    hidden_states = 0.1 * jax.random.normal(ks[13], (B, S, H), jnp.float32)
    lens_list = [S, S - 2]                          # causal + padding mask per sequence
    seq_lens = jnp.array(lens_list, jnp.int32)

    layers = csrec_encoder(hidden_states, seq_lens, params, u_f, v_f,
                           num_layers=NUM_LAYERS, num_heads=NUM_HEADS, alpha=ALPHA,
                           bb=B, matmul_dtype=jnp.bfloat16,
                           output_all_encoded_layers=False)
    final = jax.block_until_ready(layers[-1])

    # ---- correctness check against a pure-JAX reference ----
    # Reference uses the same bf16-rounded weight values (the kernel's parameters)
    # but exact FFT low-pass / exact softmax, so the comparison validates the
    # low-rank factorization, in-kernel mask and fused-layer structure.
    row = jnp.arange(S)[:, None]
    col = jnp.arange(S)[None, :]
    mask = jnp.stack([jnp.where((col <= row) & (col < L), 0.0, NEG_INF)
                      for L in lens_list]).astype(jnp.float32)
    params_ref = dict(params)
    for name in ("wq", "wk", "wv", "wo", "w1", "w2"):
        params_ref[name] = params[name].astype(jnp.bfloat16).astype(jnp.float32)

    ref = hidden_states
    for _ in range(NUM_LAYERS):
        ref = ref_block(ref, mask, params_ref, num_heads=NUM_HEADS, alpha=ALPHA, c=C)
    max_err = float(jnp.max(jnp.abs(final - ref)))
    assert max_err < 5e-2, f"mismatch vs reference: {max_err}"

    print("KERNEL_OK")
</pallas_src>

<mosaic_0001>
module attributes {stable_mosaic.version = 11 : i64} {
  func.func @csrec_encoder_kernel(%arg0: i32, %arg1: memref<2xi32, #tpu.memory_space<smem>>, %arg2: memref<2x8x32xf32, #tpu.memory_space<vmem>>, %arg3: memref<16x16xf32, #tpu.memory_space<vmem>>, %arg4: memref<16x16xf32, #tpu.memory_space<vmem>>, %arg5: memref<1x32xf32, #tpu.memory_space<vmem>>, %arg6: memref<1x32xf32, #tpu.memory_space<vmem>>, %arg7: memref<1x32xf32, #tpu.memory_space<vmem>>, %arg8: memref<32x32xbf16, #tpu.memory_space<vmem>>, %arg9: memref<1x32xf32, #tpu.memory_space<vmem>>, %arg10: memref<32x32xbf16, #tpu.memory_space<vmem>>, %arg11: memref<1x32xf32, #tpu.memory_space<vmem>>, %arg12: memref<32x32xbf16, #tpu.memory_space<vmem>>, %arg13: memref<1x32xf32, #tpu.memory_space<vmem>>, %arg14: memref<32x32xbf16, #tpu.memory_space<vmem>>, %arg15: memref<1x32xf32, #tpu.memory_space<vmem>>, %arg16: memref<1x32xf32, #tpu.memory_space<vmem>>, %arg17: memref<1x32xf32, #tpu.memory_space<vmem>>, %arg18: memref<32x128xbf16, #tpu.memory_space<vmem>>, %arg19: memref<1x128xf32, #tpu.memory_space<vmem>>, %arg20: memref<128x32xbf16, #tpu.memory_space<vmem>>, %arg21: memref<1x32xf32, #tpu.memory_space<vmem>>, %arg22: memref<1x32xf32, #tpu.memory_space<vmem>>, %arg23: memref<1x32xf32, #tpu.memory_space<vmem>>, %arg24: memref<2x8x32xf32, #tpu.memory_space<vmem>>, %arg25: memref<16x32xf32, #tpu.memory_space<vmem>>) attributes {dimension_semantics = [#tpu.dimension_semantics<arbitrary>], iteration_bounds = array<i64: 1>, scalar_prefetch = 1 : i64, scratch_operands = 1 : i64, tpu.core_type = #tpu.core_type<tc>, window_params = [{transform_indices = @transform_0, window_bounds = array<i64: 2, 8, 32>}, {pipeline_mode = #tpu.pipeline_mode<synchronous>, transform_indices = @transform_1, window_bounds = array<i64: 16, 16>}, {pipeline_mode = #tpu.pipeline_mode<synchronous>, transform_indices = @transform_2, window_bounds = array<i64: 16, 16>}, {pipeline_mode = #tpu.pipeline_mode<synchronous>, transform_indices = @transform_3, window_bounds = array<i64: 1, 32>}, {pipeline_mode = #tpu.pipeline_mode<synchronous>, transform_indices = @transform_4, window_bounds = array<i64: 1, 32>}, {pipeline_mode = #tpu.pipeline_mode<synchronous>, transform_indices = @transform_5, window_bounds = array<i64: 1, 32>}, {pipeline_mode = #tpu.pipeline_mode<synchronous>, transform_indices = @transform_6, window_bounds = array<i64: 32, 32>}, {pipeline_mode = #tpu.pipeline_mode<synchronous>, transform_indices = @transform_7, window_bounds = array<i64: 1, 32>}, {pipeline_mode = #tpu.pipeline_mode<synchronous>, transform_indices = @transform_8, window_bounds = array<i64: 32, 32>}, {pipeline_mode = #tpu.pipeline_mode<synchronous>, transform_indices = @transform_9, window_bounds = array<i64: 1, 32>}, {pipeline_mode = #tpu.pipeline_mode<synchronous>, transform_indices = @transform_10, window_bounds = array<i64: 32, 32>}, {pipeline_mode = #tpu.pipeline_mode<synchronous>, transform_indices = @transform_11, window_bounds = array<i64: 1, 32>}, {pipeline_mode = #tpu.pipeline_mode<synchronous>, transform_indices = @transform_12, window_bounds = array<i64: 32, 32>}, {pipeline_mode = #tpu.pipeline_mode<synchronous>, transform_indices = @transform_13, window_bounds = array<i64: 1, 32>}, {pipeline_mode = #tpu.pipeline_mode<synchronous>, transform_indices = @transform_14, window_bounds = array<i64: 1, 32>}, {pipeline_mode = #tpu.pipeline_mode<synchronous>, transform_indices = @transform_15, window_bounds = array<i64: 1, 32>}, {pipeline_mode = #tpu.pipeline_mode<synchronous>, transform_indices = @transform_16, window_bounds = array<i64: 32, 128>}, {pipeline_mode = #tpu.pipeline_mode<synchronous>, transform_indices = @transform_17, window_bounds = array<i64: 1, 128>}, {pipeline_mode = #tpu.pipeline_mode<synchronous>, transform_indices = @transform_18, window_bounds = array<i64: 128, 32>}, {pipeline_mode = #tpu.pipeline_mode<synchronous>, transform_indices = @transform_19, window_bounds = array<i64: 1, 32>}, {pipeline_mode = #tpu.pipeline_mode<synchronous>, transform_indices = @transform_20, window_bounds = array<i64: 1, 32>}, {pipeline_mode = #tpu.pipeline_mode<synchronous>, transform_indices = @transform_21, window_bounds = array<i64: 1, 32>}, {transform_indices = @transform_22, window_bounds = array<i64: 2, 8, 32>}]} {
    %0 = tpu.iota {dimensions = array<i32: 0>} : vector<8x8xi32>
    %1 = tpu.iota {dimensions = array<i32: 1>} : vector<8x8xi32>
    %c2_i32 = arith.constant 2 : i32
    %2 = arith.muli %arg0, %c2_i32 : i32
    %c0_i32 = arith.constant 0 : i32
    %3 = arith.addi %2, %c0_i32 : i32
    %4 = arith.index_cast %3 : i32 to index
    %5 = memref.load %arg1[%4] : memref<2xi32, #tpu.memory_space<smem>>
    %6 = arith.cmpi sle, %1, %0 : vector<8x8xi32>
    %7 = vector.broadcast %5 : i32 to vector<8x8xi32>
    %8 = arith.cmpi slt, %1, %7 : vector<8x8xi32>
    %9 = arith.andi %6, %8 : vector<8x8xi1>
    %cst = arith.constant 0.000000e+00 : f32
    %cst_0 = arith.constant -1.000000e+04 : f32
    %10 = vector.broadcast %cst : f32 to vector<8x8xf32>
    %11 = vector.broadcast %cst_0 : f32 to vector<8x8xf32>
    %12 = arith.select %9, %10, %11 : vector<8x8xi1>, vector<8x8xf32>
    %c2_i32_1 = arith.constant 2 : i32
    %13 = arith.muli %arg0, %c2_i32_1 : i32
    %c1_i32 = arith.constant 1 : i32
    %14 = arith.addi %13, %c1_i32 : i32
    %15 = arith.index_cast %14 : i32 to index
    %16 = memref.load %arg1[%15] : memref<2xi32, #tpu.memory_space<smem>>
    %17 = arith.cmpi sle, %1, %0 : vector<8x8xi32>
    %18 = vector.broadcast %16 : i32 to vector<8x8xi32>
    %19 = arith.cmpi slt, %1, %18 : vector<8x8xi32>
    %20 = arith.andi %17, %19 : vector<8x8xi1>
    %cst_2 = arith.constant 0.000000e+00 : f32
    %cst_3 = arith.constant -1.000000e+04 : f32
    %21 = vector.broadcast %cst_2 : f32 to vector<8x8xf32>
    %22 = vector.broadcast %cst_3 : f32 to vector<8x8xf32>
    %23 = arith.select %20, %21, %22 : vector<8x8xi1>, vector<8x8xf32>
    %c0 = arith.constant 0 : index
    %c0_4 = arith.constant 0 : index
    %24 = vector.load %arg5[%c0, %c0_4] : memref<1x32xf32, #tpu.memory_space<vmem>>, vector<1x32xf32>
    %25 = arith.mulf %24, %24 : vector<1x32xf32>
    %26 = vector.shape_cast %25 : vector<1x32xf32> to vector<1x32xf32>
    %27 = vector.broadcast %26 : vector<1x32xf32> to vector<16x32xf32>
    %c0_5 = arith.constant 0 : index
    %c0_6 = arith.constant 0 : index
    %28 = vector.load %arg9[%c0_5, %c0_6] : memref<1x32xf32, #tpu.memory_space<vmem>>, vector<1x32xf32>
    %29 = vector.shape_cast %28 : vector<1x32xf32> to vector<1x32xf32>
    %30 = vector.broadcast %29 : vector<1x32xf32> to vector<16x32xf32>
    %c0_7 = arith.constant 0 : index
    %c0_8 = arith.constant 0 : index
    %31 = vector.load %arg11[%c0_7, %c0_8] : memref<1x32xf32, #tpu.memory_space<vmem>>, vector<1x32xf32>
    %32 = vector.shape_cast %31 : vector<1x32xf32> to vector<1x32xf32>
    %33 = vector.broadcast %32 : vector<1x32xf32> to vector<16x32xf32>
    %c0_9 = arith.constant 0 : index
    %c0_10 = arith.constant 0 : index
    %34 = vector.load %arg13[%c0_9, %c0_10] : memref<1x32xf32, #tpu.memory_space<vmem>>, vector<1x32xf32>
    %35 = vector.shape_cast %34 : vector<1x32xf32> to vector<1x32xf32>
    %36 = vector.broadcast %35 : vector<1x32xf32> to vector<16x32xf32>
    %c0_11 = arith.constant 0 : index
    %c0_12 = arith.constant 0 : index
    %37 = vector.load %arg15[%c0_11, %c0_12] : memref<1x32xf32, #tpu.memory_space<vmem>>, vector<1x32xf32>
    %38 = vector.shape_cast %37 : vector<1x32xf32> to vector<1x32xf32>
    %39 = vector.broadcast %38 : vector<1x32xf32> to vector<16x32xf32>
    %c0_13 = arith.constant 0 : index
    %c0_14 = arith.constant 0 : index
    %40 = vector.load %arg19[%c0_13, %c0_14] : memref<1x128xf32, #tpu.memory_space<vmem>>, vector<1x128xf32>
    %41 = vector.shape_cast %40 : vector<1x128xf32> to vector<1x128xf32>
    %42 = vector.broadcast %41 : vector<1x128xf32> to vector<16x128xf32>
    %c0_15 = arith.constant 0 : index
    %c0_16 = arith.constant 0 : index
    %43 = vector.load %arg21[%c0_15, %c0_16] : memref<1x32xf32, #tpu.memory_space<vmem>>, vector<1x32xf32>
    %44 = vector.shape_cast %43 : vector<1x32xf32> to vector<1x32xf32>
    %45 = vector.broadcast %44 : vector<1x32xf32> to vector<16x32xf32>
    %c0_17 = arith.constant 0 : index
    %c0_18 = arith.constant 0 : index
    %46 = vector.load %arg6[%c0_17, %c0_18] : memref<1x32xf32, #tpu.memory_space<vmem>>, vector<1x32xf32>
    %47 = vector.shape_cast %46 : vector<1x32xf32> to vector<1x32xf32>
    %48 = vector.broadcast %47 : vector<1x32xf32> to vector<16x32xf32>
    %c0_19 = arith.constant 0 : index
    %c0_20 = arith.constant 0 : index
    %49 = vector.load %arg7[%c0_19, %c0_20] : memref<1x32xf32, #tpu.memory_space<vmem>>, vector<1x32xf32>
    %50 = vector.shape_cast %49 : vector<1x32xf32> to vector<1x32xf32>
    %51 = vector.broadcast %50 : vector<1x32xf32> to vector<16x32xf32>
    %c0_21 = arith.constant 0 : index
    %c0_22 = arith.constant 0 : index
    %52 = vector.load %arg16[%c0_21, %c0_22] : memref<1x32xf32, #tpu.memory_space<vmem>>, vector<1x32xf32>
    %53 = vector.shape_cast %52 : vector<1x32xf32> to vector<1x32xf32>
    %54 = vector.broadcast %53 : vector<1x32xf32> to vector<16x32xf32>
    %c0_23 = arith.constant 0 : index
    %c0_24 = arith.constant 0 : index
    %55 = vector.load %arg17[%c0_23, %c0_24] : memref<1x32xf32, #tpu.memory_space<vmem>>, vector<1x32xf32>
    %56 = vector.shape_cast %55 : vector<1x32xf32> to vector<1x32xf32>
    %57 = vector.broadcast %56 : vector<1x32xf32> to vector<16x32xf32>
    %c0_25 = arith.constant 0 : index
    %c0_26 = arith.constant 0 : index
    %58 = vector.load %arg22[%c0_25, %c0_26] : memref<1x32xf32, #tpu.memory_space<vmem>>, vector<1x32xf32>
    %59 = vector.shape_cast %58 : vector<1x32xf32> to vector<1x32xf32>
    %60 = vector.broadcast %59 : vector<1x32xf32> to vector<16x32xf32>
    %c0_27 = arith.constant 0 : index
    %c0_28 = arith.constant 0 : index
    %61 = vector.load %arg23[%c0_27, %c0_28] : memref<1x32xf32, #tpu.memory_space<vmem>>, vector<1x32xf32>
    %62 = vector.shape_cast %61 : vector<1x32xf32> to vector<1x32xf32>
    %63 = vector.broadcast %62 : vector<1x32xf32> to vector<16x32xf32>
    %c0_29 = arith.constant 0 : index
    %c0_30 = arith.constant 0 : index
    %64 = vector.load %arg3[%c0_29, %c0_30] : memref<16x16xf32, #tpu.memory_space<vmem>>, vector<16x16xf32>
    %c0_31 = arith.constant 0 : index
    %c0_32 = arith.constant 0 : index
    %65 = vector.load %arg4[%c0_31, %c0_32] : memref<16x16xf32, #tpu.memory_space<vmem>>, vector<16x16xf32>
    %c0_33 = arith.constant 0 : index
    %c0_34 = arith.constant 0 : index
    %66 = vector.load %arg8[%c0_33, %c0_34] : memref<32x32xbf16, #tpu.memory_space<vmem>>, vector<32x32xbf16>
    %c0_35 = arith.constant 0 : index
    %c0_36 = arith.constant 0 : index
    %67 = vector.load %arg10[%c0_35, %c0_36] : memref<32x32xbf16, #tpu.memory_space<vmem>>, vector<32x32xbf16>
    %c0_37 = arith.constant 0 : index
    %c0_38 = arith.constant 0 : index
    %68 = vector.load %arg12[%c0_37, %c0_38] : memref<32x32xbf16, #tpu.memory_space<vmem>>, vector<32x32xbf16>
    %c0_39 = arith.constant 0 : index
    %c0_40 = arith.constant 0 : index
    %69 = vector.load %arg14[%c0_39, %c0_40] : memref<32x32xbf16, #tpu.memory_space<vmem>>, vector<32x32xbf16>
    %c0_41 = arith.constant 0 : index
    %c0_42 = arith.constant 0 : index
    %70 = vector.load %arg18[%c0_41, %c0_42] : memref<32x128xbf16, #tpu.memory_space<vmem>>, vector<32x128xbf16>
    %c0_43 = arith.constant 0 : index
    %c0_44 = arith.constant 0 : index
    %71 = vector.load %arg20[%c0_43, %c0_44] : memref<128x32xbf16, #tpu.memory_space<vmem>>, vector<128x32xbf16>
    %c0_45 = arith.constant 0 : index
    %c0_46 = arith.constant 0 : index
    %c0_47 = arith.constant 0 : index
    %72 = vector.load %arg2[%c0_45, %c0_46, %c0_47] : memref<2x8x32xf32, #tpu.memory_space<vmem>>, vector<2x8x32xf32>
    %73 = vector.shape_cast %72 : vector<2x8x32xf32> to vector<16x32xf32>
    %c0_48 = arith.constant 0 : index
    %c0_49 = arith.constant 0 : index
    %74 = vector.load %arg25[%c0_48, %c0_49] : memref<16x32xf32, #tpu.memory_space<vmem>>, vector<16x32xf32>
    tpu.vector_store %arg25[%c0_48, %c0_49], %73 {strides = array<i32>} : memref<16x32xf32, #tpu.memory_space<vmem>>, vector<16x32xf32>,
    %c0_i32_50 = arith.constant 0 : i32
    %c0_51 = arith.constant 0 : index
    %c0_52 = arith.constant 0 : index
    %75 = vector.load %arg25[%c0_51, %c0_52] : memref<16x32xf32, #tpu.memory_space<vmem>>, vector<16x32xf32>
    %76 = arith.truncf %75 : vector<16x32xf32> to vector<16x32xbf16>
    %cst_53 = arith.constant dense<0.000000e+00> : vector<16x32xf32>
    %77 = tpu.matmul %65, %75, %cst_53 {dimension_numbers = #tpu.dot_dimension_numbers<[1], [0], [0], [1], [0, 0, 1, 1], [], []>} : vector<16x16xf32>, vector<16x32xf32>, vector<16x32xf32> -> vector<16x32xf32>
    %cst_54 = arith.constant dense<0.000000e+00> : vector<16x32xf32>
    %78 = tpu.matmul %64, %77, %cst_54 {dimension_numbers = #tpu.dot_dimension_numbers<[1], [0], [0], [1], [0, 0, 1, 1], [], []>} : vector<16x16xf32>, vector<16x32xf32>, vector<16x32xf32> -> vector<16x32xf32>
    %79 = arith.subf %75, %78 : vector<16x32xf32>
    %80 = arith.mulf %27, %79 : vector<16x32xf32>
    %81 = arith.addf %78, %80 : vector<16x32xf32>
    %82 = arith.addf %81, %75 : vector<16x32xf32>
    %cst_55 = arith.constant dense<0.000000e+00> : vector<16xf32>
    %83 = vector.multi_reduction <add>, %82, %cst_55 [1] : vector<16x32xf32> to vector<16xf32>
    %84 = vector.shape_cast %83 : vector<16xf32> to vector<16x1xf32>
    %cst_56 = arith.constant 3.200000e+01 : f32
    %85 = vector.broadcast %cst_56 : f32 to vector<16x1xf32>
    %86 = arith.divf %84, %85 : vector<16x1xf32>
    %87 = vector.broadcast %86 : vector<16x1xf32> to vector<16x32xf32>
    %88 = arith.subf %82, %87 : vector<16x32xf32>
    %89 = arith.mulf %88, %88 : vector<16x32xf32>
    %cst_57 = arith.constant dense<0.000000e+00> : vector<16xf32>
    %90 = vector.multi_reduction <add>, %89, %cst_57 [1] : vector<16x32xf32> to vector<16xf32>
    %91 = vector.shape_cast %90 : vector<16xf32> to vector<16x1xf32>
    %cst_58 = arith.constant 3.200000e+01 : f32
    %92 = vector.broadcast %cst_58 : f32 to vector<16x1xf32>
    %93 = arith.divf %91, %92 : vector<16x1xf32>
    %94 = vector.broadcast %86 : vector<16x1xf32> to vector<16x32xf32>
    %95 = arith.subf %82, %94 : vector<16x32xf32>
    %cst_59 = arith.constant 9.99999996E-13 : f32
    %96 = vector.broadcast %cst_59 : f32 to vector<16x1xf32>
    %97 = arith.addf %93, %96 : vector<16x1xf32>
    %98 = math.rsqrt %97 : vector<16x1xf32>
    %99 = vector.broadcast %98 : vector<16x1xf32> to vector<16x32xf32>
    %100 = arith.mulf %95, %99 : vector<16x32xf32>
    %101 = arith.mulf %100, %48 : vector<16x32xf32>
    %102 = arith.addf %101, %51 : vector<16x32xf32>
    %cst_60 = arith.constant dense<0.000000e+00> : vector<16x32xf32>
    %103 = tpu.matmul %76, %66, %cst_60 {dimension_numbers = #tpu.dot_dimension_numbers<[1], [0], [0], [1], [0, 0, 1, 1], [], []>} : vector<16x32xbf16>, vector<32x32xbf16>, vector<16x32xf32> -> vector<16x32xf32>
    %104 = arith.addf %103, %30 : vector<16x32xf32>
    %cst_61 = arith.constant dense<0.000000e+00> : vector<16x32xf32>
    %105 = tpu.matmul %76, %67, %cst_61 {dimension_numbers = #tpu.dot_dimension_numbers<[1], [0], [0], [1], [0, 0, 1, 1], [], []>} : vector<16x32xbf16>, vector<32x32xbf16>, vector<16x32xf32> -> vector<16x32xf32>
    %106 = arith.addf %105, %33 : vector<16x32xf32>
    %cst_62 = arith.constant dense<0.000000e+00> : vector<16x32xf32>
    %107 = tpu.matmul %76, %68, %cst_62 {dimension_numbers = #tpu.dot_dimension_numbers<[1], [0], [0], [1], [0, 0, 1, 1], [], []>} : vector<16x32xbf16>, vector<32x32xbf16>, vector<16x32xf32> -> vector<16x32xf32>
    %108 = arith.addf %107, %36 : vector<16x32xf32>
    %109 = vector.extract_strided_slice %104 {offsets = [0, 0], sizes = [8, 32], strides = [1, 1]} : vector<16x32xf32> to vector<8x32xf32>
    %110 = vector.extract_strided_slice %106 {offsets = [0, 0], sizes = [8, 32], strides = [1, 1]} : vector<16x32xf32> to vector<8x32xf32>
    %111 = vector.extract_strided_slice %108 {offsets = [0, 0], sizes = [8, 32], strides = [1, 1]} : vector<16x32xf32> to vector<8x32xf32>
    %112 = vector.extract_strided_slice %109 {offsets = [0, 0], sizes = [8, 16], strides = [1, 1]} : vector<8x32xf32> to vector<8x16xf32>
    %113 = arith.truncf %112 : vector<8x16xf32> to vector<8x16xbf16>
    %114 = vector.extract_strided_slice %110 {offsets = [0, 0], sizes = [8, 16], strides = [1, 1]} : vector<8x32xf32> to vector<8x16xf32>
    %115 = arith.truncf %114 : vector<8x16xf32> to vector<8x16xbf16>
    %116 = vector.extract_strided_slice %111 {offsets = [0, 0], sizes = [8, 16], strides = [1, 1]} : vector<8x32xf32> to vector<8x16xf32>
    %117 = arith.truncf %116 : vector<8x16xf32> to vector<8x16xbf16>
    %cst_63 = arith.constant dense<0.000000e+00> : vector<8x8xf32>
    %118 = tpu.matmul %113, %115, %cst_63 {dimension_numbers = #tpu.dot_dimension_numbers<[1], [1], [0], [0], [0, 0, 1, 0], [], []>} : vector<8x16xbf16>, vector<8x16xbf16>, vector<8x8xf32> -> vector<8x8xf32>
    %cst_64 = arith.constant 2.500000e-01 : f32
    %119 = vector.broadcast %cst_64 : f32 to vector<8x8xf32>
    %120 = arith.mulf %118, %119 : vector<8x8xf32>
    %121 = arith.addf %120, %12 : vector<8x8xf32>
    %cst_65 = arith.constant dense<0xFF800000> : vector<8xf32>
    %122 = vector.multi_reduction <maximumf>, %121, %cst_65 [1] : vector<8x8xf32> to vector<8xf32>
    %123 = vector.shape_cast %122 : vector<8xf32> to vector<8x1xf32>
    %124 = vector.broadcast %123 : vector<8x1xf32> to vector<8x8xf32>
    %125 = arith.subf %121, %124 : vector<8x8xf32>
    %126 = math.exp %125 : vector<8x8xf32>
    %cst_66 = arith.constant dense<0.000000e+00> : vector<8xf32>
    %127 = vector.multi_reduction <add>, %126, %cst_66 [1] : vector<8x8xf32> to vector<8xf32>
    %128 = vector.shape_cast %127 : vector<8xf32> to vector<8x1xf32>
    %129 = tpu.reciprocal %128 {approx = true} : vector<8x1xf32> -> vector<8x1xf32>
    %130 = arith.mulf %128, %129 : vector<8x1xf32>
    %cst_67 = arith.constant 2.000000e+00 : f32
    %131 = vector.broadcast %cst_67 : f32 to vector<8x1xf32>
    %132 = arith.subf %131, %130 : vector<8x1xf32>
    %133 = arith.mulf %129, %132 : vector<8x1xf32>
    %134 = vector.broadcast %133 : vector<8x1xf32> to vector<8x8xf32>
    %135 = arith.mulf %126, %134 : vector<8x8xf32>
    %136 = arith.truncf %135 : vector<8x8xf32> to vector<8x8xbf16>
    %cst_68 = arith.constant dense<0.000000e+00> : vector<8x16xf32>
    %137 = tpu.matmul %136, %117, %cst_68 {dimension_numbers = #tpu.dot_dimension_numbers<[1], [0], [0], [1], [0, 0, 1, 1], [], []>} : vector<8x8xbf16>, vector<8x16xbf16>, vector<8x16xf32> -> vector<8x16xf32>
    %138 = arith.truncf %137 : vector<8x16xf32> to vector<8x16xbf16>
    %139 = vector.extract_strided_slice %69 {offsets = [0, 0], sizes = [16, 32], strides = [1, 1]} : vector<32x32xbf16> to vector<16x32xbf16>
    %cst_69 = arith.constant dense<0.000000e+00> : vector<8x32xf32>
    %140 = tpu.matmul %138, %139, %cst_69 {dimension_numbers = #tpu.dot_dimension_numbers<[1], [0], [0], [1], [0, 0, 1, 1], [], []>} : vector<8x16xbf16>, vector<16x32xbf16>, vector<8x32xf32> -> vector<8x32xf32>
    %141 = vector.extract_strided_slice %109 {offsets = [0, 16], sizes = [8, 16], strides = [1, 1]} : vector<8x32xf32> to vector<8x16xf32>
    %142 = arith.truncf %141 : vector<8x16xf32> to vector<8x16xbf16>
    %143 = vector.extract_strided_slice %110 {offsets = [0, 16], sizes = [8, 16], strides = [1, 1]} : vector<8x32xf32> to vector<8x16xf32>
    %144 = arith.truncf %143 : vector<8x16xf32> to vector<8x16xbf16>
    %145 = vector.extract_strided_slice %111 {offsets = [0, 16], sizes = [8, 16], strides = [1, 1]} : vector<8x32xf32> to vector<8x16xf32>
    %146 = arith.truncf %145 : vector<8x16xf32> to vector<8x16xbf16>
    %cst_70 = arith.constant dense<0.000000e+00> : vector<8x8xf32>
    %147 = tpu.matmul %142, %144, %cst_70 {dimension_numbers = #tpu.dot_dimension_numbers<[1], [1], [0], [0], [0, 0, 1, 0], [], []>} : vector<8x16xbf16>, vector<8x16xbf16>, vector<8x8xf32> -> vector<8x8xf32>
    %cst_71 = arith.constant 2.500000e-01 : f32
    %148 = vector.broadcast %cst_71 : f32 to vector<8x8xf32>
    %149 = arith.mulf %147, %148 : vector<8x8xf32>
    %150 = arith.addf %149, %12 : vector<8x8xf32>
    %cst_72 = arith.constant dense<0xFF800000> : vector<8xf32>
    %151 = vector.multi_reduction <maximumf>, %150, %cst_72 [1] : vector<8x8xf32> to vector<8xf32>
    %152 = vector.shape_cast %151 : vector<8xf32> to vector<8x1xf32>
    %153 = vector.broadcast %152 : vector<8x1xf32> to vector<8x8xf32>
    %154 = arith.subf %150, %153 : vector<8x8xf32>
    %155 = math.exp %154 : vector<8x8xf32>
    %cst_73 = arith.constant dense<0.000000e+00> : vector<8xf32>
    %156 = vector.multi_reduction <add>, %155, %cst_73 [1] : vector<8x8xf32> to vector<8xf32>
    %157 = vector.shape_cast %156 : vector<8xf32> to vector<8x1xf32>
    %158 = tpu.reciprocal %157 {approx = true} : vector<8x1xf32> -> vector<8x1xf32>
    %159 = arith.mulf %157, %158 : vector<8x1xf32>
    %cst_74 = arith.constant 2.000000e+00 : f32
    %160 = vector.broadcast %cst_74 : f32 to vector<8x1xf32>
    %161 = arith.subf %160, %159 : vector<8x1xf32>
    %162 = arith.mulf %158, %161 : vector<8x1xf32>
    %163 = vector.broadcast %162 : vector<8x1xf32> to vector<8x8xf32>
    %164 = arith.mulf %155, %163 : vector<8x8xf32>
    %165 = arith.truncf %164 : vector<8x8xf32> to vector<8x8xbf16>
    %cst_75 = arith.constant dense<0.000000e+00> : vector<8x16xf32>
    %166 = tpu.matmul %165, %146, %cst_75 {dimension_numbers = #tpu.dot_dimension_numbers<[1], [0], [0], [1], [0, 0, 1, 1], [], []>} : vector<8x8xbf16>, vector<8x16xbf16>, vector<8x16xf32> -> vector<8x16xf32>
    %167 = arith.truncf %166 : vector<8x16xf32> to vector<8x16xbf16>
    %168 = vector.extract_strided_slice %69 {offsets = [16, 0], sizes = [16, 32], strides = [1, 1]} : vector<32x32xbf16> to vector<16x32xbf16>
    %cst_76 = arith.constant dense<0.000000e+00> : vector<8x32xf32>
    %169 = tpu.matmul %167, %168, %cst_76 {dimension_numbers = #tpu.dot_dimension_numbers<[1], [0], [0], [1], [0, 0, 1, 1], [], []>} : vector<8x16xbf16>, vector<16x32xbf16>, vector<8x32xf32> -> vector<8x32xf32>
    %170 = arith.addf %140, %169 : vector<8x32xf32>
    %171 = vector.extract_strided_slice %104 {offsets = [8, 0], sizes = [8, 32], strides = [1, 1]} : vector<16x32xf32> to vector<8x32xf32>
    %172 = vector.extract_strided_slice %106 {offsets = [8, 0], sizes = [8, 32], strides = [1, 1]} : vector<16x32xf32> to vector<8x32xf32>
    %173 = vector.extract_strided_slice %108 {offsets = [8, 0], sizes = [8, 32], strides = [1, 1]} : vector<16x32xf32> to vector<8x32xf32>
    %174 = vector.extract_strided_slice %171 {offsets = [0, 0], sizes = [8, 16], strides = [1, 1]} : vector<8x32xf32> to vector<8x16xf32>
    %175 = arith.truncf %174 : vector<8x16xf32> to vector<8x16xbf16>
    %176 = vector.extract_strided_slice %172 {offsets = [0, 0], sizes = [8, 16], strides = [1, 1]} : vector<8x32xf32> to vector<8x16xf32>
    %177 = arith.truncf %176 : vector<8x16xf32> to vector<8x16xbf16>
    %178 = vector.extract_strided_slice %173 {offsets = [0, 0], sizes = [8, 16], strides = [1, 1]} : vector<8x32xf32> to vector<8x16xf32>
    %179 = arith.truncf %178 : vector<8x16xf32> to vector<8x16xbf16>
    %cst_77 = arith.constant dense<0.000000e+00> : vector<8x8xf32>
    %180 = tpu.matmul %175, %177, %cst_77 {dimension_numbers = #tpu.dot_dimension_numbers<[1], [1], [0], [0], [0, 0, 1, 0], [], []>} : vector<8x16xbf16>, vector<8x16xbf16>, vector<8x8xf32> -> vector<8x8xf32>
    %cst_78 = arith.constant 2.500000e-01 : f32
    %181 = vector.broadcast %cst_78 : f32 to vector<8x8xf32>
    %182 = arith.mulf %180, %181 : vector<8x8xf32>
    %183 = arith.addf %182, %23 : vector<8x8xf32>
    %cst_79 = arith.constant dense<0xFF800000> : vector<8xf32>
    %184 = vector.multi_reduction <maximumf>, %183, %cst_79 [1] : vector<8x8xf32> to vector<8xf32>
    %185 = vector.shape_cast %184 : vector<8xf32> to vector<8x1xf32>
    %186 = vector.broadcast %185 : vector<8x1xf32> to vector<8x8xf32>
    %187 = arith.subf %183, %186 : vector<8x8xf32>
    %188 = math.exp %187 : vector<8x8xf32>
    %cst_80 = arith.constant dense<0.000000e+00> : vector<8xf32>
    %189 = vector.multi_reduction <add>, %188, %cst_80 [1] : vector<8x8xf32> to vector<8xf32>
    %190 = vector.shape_cast %189 : vector<8xf32> to vector<8x1xf32>
    %191 = tpu.reciprocal %190 {approx = true} : vector<8x1xf32> -> vector<8x1xf32>
    %192 = arith.mulf %190, %191 : vector<8x1xf32>
    %cst_81 = arith.constant 2.000000e+00 : f32
    %193 = vector.broadcast %cst_81 : f32 to vector<8x1xf32>
    %194 = arith.subf %193, %192 : vector<8x1xf32>
    %195 = arith.mulf %191, %194 : vector<8x1xf32>
    %196 = vector.broadcast %195 : vector<8x1xf32> to vector<8x8xf32>
    %197 = arith.mulf %188, %196 : vector<8x8xf32>
    %198 = arith.truncf %197 : vector<8x8xf32> to vector<8x8xbf16>
    %cst_82 = arith.constant dense<0.000000e+00> : vector<8x16xf32>
    %199 = tpu.matmul %198, %179, %cst_82 {dimension_numbers = #tpu.dot_dimension_numbers<[1], [0], [0], [1], [0, 0, 1, 1], [], []>} : vector<8x8xbf16>, vector<8x16xbf16>, vector<8x16xf32> -> vector<8x16xf32>
    %200 = arith.truncf %199 : vector<8x16xf32> to vector<8x16xbf16>
    %201 = vector.extract_strided_slice %69 {offsets = [0, 0], sizes = [16, 32], strides = [1, 1]} : vector<32x32xbf16> to vector<16x32xbf16>
    %cst_83 = arith.constant dense<0.000000e+00> : vector<8x32xf32>
    %202 = tpu.matmul %200, %201, %cst_83 {dimension_numbers = #tpu.dot_dimension_numbers<[1], [0], [0], [1], [0, 0, 1, 1], [], []>} : vector<8x16xbf16>, vector<16x32xbf16>, vector<8x32xf32> -> vector<8x32xf32>
    %203 = vector.extract_strided_slice %171 {offsets = [0, 16], sizes = [8, 16], strides = [1, 1]} : vector<8x32xf32> to vector<8x16xf32>
    %204 = arith.truncf %203 : vector<8x16xf32> to vector<8x16xbf16>
    %205 = vector.extract_strided_slice %172 {offsets = [0, 16], sizes = [8, 16], strides = [1, 1]} : vector<8x32xf32> to vector<8x16xf32>
    %206 = arith.truncf %205 : vector<8x16xf32> to vector<8x16xbf16>
    %207 = vector.extract_strided_slice %173 {offsets = [0, 16], sizes = [8, 16], strides = [1, 1]} : vector<8x32xf32> to vector<8x16xf32>
    %208 = arith.truncf %207 : vector<8x16xf32> to vector<8x16xbf16>
    %cst_84 = arith.constant dense<0.000000e+00> : vector<8x8xf32>
    %209 = tpu.matmul %204, %206, %cst_84 {dimension_numbers = #tpu.dot_dimension_numbers<[1], [1], [0], [0], [0, 0, 1, 0], [], []>} : vector<8x16xbf16>, vector<8x16xbf16>, vector<8x8xf32> -> vector<8x8xf32>
    %cst_85 = arith.constant 2.500000e-01 : f32
    %210 = vector.broadcast %cst_85 : f32 to vector<8x8xf32>
    %211 = arith.mulf %209, %210 : vector<8x8xf32>
    %212 = arith.addf %211, %23 : vector<8x8xf32>
    %cst_86 = arith.constant dense<0xFF800000> : vector<8xf32>
    %213 = vector.multi_reduction <maximumf>, %212, %cst_86 [1] : vector<8x8xf32> to vector<8xf32>
    %214 = vector.shape_cast %213 : vector<8xf32> to vector<8x1xf32>
    %215 = vector.broadcast %214 : vector<8x1xf32> to vector<8x8xf32>
    %216 = arith.subf %212, %215 : vector<8x8xf32>
    %217 = math.exp %216 : vector<8x8xf32>
    %cst_87 = arith.constant dense<0.000000e+00> : vector<8xf32>
    %218 = vector.multi_reduction <add>, %217, %cst_87 [1] : vector<8x8xf32> to vector<8xf32>
    %219 = vector.shape_cast %218 : vector<8xf32> to vector<8x1xf32>
    %220 = tpu.reciprocal %219 {approx = true} : vector<8x1xf32> -> vector<8x1xf32>
    %221 = arith.mulf %219, %220 : vector<8x1xf32>
    %cst_88 = arith.constant 2.000000e+00 : f32
    %222 = vector.broadcast %cst_88 : f32 to vector<8x1xf32>
    %223 = arith.subf %222, %221 : vector<8x1xf32>
    %224 = arith.mulf %220, %223 : vector<8x1xf32>
    %225 = vector.broadcast %224 : vector<8x1xf32> to vector<8x8xf32>
    %226 = arith.mulf %217, %225 : vector<8x8xf32>
    %227 = arith.truncf %226 : vector<8x8xf32> to vector<8x8xbf16>
    %cst_89 = arith.constant dense<0.000000e+00> : vector<8x16xf32>
    %228 = tpu.matmul %227, %208, %cst_89 {dimension_numbers = #tpu.dot_dimension_numbers<[1], [0], [0], [1], [0, 0, 1, 1], [], []>} : vector<8x8xbf16>, vector<8x16xbf16>, vector<8x16xf32> -> vector<8x16xf32>
    %229 = arith.truncf %228 : vector<8x16xf32> to vector<8x16xbf16>
    %230 = vector.extract_strided_slice %69 {offsets = [16, 0], sizes = [16, 32], strides = [1, 1]} : vector<32x32xbf16> to vector<16x32xbf16>
    %cst_90 = arith.constant dense<0.000000e+00> : vector<8x32xf32>
    %231 = tpu.matmul %229, %230, %cst_90 {dimension_numbers = #tpu.dot_dimension_numbers<[1], [0], [0], [1], [0, 0, 1, 1], [], []>} : vector<8x16xbf16>, vector<16x32xbf16>, vector<8x32xf32> -> vector<8x32xf32>
    %232 = arith.addf %202, %231 : vector<8x32xf32>
    %233 = tpu.concatenate %170, %232 in 0 : vector<8x32xf32>, vector<8x32xf32> -> vector<16x32xf32>
    %234 = arith.addf %233, %39 : vector<16x32xf32>
    %235 = arith.addf %234, %75 : vector<16x32xf32>
    %cst_91 = arith.constant dense<0.000000e+00> : vector<16xf32>
    %236 = vector.multi_reduction <add>, %235, %cst_91 [1] : vector<16x32xf32> to vector<16xf32>
    %237 = vector.shape_cast %236 : vector<16xf32> to vector<16x1xf32>
    %cst_92 = arith.constant 3.200000e+01 : f32
    %238 = vector.broadcast %cst_92 : f32 to vector<16x1xf32>
    %239 = arith.divf %237, %238 : vector<16x1xf32>
    %240 = vector.broadcast %239 : vector<16x1xf32> to vector<16x32xf32>
    %241 = arith.subf %235, %240 : vector<16x32xf32>
    %242 = arith.mulf %241, %241 : vector<16x32xf32>
    %cst_93 = arith.constant dense<0.000000e+00> : vector<16xf32>
    %243 = vector.multi_reduction <add>, %242, %cst_93 [1] : vector<16x32xf32> to vector<16xf32>
    %244 = vector.shape_cast %243 : vector<16xf32> to vector<16x1xf32>
    %cst_94 = arith.constant 3.200000e+01 : f32
    %245 = vector.broadcast %cst_94 : f32 to vector<16x1xf32>
    %246 = arith.divf %244, %245 : vector<16x1xf32>
    %247 = vector.broadcast %239 : vector<16x1xf32> to vector<16x32xf32>
    %248 = arith.subf %235, %247 : vector<16x32xf32>
    %cst_95 = arith.constant 9.99999996E-13 : f32
    %249 = vector.broadcast %cst_95 : f32 to vector<16x1xf32>
    %250 = arith.addf %246, %249 : vector<16x1xf32>
    %251 = math.rsqrt %250 : vector<16x1xf32>
    %252 = vector.broadcast %251 : vector<16x1xf32> to vector<16x32xf32>
    %253 = arith.mulf %248, %252 : vector<16x32xf32>
    %254 = arith.mulf %253, %54 : vector<16x32xf32>
    %255 = arith.addf %254, %57 : vector<16x32xf32>
    %cst_96 = arith.constant 0.699999988 : f32
    %256 = vector.broadcast %cst_96 : f32 to vector<16x32xf32>
    %257 = arith.mulf %256, %102 : vector<16x32xf32>
    %cst_97 = arith.constant 3.000000e-01 : f32
    %258 = vector.broadcast %cst_97 : f32 to vector<16x32xf32>
    %259 = arith.mulf %258, %255 : vector<16x32xf32>
    %260 = arith.addf %257, %259 : vector<16x32xf32>
    %261 = arith.truncf %260 : vector<16x32xf32> to vector<16x32xbf16>
    %cst_98 = arith.constant dense<0.000000e+00> : vector<16x128xf32>
    %262 = tpu.matmul %261, %70, %cst_98 {dimension_numbers = #tpu.dot_dimension_numbers<[1], [0], [0], [1], [0, 0, 1, 1], [], []>} : vector<16x32xbf16>, vector<32x128xbf16>, vector<16x128xf32> -> vector<16x128xf32>
    %263 = arith.addf %262, %42 : vector<16x128xf32>
    %cst_99 = arith.constant 5.000000e-01 : f32
    %264 = vector.broadcast %cst_99 : f32 to vector<16x128xf32>
    %265 = arith.mulf %263, %264 : vector<16x128xf32>
    %cst_100 = arith.constant 0.707106769 : f32
    %266 = vector.broadcast %cst_100 : f32 to vector<16x128xf32>
    %267 = arith.mulf %263, %266 : vector<16x128xf32>
    %cst_101 = arith.constant 0.000000e+00 : f32
    %268 = vector.broadcast %cst_101 : f32 to vector<16x128xf32>
    %269 = arith.cmpf oge, %267, %268 : vector<16x128xf32>
    %cst_102 = arith.constant 1.000000e+00 : f32
    %cst_103 = arith.constant -1.000000e+00 : f32
    %270 = vector.broadcast %cst_102 : f32 to vector<16x128xf32>
    %271 = vector.broadcast %cst_103 : f32 to vector<16x128xf32>
    %272 = arith.select %269, %270, %271 : vector<16x128xi1>, vector<16x128xf32>
    %273 = math.absf %267 : vector<16x128xf32>
    %cst_104 = arith.constant 0.327591091 : f32
    %274 = vector.broadcast %cst_104 : f32 to vector<16x128xf32>
    %275 = arith.mulf %274, %273 : vector<16x128xf32>
    %cst_105 = arith.constant 1.000000e+00 : f32
    %276 = vector.broadcast %cst_105 : f32 to vector<16x128xf32>
    %277 = arith.addf %276, %275 : vector<16x128xf32>
    %278 = tpu.reciprocal %277 {approx = true} : vector<16x128xf32> -> vector<16x128xf32>
    %279 = arith.mulf %277, %278 : vector<16x128xf32>
    %cst_106 = arith.constant 2.000000e+00 : f32
    %280 = vector.broadcast %cst_106 : f32 to vector<16x128xf32>
    %281 = arith.subf %280, %279 : vector<16x128xf32>
    %282 = arith.mulf %278, %281 : vector<16x128xf32>
    %cst_107 = arith.constant 1.06140542 : f32
    %283 = vector.broadcast %cst_107 : f32 to vector<16x128xf32>
    %284 = arith.mulf %283, %282 : vector<16x128xf32>
    %cst_108 = arith.constant -1.45315206 : f32
    %285 = vector.broadcast %cst_108 : f32 to vector<16x128xf32>
    %286 = arith.addf %284, %285 : vector<16x128xf32>
    %287 = arith.mulf %286, %282 : vector<16x128xf32>
    %cst_109 = arith.constant 1.42141378 : f32
    %288 = vector.broadcast %cst_109 : f32 to vector<16x128xf32>
    %289 = arith.addf %287, %288 : vector<16x128xf32>
    %290 = arith.mulf %289, %282 : vector<16x128xf32>
    %cst_110 = arith.constant -0.284496725 : f32
    %291 = vector.broadcast %cst_110 : f32 to vector<16x128xf32>
    %292 = arith.addf %290, %291 : vector<16x128xf32>
    %293 = arith.mulf %292, %282 : vector<16x128xf32>
    %cst_111 = arith.constant 0.254829586 : f32
    %294 = vector.broadcast %cst_111 : f32 to vector<16x128xf32>
    %295 = arith.addf %293, %294 : vector<16x128xf32>
    %296 = arith.mulf %295, %282 : vector<16x128xf32>
    %cst_112 = arith.constant 0.000000e+00 : f32
    %297 = vector.broadcast %cst_112 : f32 to vector<16x128xf32>
    %298 = arith.subf %297, %273 : vector<16x128xf32>
    %299 = arith.mulf %298, %273 : vector<16x128xf32>
    %300 = math.exp %299 : vector<16x128xf32>
    %301 = arith.mulf %296, %300 : vector<16x128xf32>
    %cst_113 = arith.constant 1.000000e+00 : f32
    %302 = vector.broadcast %cst_113 : f32 to vector<16x128xf32>
    %303 = arith.subf %302, %301 : vector<16x128xf32>
    %304 = arith.mulf %272, %303 : vector<16x128xf32>
    %cst_114 = arith.constant 1.000000e+00 : f32
    %305 = vector.broadcast %cst_114 : f32 to vector<16x128xf32>
    %306 = arith.addf %305, %304 : vector<16x128xf32>
    %307 = arith.mulf %265, %306 : vector<16x128xf32>
    %308 = arith.truncf %307 : vector<16x128xf32> to vector<16x128xbf16>
    %cst_115 = arith.constant dense<0.000000e+00> : vector<16x32xf32>
    %309 = tpu.matmul %308, %71, %cst_115 {dimension_numbers = #tpu.dot_dimension_numbers<[1], [0], [0], [1], [0, 0, 1, 1], [], []>} : vector<16x128xbf16>, vector<128x32xbf16>, vector<16x32xf32> -> vector<16x32xf32>
    %310 = arith.addf %309, %45 : vector<16x32xf32>
    %311 = arith.addf %310, %260 : vector<16x32xf32>
    %cst_116 = arith.constant dense<0.000000e+00> : vector<16xf32>
    %312 = vector.multi_reduction <add>, %311, %cst_116 [1] : vector<16x32xf32> to vector<16xf32>
    %313 = vector.shape_cast %312 : vector<16xf32> to vector<16x1xf32>
    %cst_117 = arith.constant 3.200000e+01 : f32
    %314 = vector.broadcast %cst_117 : f32 to vector<16x1xf32>
    %315 = arith.divf %313, %314 : vector<16x1xf32>
    %316 = vector.broadcast %315 : vector<16x1xf32> to vector<16x32xf32>
    %317 = arith.subf %311, %316 : vector<16x32xf32>
    %318 = arith.mulf %317, %317 : vector<16x32xf32>
    %cst_118 = arith.constant dense<0.000000e+00> : vector<16xf32>
    %319 = vector.multi_reduction <add>, %318, %cst_118 [1] : vector<16x32xf32> to vector<16xf32>
    %320 = vector.shape_cast %319 : vector<16xf32> to vector<16x1xf32>
    %cst_119 = arith.constant 3.200000e+01 : f32
    %321 = vector.broadcast %cst_119 : f32 to vector<16x1xf32>
    %322 = arith.divf %320, %321 : vector<16x1xf32>
    %323 = vector.broadcast %315 : vector<16x1xf32> to vector<16x32xf32>
    %324 = arith.subf %311, %323 : vector<16x32xf32>
    %cst_120 = arith.constant 9.99999996E-13 : f32
    %325 = vector.broadcast %cst_120 : f32 to vector<16x1xf32>
    %326 = arith.addf %322, %325 : vector<16x1xf32>
    %327 = math.rsqrt %326 : vector<16x1xf32>
    %328 = vector.broadcast %327 : vector<16x1xf32> to vector<16x32xf32>
    %329 = arith.mulf %324, %328 : vector<16x32xf32>
    %330 = arith.mulf %329, %60 : vector<16x32xf32>
    %331 = arith.addf %330, %63 : vector<16x32xf32>
    %c0_121 = arith.constant 0 : index
    %c0_122 = arith.constant 0 : index
    %332 = vector.load %arg25[%c0_121, %c0_122] : memref<16x32xf32, #tpu.memory_space<vmem>>, vector<16x32xf32>
    tpu.vector_store %arg25[%c0_121, %c0_122], %331 {strides = array<i32>} : memref<16x32xf32, #tpu.memory_space<vmem>>, vector<16x32xf32>,
    %c1_i32_123 = arith.constant 1 : i32
    %c0_124 = arith.constant 0 : index
    %c0_125 = arith.constant 0 : index
    %333 = vector.load %arg25[%c0_124, %c0_125] : memref<16x32xf32, #tpu.memory_space<vmem>>, vector<16x32xf32>
    %334 = arith.truncf %333 : vector<16x32xf32> to vector<16x32xbf16>
    %cst_126 = arith.constant dense<0.000000e+00> : vector<16x32xf32>
    %335 = tpu.matmul %65, %333, %cst_126 {dimension_numbers = #tpu.dot_dimension_numbers<[1], [0], [0], [1], [0, 0, 1, 1], [], []>} : vector<16x16xf32>, vector<16x32xf32>, vector<16x32xf32> -> vector<16x32xf32>
    %cst_127 = arith.constant dense<0.000000e+00> : vector<16x32xf32>
    %336 = tpu.matmul %64, %335, %cst_127 {dimension_numbers = #tpu.dot_dimension_numbers<[1], [0], [0], [1], [0, 0, 1, 1], [], []>} : vector<16x16xf32>, vector<16x32xf32>, vector<16x32xf32> -> vector<16x32xf32>
    %337 = arith.subf %333, %336 : vector<16x32xf32>
    %338 = arith.mulf %27, %337 : vector<16x32xf32>
    %339 = arith.addf %336, %338 : vector<16x32xf32>
    %340 = arith.addf %339, %333 : vector<16x32xf32>
    %cst_128 = arith.constant dense<0.000000e+00> : vector<16xf32>
    %341 = vector.multi_reduction <add>, %340, %cst_128 [1] : vector<16x32xf32> to vector<16xf32>
    %342 = vector.shape_cast %341 : vector<16xf32> to vector<16x1xf32>
    %cst_129 = arith.constant 3.200000e+01 : f32
    %343 = vector.broadcast %cst_129 : f32 to vector<16x1xf32>
    %344 = arith.divf %342, %343 : vector<16x1xf32>
    %345 = vector.broadcast %344 : vector<16x1xf32> to vector<16x32xf32>
    %346 = arith.subf %340, %345 : vector<16x32xf32>
    %347 = arith.mulf %346, %346 : vector<16x32xf32>
    %cst_130 = arith.constant dense<0.000000e+00> : vector<16xf32>
    %348 = vector.multi_reduction <add>, %347, %cst_130 [1] : vector<16x32xf32> to vector<16xf32>
    %349 = vector.shape_cast %348 : vector<16xf32> to vector<16x1xf32>
    %cst_131 = arith.constant 3.200000e+01 : f32
    %350 = vector.broadcast %cst_131 : f32 to vector<16x1xf32>
    %351 = arith.divf %349, %350 : vector<16x1xf32>
    %352 = vector.broadcast %344 : vector<16x1xf32> to vector<16x32xf32>
    %353 = arith.subf %340, %352 : vector<16x32xf32>
    %cst_132 = arith.constant 9.99999996E-13 : f32
    %354 = vector.broadcast %cst_132 : f32 to vector<16x1xf32>
    %355 = arith.addf %351, %354 : vector<16x1xf32>
    %356 = math.rsqrt %355 : vector<16x1xf32>
    %357 = vector.broadcast %356 : vector<16x1xf32> to vector<16x32xf32>
    %358 = arith.mulf %353, %357 : vector<16x32xf32>
    %359 = arith.mulf %358, %48 : vector<16x32xf32>
    %360 = arith.addf %359, %51 : vector<16x32xf32>
    %cst_133 = arith.constant dense<0.000000e+00> : vector<16x32xf32>
    %361 = tpu.matmul %334, %66, %cst_133 {dimension_numbers = #tpu.dot_dimension_numbers<[1], [0], [0], [1], [0, 0, 1, 1], [], []>} : vector<16x32xbf16>, vector<32x32xbf16>, vector<16x32xf32> -> vector<16x32xf32>
    %362 = arith.addf %361, %30 : vector<16x32xf32>
    %cst_134 = arith.constant dense<0.000000e+00> : vector<16x32xf32>
    %363 = tpu.matmul %334, %67, %cst_134 {dimension_numbers = #tpu.dot_dimension_numbers<[1], [0], [0], [1], [0, 0, 1, 1], [], []>} : vector<16x32xbf16>, vector<32x32xbf16>, vector<16x32xf32> -> vector<16x32xf32>
    %364 = arith.addf %363, %33 : vector<16x32xf32>
    %cst_135 = arith.constant dense<0.000000e+00> : vector<16x32xf32>
    %365 = tpu.matmul %334, %68, %cst_135 {dimension_numbers = #tpu.dot_dimension_numbers<[1], [0], [0], [1], [0, 0, 1, 1], [], []>} : vector<16x32xbf16>, vector<32x32xbf16>, vector<16x32xf32> -> vector<16x32xf32>
    %366 = arith.addf %365, %36 : vector<16x32xf32>
    %367 = vector.extract_strided_slice %362 {offsets = [0, 0], sizes = [8, 32], strides = [1, 1]} : vector<16x32xf32> to vector<8x32xf32>
    %368 = vector.extract_strided_slice %364 {offsets = [0, 0], sizes = [8, 32], strides = [1, 1]} : vector<16x32xf32> to vector<8x32xf32>
    %369 = vector.extract_strided_slice %366 {offsets = [0, 0], sizes = [8, 32], strides = [1, 1]} : vector<16x32xf32> to vector<8x32xf32>
    %370 = vector.extract_strided_slice %367 {offsets = [0, 0], sizes = [8, 16], strides = [1, 1]} : vector<8x32xf32> to vector<8x16xf32>
    %371 = arith.truncf %370 : vector<8x16xf32> to vector<8x16xbf16>
    %372 = vector.extract_strided_slice %368 {offsets = [0, 0], sizes = [8, 16], strides = [1, 1]} : vector<8x32xf32> to vector<8x16xf32>
    %373 = arith.truncf %372 : vector<8x16xf32> to vector<8x16xbf16>
    %374 = vector.extract_strided_slice %369 {offsets = [0, 0], sizes = [8, 16], strides = [1, 1]} : vector<8x32xf32> to vector<8x16xf32>
    %375 = arith.truncf %374 : vector<8x16xf32> to vector<8x16xbf16>
    %cst_136 = arith.constant dense<0.000000e+00> : vector<8x8xf32>
    %376 = tpu.matmul %371, %373, %cst_136 {dimension_numbers = #tpu.dot_dimension_numbers<[1], [1], [0], [0], [0, 0, 1, 0], [], []>} : vector<8x16xbf16>, vector<8x16xbf16>, vector<8x8xf32> -> vector<8x8xf32>
    %cst_137 = arith.constant 2.500000e-01 : f32
    %377 = vector.broadcast %cst_137 : f32 to vector<8x8xf32>
    %378 = arith.mulf %376, %377 : vector<8x8xf32>
    %379 = arith.addf %378, %12 : vector<8x8xf32>
    %cst_138 = arith.constant dense<0xFF800000> : vector<8xf32>
    %380 = vector.multi_reduction <maximumf>, %379, %cst_138 [1] : vector<8x8xf32> to vector<8xf32>
    %381 = vector.shape_cast %380 : vector<8xf32> to vector<8x1xf32>
    %382 = vector.broadcast %381 : vector<8x1xf32> to vector<8x8xf32>
    %383 = arith.subf %379, %382 : vector<8x8xf32>
    %384 = math.exp %383 : vector<8x8xf32>
    %cst_139 = arith.constant dense<0.000000e+00> : vector<8xf32>
    %385 = vector.multi_reduction <add>, %384, %cst_139 [1] : vector<8x8xf32> to vector<8xf32>
    %386 = vector.shape_cast %385 : vector<8xf32> to vector<8x1xf32>
    %387 = tpu.reciprocal %386 {approx = true} : vector<8x1xf32> -> vector<8x1xf32>
    %388 = arith.mulf %386, %387 : vector<8x1xf32>
    %cst_140 = arith.constant 2.000000e+00 : f32
    %389 = vector.broadcast %cst_140 : f32 to vector<8x1xf32>
    %390 = arith.subf %389, %388 : vector<8x1xf32>
    %391 = arith.mulf %387, %390 : vector<8x1xf32>
    %392 = vector.broadcast %391 : vector<8x1xf32> to vector<8x8xf32>
    %393 = arith.mulf %384, %392 : vector<8x8xf32>
    %394 = arith.truncf %393 : vector<8x8xf32> to vector<8x8xbf16>
    %cst_141 = arith.constant dense<0.000000e+00> : vector<8x16xf32>
    %395 = tpu.matmul %394, %375, %cst_141 {dimension_numbers = #tpu.dot_dimension_numbers<[1], [0], [0], [1], [0, 0, 1, 1], [], []>} : vector<8x8xbf16>, vector<8x16xbf16>, vector<8x16xf32> -> vector<8x16xf32>
    %396 = arith.truncf %395 : vector<8x16xf32> to vector<8x16xbf16>
    %397 = vector.extract_strided_slice %69 {offsets = [0, 0], sizes = [16, 32], strides = [1, 1]} : vector<32x32xbf16> to vector<16x32xbf16>
    %cst_142 = arith.constant dense<0.000000e+00> : vector<8x32xf32>
    %398 = tpu.matmul %396, %397, %cst_142 {dimension_numbers = #tpu.dot_dimension_numbers<[1], [0], [0], [1], [0, 0, 1, 1], [], []>} : vector<8x16xbf16>, vector<16x32xbf16>, vector<8x32xf32> -> vector<8x32xf32>
    %399 = vector.extract_strided_slice %367 {offsets = [0, 16], sizes = [8, 16], strides = [1, 1]} : vector<8x32xf32> to vector<8x16xf32>
    %400 = arith.truncf %399 : vector<8x16xf32> to vector<8x16xbf16>
    %401 = vector.extract_strided_slice %368 {offsets = [0, 16], sizes = [8, 16], strides = [1, 1]} : vector<8x32xf32> to vector<8x16xf32>
    %402 = arith.truncf %401 : vector<8x16xf32> to vector<8x16xbf16>
    %403 = vector.extract_strided_slice %369 {offsets = [0, 16], sizes = [8, 16], strides = [1, 1]} : vector<8x32xf32> to vector<8x16xf32>
    %404 = arith.truncf %403 : vector<8x16xf32> to vector<8x16xbf16>
    %cst_143 = arith.constant dense<0.000000e+00> : vector<8x8xf32>
    %405 = tpu.matmul %400, %402, %cst_143 {dimension_numbers = #tpu.dot_dimension_numbers<[1], [1], [0], [0], [0, 0, 1, 0], [], []>} : vector<8x16xbf16>, vector<8x16xbf16>, vector<8x8xf32> -> vector<8x8xf32>
    %cst_144 = arith.constant 2.500000e-01 : f32
    %406 = vector.broadcast %cst_144 : f32 to vector<8x8xf32>
    %407 = arith.mulf %405, %406 : vector<8x8xf32>
    %408 = arith.addf %407, %12 : vector<8x8xf32>
    %cst_145 = arith.constant dense<0xFF800000> : vector<8xf32>
    %409 = vector.multi_reduction <maximumf>, %408, %cst_145 [1] : vector<8x8xf32> to vector<8xf32>
    %410 = vector.shape_cast %409 : vector<8xf32> to vector<8x1xf32>
    %411 = vector.broadcast %410 : vector<8x1xf32> to vector<8x8xf32>
    %412 = arith.subf %408, %411 : vector<8x8xf32>
    %413 = math.exp %412 : vector<8x8xf32>
    %cst_146 = arith.constant dense<0.000000e+00> : vector<8xf32>
    %414 = vector.multi_reduction <add>, %413, %cst_146 [1] : vector<8x8xf32> to vector<8xf32>
    %415 = vector.shape_cast %414 : vector<8xf32> to vector<8x1xf32>
    %416 = tpu.reciprocal %415 {approx = true} : vector<8x1xf32> -> vector<8x1xf32>
    %417 = arith.mulf %415, %416 : vector<8x1xf32>
    %cst_147 = arith.constant 2.000000e+00 : f32
    %418 = vector.broadcast %cst_147 : f32 to vector<8x1xf32>
    %419 = arith.subf %418, %417 : vector<8x1xf32>
    %420 = arith.mulf %416, %419 : vector<8x1xf32>
    %421 = vector.broadcast %420 : vector<8x1xf32> to vector<8x8xf32>
    %422 = arith.mulf %413, %421 : vector<8x8xf32>
    %423 = arith.truncf %422 : vector<8x8xf32> to vector<8x8xbf16>
    %cst_148 = arith.constant dense<0.000000e+00> : vector<8x16xf32>
    %424 = tpu.matmul %423, %404, %cst_148 {dimension_numbers = #tpu.dot_dimension_numbers<[1], [0], [0], [1], [0, 0, 1, 1], [], []>} : vector<8x8xbf16>, vector<8x16xbf16>, vector<8x16xf32> -> vector<8x16xf32>
    %425 = arith.truncf %424 : vector<8x16xf32> to vector<8x16xbf16>
    %426 = vector.extract_strided_slice %69 {offsets = [16, 0], sizes = [16, 32], strides = [1, 1]} : vector<32x32xbf16> to vector<16x32xbf16>
    %cst_149 = arith.constant dense<0.000000e+00> : vector<8x32xf32>
    %427 = tpu.matmul %425, %426, %cst_149 {dimension_numbers = #tpu.dot_dimension_numbers<[1], [0], [0], [1], [0, 0, 1, 1], [], []>} : vector<8x16xbf16>, vector<16x32xbf16>, vector<8x32xf32> -> vector<8x32xf32>
    %428 = arith.addf %398, %427 : vector<8x32xf32>
    %429 = vector.extract_strided_slice %362 {offsets = [8, 0], sizes = [8, 32], strides = [1, 1]} : vector<16x32xf32> to vector<8x32xf32>
    %430 = vector.extract_strided_slice %364 {offsets = [8, 0], sizes = [8, 32], strides = [1, 1]} : vector<16x32xf32> to vector<8x32xf32>
    %431 = vector.extract_strided_slice %366 {offsets = [8, 0], sizes = [8, 32], strides = [1, 1]} : vector<16x32xf32> to vector<8x32xf32>
    %432 = vector.extract_strided_slice %429 {offsets = [0, 0], sizes = [8, 16], strides = [1, 1]} : vector<8x32xf32> to vector<8x16xf32>
    %433 = arith.truncf %432 : vector<8x16xf32> to vector<8x16xbf16>
    %434 = vector.extract_strided_slice %430 {offsets = [0, 0], sizes = [8, 16], strides = [1, 1]} : vector<8x32xf32> to vector<8x16xf32>
    %435 = arith.truncf %434 : vector<8x16xf32> to vector<8x16xbf16>
    %436 = vector.extract_strided_slice %431 {offsets = [0, 0], sizes = [8, 16], strides = [1, 1]} : vector<8x32xf32> to vector<8x16xf32>
    %437 = arith.truncf %436 : vector<8x16xf32> to vector<8x16xbf16>
    %cst_150 = arith.constant dense<0.000000e+00> : vector<8x8xf32>
    %438 = tpu.matmul %433, %435, %cst_150 {dimension_numbers = #tpu.dot_dimension_numbers<[1], [1], [0], [0], [0, 0, 1, 0], [], []>} : vector<8x16xbf16>, vector<8x16xbf16>, vector<8x8xf32> -> vector<8x8xf32>
    %cst_151 = arith.constant 2.500000e-01 : f32
    %439 = vector.broadcast %cst_151 : f32 to vector<8x8xf32>
    %440 = arith.mulf %438, %439 : vector<8x8xf32>
    %441 = arith.addf %440, %23 : vector<8x8xf32>
    %cst_152 = arith.constant dense<0xFF800000> : vector<8xf32>
    %442 = vector.multi_reduction <maximumf>, %441, %cst_152 [1] : vector<8x8xf32> to vector<8xf32>
    %443 = vector.shape_cast %442 : vector<8xf32> to vector<8x1xf32>
    %444 = vector.broadcast %443 : vector<8x1xf32> to vector<8x8xf32>
    %445 = arith.subf %441, %444 : vector<8x8xf32>
    %446 = math.exp %445 : vector<8x8xf32>
    %cst_153 = arith.constant dense<0.000000e+00> : vector<8xf32>
    %447 = vector.multi_reduction <add>, %446, %cst_153 [1] : vector<8x8xf32> to vector<8xf32>
    %448 = vector.shape_cast %447 : vector<8xf32> to vector<8x1xf32>
    %449 = tpu.reciprocal %448 {approx = true} : vector<8x1xf32> -> vector<8x1xf32>
    %450 = arith.mulf %448, %449 : vector<8x1xf32>
    %cst_154 = arith.constant 2.000000e+00 : f32
    %451 = vector.broadcast %cst_154 : f32 to vector<8x1xf32>
    %452 = arith.subf %451, %450 : vector<8x1xf32>
    %453 = arith.mulf %449, %452 : vector<8x1xf32>
    %454 = vector.broadcast %453 : vector<8x1xf32> to vector<8x8xf32>
    %455 = arith.mulf %446, %454 : vector<8x8xf32>
    %456 = arith.truncf %455 : vector<8x8xf32> to vector<8x8xbf16>
    %cst_155 = arith.constant dense<0.000000e+00> : vector<8x16xf32>
    %457 = tpu.matmul %456, %437, %cst_155 {dimension_numbers = #tpu.dot_dimension_numbers<[1], [0], [0], [1], [0, 0, 1, 1], [], []>} : vector<8x8xbf16>, vector<8x16xbf16>, vector<8x16xf32> -> vector<8x16xf32>
    %458 = arith.truncf %457 : vector<8x16xf32> to vector<8x16xbf16>
    %459 = vector.extract_strided_slice %69 {offsets = [0, 0], sizes = [16, 32], strides = [1, 1]} : vector<32x32xbf16> to vector<16x32xbf16>
    %cst_156 = arith.constant dense<0.000000e+00> : vector<8x32xf32>
    %460 = tpu.matmul %458, %459, %cst_156 {dimension_numbers = #tpu.dot_dimension_numbers<[1], [0], [0], [1], [0, 0, 1, 1], [], []>} : vector<8x16xbf16>, vector<16x32xbf16>, vector<8x32xf32> -> vector<8x32xf32>
    %461 = vector.extract_strided_slice %429 {offsets = [0, 16], sizes = [8, 16], strides = [1, 1]} : vector<8x32xf32> to vector<8x16xf32>
    %462 = arith.truncf %461 : vector<8x16xf32> to vector<8x16xbf16>
    %463 = vector.extract_strided_slice %430 {offsets = [0, 16], sizes = [8, 16], strides = [1, 1]} : vector<8x32xf32> to vector<8x16xf32>
    %464 = arith.truncf %463 : vector<8x16xf32> to vector<8x16xbf16>
    %465 = vector.extract_strided_slice %431 {offsets = [0, 16], sizes = [8, 16], strides = [1, 1]} : vector<8x32xf32> to vector<8x16xf32>
    %466 = arith.truncf %465 : vector<8x16xf32> to vector<8x16xbf16>
    %cst_157 = arith.constant dense<0.000000e+00> : vector<8x8xf32>
    %467 = tpu.matmul %462, %464, %cst_157 {dimension_numbers = #tpu.dot_dimension_numbers<[1], [1], [0], [0], [0, 0, 1, 0], [], []>} : vector<8x16xbf16>, vector<8x16xbf16>, vector<8x8xf32> -> vector<8x8xf32>
    %cst_158 = arith.constant 2.500000e-01 : f32
    %468 = vector.broadcast %cst_158 : f32 to vector<8x8xf32>
    %469 = arith.mulf %467, %468 : vector<8x8xf32>
    %470 = arith.addf %469, %23 : vector<8x8xf32>
    %cst_159 = arith.constant dense<0xFF800000> : vector<8xf32>
    %471 = vector.multi_reduction <maximumf>, %470, %cst_159 [1] : vector<8x8xf32> to vector<8xf32>
    %472 = vector.shape_cast %471 : vector<8xf32> to vector<8x1xf32>
    %473 = vector.broadcast %472 : vector<8x1xf32> to vector<8x8xf32>
    %474 = arith.subf %470, %473 : vector<8x8xf32>
    %475 = math.exp %474 : vector<8x8xf32>
    %cst_160 = arith.constant dense<0.000000e+00> : vector<8xf32>
    %476 = vector.multi_reduction <add>, %475, %cst_160 [1] : vector<8x8xf32> to vector<8xf32>
    %477 = vector.shape_cast %476 : vector<8xf32> to vector<8x1xf32>
    %478 = tpu.reciprocal %477 {approx = true} : vector<8x1xf32> -> vector<8x1xf32>
    %479 = arith.mulf %477, %478 : vector<8x1xf32>
    %cst_161 = arith.constant 2.000000e+00 : f32
    %480 = vector.broadcast %cst_161 : f32 to vector<8x1xf32>
    %481 = arith.subf %480, %479 : vector<8x1xf32>
    %482 = arith.mulf %478, %481 : vector<8x1xf32>
    %483 = vector.broadcast %482 : vector<8x1xf32> to vector<8x8xf32>
    %484 = arith.mulf %475, %483 : vector<8x8xf32>
    %485 = arith.truncf %484 : vector<8x8xf32> to vector<8x8xbf16>
    %cst_162 = arith.constant dense<0.000000e+00> : vector<8x16xf32>
    %486 = tpu.matmul %485, %466, %cst_162 {dimension_numbers = #tpu.dot_dimension_numbers<[1], [0], [0], [1], [0, 0, 1, 1], [], []>} : vector<8x8xbf16>, vector<8x16xbf16>, vector<8x16xf32> -> vector<8x16xf32>
    %487 = arith.truncf %486 : vector<8x16xf32> to vector<8x16xbf16>
    %488 = vector.extract_strided_slice %69 {offsets = [16, 0], sizes = [16, 32], strides = [1, 1]} : vector<32x32xbf16> to vector<16x32xbf16>
    %cst_163 = arith.constant dense<0.000000e+00> : vector<8x32xf32>
    %489 = tpu.matmul %487, %488, %cst_163 {dimension_numbers = #tpu.dot_dimension_numbers<[1], [0], [0], [1], [0, 0, 1, 1], [], []>} : vector<8x16xbf16>, vector<16x32xbf16>, vector<8x32xf32> -> vector<8x32xf32>
    %490 = arith.addf %460, %489 : vector<8x32xf32>
    %491 = tpu.concatenate %428, %490 in 0 : vector<8x32xf32>, vector<8x32xf32> -> vector<16x32xf32>
    %492 = arith.addf %491, %39 : vector<16x32xf32>
    %493 = arith.addf %492, %333 : vector<16x32xf32>
    %cst_164 = arith.constant dense<0.000000e+00> : vector<16xf32>
    %494 = vector.multi_reduction <add>, %493, %cst_164 [1] : vector<16x32xf32> to vector<16xf32>
    %495 = vector.shape_cast %494 : vector<16xf32> to vector<16x1xf32>
    %cst_165 = arith.constant 3.200000e+01 : f32
    %496 = vector.broadcast %cst_165 : f32 to vector<16x1xf32>
    %497 = arith.divf %495, %496 : vector<16x1xf32>
    %498 = vector.broadcast %497 : vector<16x1xf32> to vector<16x32xf32>
    %499 = arith.subf %493, %498 : vector<16x32xf32>
    %500 = arith.mulf %499, %499 : vector<16x32xf32>
    %cst_166 = arith.constant dense<0.000000e+00> : vector<16xf32>
    %501 = vector.multi_reduction <add>, %500, %cst_166 [1] : vector<16x32xf32> to vector<16xf32>
    %502 = vector.shape_cast %501 : vector<16xf32> to vector<16x1xf32>
    %cst_167 = arith.constant 3.200000e+01 : f32
    %503 = vector.broadcast %cst_167 : f32 to vector<16x1xf32>
    %504 = arith.divf %502, %503 : vector<16x1xf32>
    %505 = vector.broadcast %497 : vector<16x1xf32> to vector<16x32xf32>
    %506 = arith.subf %493, %505 : vector<16x32xf32>
    %cst_168 = arith.constant 9.99999996E-13 : f32
    %507 = vector.broadcast %cst_168 : f32 to vector<16x1xf32>
    %508 = arith.addf %504, %507 : vector<16x1xf32>
    %509 = math.rsqrt %508 : vector<16x1xf32>
    %510 = vector.broadcast %509 : vector<16x1xf32> to vector<16x32xf32>
    %511 = arith.mulf %506, %510 : vector<16x32xf32>
    %512 = arith.mulf %511, %54 : vector<16x32xf32>
    %513 = arith.addf %512, %57 : vector<16x32xf32>
    %cst_169 = arith.constant 0.699999988 : f32
    %514 = vector.broadcast %cst_169 : f32 to vector<16x32xf32>
    %515 = arith.mulf %514, %360 : vector<16x32xf32>
    %cst_170 = arith.constant 3.000000e-01 : f32
    %516 = vector.broadcast %cst_170 : f32 to vector<16x32xf32>
    %517 = arith.mulf %516, %513 : vector<16x32xf32>
    %518 = arith.addf %515, %517 : vector<16x32xf32>
    %519 = arith.truncf %518 : vector<16x32xf32> to vector<16x32xbf16>
    %cst_171 = arith.constant dense<0.000000e+00> : vector<16x128xf32>
    %520 = tpu.matmul %519, %70, %cst_171 {dimension_numbers = #tpu.dot_dimension_numbers<[1], [0], [0], [1], [0, 0, 1, 1], [], []>} : vector<16x32xbf16>, vector<32x128xbf16>, vector<16x128xf32> -> vector<16x128xf32>
    %521 = arith.addf %520, %42 : vector<16x128xf32>
    %cst_172 = arith.constant 5.000000e-01 : f32
    %522 = vector.broadcast %cst_172 : f32 to vector<16x128xf32>
    %523 = arith.mulf %521, %522 : vector<16x128xf32>
    %cst_173 = arith.constant 0.707106769 : f32
    %524 = vector.broadcast %cst_173 : f32 to vector<16x128xf32>
    %525 = arith.mulf %521, %524 : vector<16x128xf32>
    %cst_174 = arith.constant 0.000000e+00 : f32
    %526 = vector.broadcast %cst_174 : f32 to vector<16x128xf32>
    %527 = arith.cmpf oge, %525, %526 : vector<16x128xf32>
    %cst_175 = arith.constant 1.000000e+00 : f32
    %cst_176 = arith.constant -1.000000e+00 : f32
    %528 = vector.broadcast %cst_175 : f32 to vector<16x128xf32>
    %529 = vector.broadcast %cst_176 : f32 to vector<16x128xf32>
    %530 = arith.select %527, %528, %529 : vector<16x128xi1>, vector<16x128xf32>
    %531 = math.absf %525 : vector<16x128xf32>
    %cst_177 = arith.constant 0.327591091 : f32
    %532 = vector.broadcast %cst_177 : f32 to vector<16x128xf32>
    %533 = arith.mulf %532, %531 : vector<16x128xf32>
    %cst_178 = arith.constant 1.000000e+00 : f32
    %534 = vector.broadcast %cst_178 : f32 to vector<16x128xf32>
    %535 = arith.addf %534, %533 : vector<16x128xf32>
    %536 = tpu.reciprocal %535 {approx = true} : vector<16x128xf32> -> vector<16x128xf32>
    %537 = arith.mulf %535, %536 : vector<16x128xf32>
    %cst_179 = arith.constant 2.000000e+00 : f32
    %538 = vector.broadcast %cst_179 : f32 to vector<16x128xf32>
    %539 = arith.subf %538, %537 : vector<16x128xf32>
    %540 = arith.mulf %536, %539 : vector<16x128xf32>
    %cst_180 = arith.constant 1.06140542 : f32
    %541 = vector.broadcast %cst_180 : f32 to vector<16x128xf32>
    %542 = arith.mulf %541, %540 : vector<16x128xf32>
    %cst_181 = arith.constant -1.45315206 : f32
    %543 = vector.broadcast %cst_181 : f32 to vector<16x128xf32>
    %544 = arith.addf %542, %543 : vector<16x128xf32>
    %545 = arith.mulf %544, %540 : vector<16x128xf32>
    %cst_182 = arith.constant 1.42141378 : f32
    %546 = vector.broadcast %cst_182 : f32 to vector<16x128xf32>
    %547 = arith.addf %545, %546 : vector<16x128xf32>
    %548 = arith.mulf %547, %540 : vector<16x128xf32>
    %cst_183 = arith.constant -0.284496725 : f32
    %549 = vector.broadcast %cst_183 : f32 to vector<16x128xf32>
    %550 = arith.addf %548, %549 : vector<16x128xf32>
    %551 = arith.mulf %550, %540 : vector<16x128xf32>
    %cst_184 = arith.constant 0.254829586 : f32
    %552 = vector.broadcast %cst_184 : f32 to vector<16x128xf32>
    %553 = arith.addf %551, %552 : vector<16x128xf32>
    %554 = arith.mulf %553, %540 : vector<16x128xf32>
    %cst_185 = arith.constant 0.000000e+00 : f32
    %555 = vector.broadcast %cst_185 : f32 to vector<16x128xf32>
    %556 = arith.subf %555, %531 : vector<16x128xf32>
    %557 = arith.mulf %556, %531 : vector<16x128xf32>
    %558 = math.exp %557 : vector<16x128xf32>
    %559 = arith.mulf %554, %558 : vector<16x128xf32>
    %cst_186 = arith.constant 1.000000e+00 : f32
    %560 = vector.broadcast %cst_186 : f32 to vector<16x128xf32>
    %561 = arith.subf %560, %559 : vector<16x128xf32>
    %562 = arith.mulf %530, %561 : vector<16x128xf32>
    %cst_187 = arith.constant 1.000000e+00 : f32
    %563 = vector.broadcast %cst_187 : f32 to vector<16x128xf32>
    %564 = arith.addf %563, %562 : vector<16x128xf32>
    %565 = arith.mulf %523, %564 : vector<16x128xf32>
    %566 = arith.truncf %565 : vector<16x128xf32> to vector<16x128xbf16>
    %cst_188 = arith.constant dense<0.000000e+00> : vector<16x32xf32>
    %567 = tpu.matmul %566, %71, %cst_188 {dimension_numbers = #tpu.dot_dimension_numbers<[1], [0], [0], [1], [0, 0, 1, 1], [], []>} : vector<16x128xbf16>, vector<128x32xbf16>, vector<16x32xf32> -> vector<16x32xf32>
    %568 = arith.addf %567, %45 : vector<16x32xf32>
    %569 = arith.addf %568, %518 : vector<16x32xf32>
    %cst_189 = arith.constant dense<0.000000e+00> : vector<16xf32>
    %570 = vector.multi_reduction <add>, %569, %cst_189 [1] : vector<16x32xf32> to vector<16xf32>
    %571 = vector.shape_cast %570 : vector<16xf32> to vector<16x1xf32>
    %cst_190 = arith.constant 3.200000e+01 : f32
    %572 = vector.broadcast %cst_190 : f32 to vector<16x1xf32>
    %573 = arith.divf %571, %572 : vector<16x1xf32>
    %574 = vector.broadcast %573 : vector<16x1xf32> to vector<16x32xf32>
    %575 = arith.subf %569, %574 : vector<16x32xf32>
    %576 = arith.mulf %575, %575 : vector<16x32xf32>
    %cst_191 = arith.constant dense<0.000000e+00> : vector<16xf32>
    %577 = vector.multi_reduction <add>, %576, %cst_191 [1] : vector<16x32xf32> to vector<16xf32>
    %578 = vector.shape_cast %577 : vector<16xf32> to vector<16x1xf32>
    %cst_192 = arith.constant 3.200000e+01 : f32
    %579 = vector.broadcast %cst_192 : f32 to vector<16x1xf32>
    %580 = arith.divf %578, %579 : vector<16x1xf32>
    %581 = vector.broadcast %573 : vector<16x1xf32> to vector<16x32xf32>
    %582 = arith.subf %569, %581 : vector<16x32xf32>
    %cst_193 = arith.constant 9.99999996E-13 : f32
    %583 = vector.broadcast %cst_193 : f32 to vector<16x1xf32>
    %584 = arith.addf %580, %583 : vector<16x1xf32>
    %585 = math.rsqrt %584 : vector<16x1xf32>
    %586 = vector.broadcast %585 : vector<16x1xf32> to vector<16x32xf32>
    %587 = arith.mulf %582, %586 : vector<16x32xf32>
    %588 = arith.mulf %587, %60 : vector<16x32xf32>
    %589 = arith.addf %588, %63 : vector<16x32xf32>
    %c0_194 = arith.constant 0 : index
    %c0_195 = arith.constant 0 : index
    %590 = vector.load %arg25[%c0_194, %c0_195] : memref<16x32xf32, #tpu.memory_space<vmem>>, vector<16x32xf32>
    tpu.vector_store %arg25[%c0_194, %c0_195], %589 {strides = array<i32>} : memref<16x32xf32, #tpu.memory_space<vmem>>, vector<16x32xf32>,
    %c0_196 = arith.constant 0 : index
    %c0_197 = arith.constant 0 : index
    %591 = vector.load %arg25[%c0_196, %c0_197] : memref<16x32xf32, #tpu.memory_space<vmem>>, vector<16x32xf32>
    %592 = vector.shape_cast %591 : vector<16x32xf32> to vector<2x8x32xf32>
    %c0_198 = arith.constant 0 : index
    %c0_199 = arith.constant 0 : index
    %c0_200 = arith.constant 0 : index
    %593 = vector.load %arg24[%c0_198, %c0_199, %c0_200] : memref<2x8x32xf32, #tpu.memory_space<vmem>>, vector<2x8x32xf32>
    tpu.vector_store %arg24[%c0_198, %c0_199, %c0_200], %592 {strides = array<i32>} : memref<2x8x32xf32, #tpu.memory_space<vmem>>, vector<2x8x32xf32>,
    return
  }
  func.func @transform_0(%arg0: i32, %arg1: memref<2xi32, #tpu.memory_space<smem>>) -> (i32, i32, i32) {
    %c0_i32 = arith.constant 0 : i32
    %c0_i32_0 = arith.constant 0 : i32
    %c0_i32_1 = arith.constant 0 : i32
    return %arg0, %c0_i32, %c0_i32_0 : i32, i32, i32
  }
  func.func @transform_1(%arg0: i32, %arg1: memref<2xi32, #tpu.memory_space<smem>>) -> (i32, i32) {
    %c0_i32 = arith.constant 0 : i32
    %c0_i32_0 = arith.constant 0 : i32
    %c0_i32_1 = arith.constant 0 : i32
    return %c0_i32, %c0_i32_0 : i32, i32
  }
  func.func @transform_2(%arg0: i32, %arg1: memref<2xi32, #tpu.memory_space<smem>>) -> (i32, i32) {
    %c0_i32 = arith.constant 0 : i32
    %c0_i32_0 = arith.constant 0 : i32
    %c0_i32_1 = arith.constant 0 : i32
    return %c0_i32, %c0_i32_0 : i32, i32
  }
  func.func @transform_3(%arg0: i32, %arg1: memref<2xi32, #tpu.memory_space<smem>>) -> (i32, i32) {
    %c0_i32 = arith.constant 0 : i32
    %c0_i32_0 = arith.constant 0 : i32
    %c0_i32_1 = arith.constant 0 : i32
    return %c0_i32, %c0_i32_0 : i32, i32
  }
  func.func @transform_4(%arg0: i32, %arg1: memref<2xi32, #tpu.memory_space<smem>>) -> (i32, i32) {
    %c0_i32 = arith.constant 0 : i32
    %c0_i32_0 = arith.constant 0 : i32
    %c0_i32_1 = arith.constant 0 : i32
    return %c0_i32, %c0_i32_0 : i32, i32
  }
  func.func @transform_5(%arg0: i32, %arg1: memref<2xi32, #tpu.memory_space<smem>>) -> (i32, i32) {
    %c0_i32 = arith.constant 0 : i32
    %c0_i32_0 = arith.constant 0 : i32
    %c0_i32_1 = arith.constant 0 : i32
    return %c0_i32, %c0_i32_0 : i32, i32
  }
  func.func @transform_6(%arg0: i32, %arg1: memref<2xi32, #tpu.memory_space<smem>>) -> (i32, i32) {
    %c0_i32 = arith.constant 0 : i32
    %c0_i32_0 = arith.constant 0 : i32
    %c0_i32_1 = arith.constant 0 : i32
    return %c0_i32, %c0_i32_0 : i32, i32
  }
  func.func @transform_7(%arg0: i32, %arg1: memref<2xi32, #tpu.memory_space<smem>>) -> (i32, i32) {
    %c0_i32 = arith.constant 0 : i32
    %c0_i32_0 = arith.constant 0 : i32
    %c0_i32_1 = arith.constant 0 : i32
    return %c0_i32, %c0_i32_0 : i32, i32
  }
  func.func @transform_8(%arg0: i32, %arg1: memref<2xi32, #tpu.memory_space<smem>>) -> (i32, i32) {
    %c0_i32 = arith.constant 0 : i32
    %c0_i32_0 = arith.constant 0 : i32
    %c0_i32_1 = arith.constant 0 : i32
    return %c0_i32, %c0_i32_0 : i32, i32
  }
  func.func @transform_9(%arg0: i32, %arg1: memref<2xi32, #tpu.memory_space<smem>>) -> (i32, i32) {
    %c0_i32 = arith.constant 0 : i32
    %c0_i32_0 = arith.constant 0 : i32
    %c0_i32_1 = arith.constant 0 : i32
    return %c0_i32, %c0_i32_0 : i32, i32
  }
  func.func @transform_10(%arg0: i32, %arg1: memref<2xi32, #tpu.memory_space<smem>>) -> (i32, i32) {
    %c0_i32 = arith.constant 0 : i32
    %c0_i32_0 = arith.constant 0 : i32
    %c0_i32_1 = arith.constant 0 : i32
    return %c0_i32, %c0_i32_0 : i32, i32
  }
  func.func @transform_11(%arg0: i32, %arg1: memref<2xi32, #tpu.memory_space<smem>>) -> (i32, i32) {
    %c0_i32 = arith.constant 0 : i32
    %c0_i32_0 = arith.constant 0 : i32
    %c0_i32_1 = arith.constant 0 : i32
    return %c0_i32, %c0_i32_0 : i32, i32
  }
  func.func @transform_12(%arg0: i32, %arg1: memref<2xi32, #tpu.memory_space<smem>>) -> (i32, i32) {
    %c0_i32 = arith.constant 0 : i32
    %c0_i32_0 = arith.constant 0 : i32
    %c0_i32_1 = arith.constant 0 : i32
    return %c0_i32, %c0_i32_0 : i32, i32
  }
  func.func @transform_13(%arg0: i32, %arg1: memref<2xi32, #tpu.memory_space<smem>>) -> (i32, i32) {
    %c0_i32 = arith.constant 0 : i32
    %c0_i32_0 = arith.constant 0 : i32
    %c0_i32_1 = arith.constant 0 : i32
    return %c0_i32, %c0_i32_0 : i32, i32
  }
  func.func @transform_14(%arg0: i32, %arg1: memref<2xi32, #tpu.memory_space<smem>>) -> (i32, i32) {
    %c0_i32 = arith.constant 0 : i32
    %c0_i32_0 = arith.constant 0 : i32
    %c0_i32_1 = arith.constant 0 : i32
    return %c0_i32, %c0_i32_0 : i32, i32
  }
  func.func @transform_15(%arg0: i32, %arg1: memref<2xi32, #tpu.memory_space<smem>>) -> (i32, i32) {
    %c0_i32 = arith.constant 0 : i32
    %c0_i32_0 = arith.constant 0 : i32
    %c0_i32_1 = arith.constant 0 : i32
    return %c0_i32, %c0_i32_0 : i32, i32
  }
  func.func @transform_16(%arg0: i32, %arg1: memref<2xi32, #tpu.memory_space<smem>>) -> (i32, i32) {
    %c0_i32 = arith.constant 0 : i32
    %c0_i32_0 = arith.constant 0 : i32
    %c0_i32_1 = arith.constant 0 : i32
    return %c0_i32, %c0_i32_0 : i32, i32
  }
  func.func @transform_17(%arg0: i32, %arg1: memref<2xi32, #tpu.memory_space<smem>>) -> (i32, i32) {
    %c0_i32 = arith.constant 0 : i32
    %c0_i32_0 = arith.constant 0 : i32
    %c0_i32_1 = arith.constant 0 : i32
    return %c0_i32, %c0_i32_0 : i32, i32
  }
  func.func @transform_18(%arg0: i32, %arg1: memref<2xi32, #tpu.memory_space<smem>>) -> (i32, i32) {
    %c0_i32 = arith.constant 0 : i32
    %c0_i32_0 = arith.constant 0 : i32
    %c0_i32_1 = arith.constant 0 : i32
    return %c0_i32, %c0_i32_0 : i32, i32
  }
  func.func @transform_19(%arg0: i32, %arg1: memref<2xi32, #tpu.memory_space<smem>>) -> (i32, i32) {
    %c0_i32 = arith.constant 0 : i32
    %c0_i32_0 = arith.constant 0 : i32
    %c0_i32_1 = arith.constant 0 : i32
    return %c0_i32, %c0_i32_0 : i32, i32
  }
  func.func @transform_20(%arg0: i32, %arg1: memref<2xi32, #tpu.memory_space<smem>>) -> (i32, i32) {
    %c0_i32 = arith.constant 0 : i32
    %c0_i32_0 = arith.constant 0 : i32
    %c0_i32_1 = arith.constant 0 : i32
    return %c0_i32, %c0_i32_0 : i32, i32
  }
  func.func @transform_21(%arg0: i32, %arg1: memref<2xi32, #tpu.memory_space<smem>>) -> (i32, i32) {
    %c0_i32 = arith.constant 0 : i32
    %c0_i32_0 = arith.constant 0 : i32
    %c0_i32_1 = arith.constant 0 : i32
    return %c0_i32, %c0_i32_0 : i32, i32
  }
  func.func @transform_22(%arg0: i32, %arg1: memref<2xi32, #tpu.memory_space<smem>>) -> (i32, i32, i32) {
    %c0_i32 = arith.constant 0 : i32
    %c0_i32_0 = arith.constant 0 : i32
    %c0_i32_1 = arith.constant 0 : i32
    return %arg0, %c0_i32, %c0_i32_0 : i32, i32, i32
  }
}

</mosaic_0001>

<bundles_post_ra>
// kernel: tpu_custom_call.1
= control target key start
LH: loop header
LB: loop body
LE: loop exit
PB: predicated region body
PF: predicated region fallthrough
CT: control target
= control target key end

     0   :  { %s4573_s0 = inlined_call_operand.hbm [shape: s32[2], index: 0, kind: input, shape index: {}]   ;;  %s4574_s1 = inlined_call_operand.vmem [shape: f32[2,8,32], index: 1, kind: input, shape index: {}]   ;;  %s4575_s2 = inlined_call_operand.vmem [shape: f32[16,16], index: 2, kind: input, shape index: {}]   ;;  %s4576_s3 = inlined_call_operand.vmem [shape: f32[16,16], index: 3, kind: input, shape index: {}]   ;;  %s4577_s4 = inlined_call_operand.hbm [shape: f32[1,32], index: 4, kind: input, shape index: {}]   ;;  %s4578_s5 = inlined_call_operand.hbm [shape: f32[1,32], index: 5, kind: input, shape index: {}]   ;;  %s4579_s6 = inlined_call_operand.hbm [shape: f32[1,32], index: 6, kind: input, shape index: {}]   ;;  %s4580_s7 = inlined_call_operand.vmem [shape: bf16[32,32], index: 7, kind: input, shape index: {}]   ;;  %s4581_s8 = inlined_call_operand.hbm [shape: f32[1,32], index: 8, kind: input, shape index: {}]   ;;  %s4582_s9 = inlined_call_operand.vmem [shape: bf16[32,32], index: 9, kind: input, shape index: {}]   ;;  %s4583_s10 = inlined_call_operand.hbm [shape: f32[1,32], index: 10, kind: input, shape index: {}]   ;;  %s4584_s11 = inlined_call_operand.vmem [shape: bf16[32,32], index: 11, kind: input, shape index: {}]   ;;  %s4585_s12 = inlined_call_operand.hbm [shape: f32[1,32], index: 12, kind: input, shape index: {}]   ;;  %s4586_s13 = inlined_call_operand.vmem [shape: bf16[32,32], index: 13, kind: input, shape index: {}]   ;;  %s4587_s14 = inlined_call_operand.hbm [shape: f32[1,32], index: 14, kind: input, shape index: {}]   ;;  %s4588_s15 = inlined_call_operand.hbm [shape: f32[1,32], index: 15, kind: input, shape index: {}]   ;;  %s4589_s16 = inlined_call_operand.hbm [shape: f32[1,32], index: 16, kind: input, shape index: {}]   ;;  %s4590_s17 = inlined_call_operand.vmem [shape: bf16[32,128], index: 17, kind: input, shape index: {}]   ;;  %s4591_s18 = inlined_call_operand.vmem [shape: f32[1,128], index: 18, kind: input, shape index: {}]   ;;  %s4592_s19 = inlined_call_operand.vmem [shape: bf16[128,32], index: 19, kind: input, shape index: {}]   ;;  %s4593_s20 = inlined_call_operand.vmem [shape: f32[1,32], index: 20, kind: input, shape index: {}]   ;;  %s4594_s21 = inlined_call_operand.vmem [shape: f32[1,32], index: 21, kind: input, shape index: {}]   ;;  %s4595_s22 = inlined_call_operand.vmem [shape: f32[1,32], index: 22, kind: input, shape index: {}]   ;;  %s4596_s23 = inlined_call_operand.hbm [shape: f32[2,8,32], index: 23, kind: output, shape index: {}]  }
   0x1   :  { %4606 = sst [smem:[#allocation28_spill]] %s4573_s0 }
   0x2   :  { %4607 = sst [smem:[#allocation29_spill]] %s4574_s1  ;;  %s4615_s24 = sld [smem:[#allocation28_spill]] }
   0x3   :  { %4608 = sst [smem:[#allocation30_spill]] %s4575_s2 }
   0x4   :  { %4609 = sst [smem:[#allocation31_spill]] %s4576_s3 }
   0x5   :  { %4610 = sst [smem:[#allocation32_spill]] %s4577_s4 }
   0x6   :  { %4611 = sst [smem:[#allocation33_spill]] %s4578_s5 }
   0x7   :  { %4612 = sst [smem:[#allocation34_spill]] %s4579_s6 }
   0x8   :  { %4613 = sst [smem:[#allocation35_spill]] %s4580_s7 }
   0x9   :  { %4614 = sst [smem:[#allocation36_spill]] %s4590_s17  ;;  %s3421_s17 = scalar_lea.hbm %s4615_s24, 16 }
   0xa   :  { %p3422_p0 = scmp.ne.s32.totalorder %s4615_s24, %s3421_s17  ;;  %p3425_p1 = scmp.lt.u32.totalorder %s3421_s17, %s4615_s24 }
   0xc   :  { %p3427_p2 = pnand %p3425_p1, %p3422_p0 }
   0xe   :  { %3430 = shalt.err (!%p3427_p2)  }
   0xf   :  { %s3665_s2 = smov [#allocation4]  }
  0x10   :  { %29 = dma.hbm_to_smem %s4615_s24, 16, %s3665_s2, [#allocation3] }
  0x11   :  { %3651 = dma.done.wait [#allocation3], 16 }
  0x12   :  { %3652 = vsyncadd [#allocation3], 4294967280 }
  0x13   :  { %31 = sfence }
  0x14   :  { %32 = vsyncpa [#allocation6], 0 }
  0x15   :  { %33 = vsyncpa [#allocation9], 0 }
  0x16   :  { %34 = vsyncpa [#allocation12], 0 }
  0x17   :  { %35 = vsyncpa [#allocation15], 0 }
  0x18   :  { %36 = vsyncpa [#allocation18], 0 }
  0x19   :  { %37 = vsyncpa [#allocation7], 0  ;;  %s3666_s7 = smov [#allocation8]   ;;  %s3667_s29 = smov [#allocation11]  }
  0x1a   :  { %s60_s28 = sshll.u32 %s3666_s7, 4  ;;  %s82_s17 = sshll.u32 %s3667_s29, 4  ;;  %s61_s28 = int_to_ptr.vmem [resolvable:$true] %s60_s28  ;;  %s83_s17 = int_to_ptr.vmem [resolvable:$true] %s82_s17 }
  0x1b   :  { %s4616_s4 = sld [smem:[#allocation33_spill]] }
  0x21   :  { %s3431_s30 = scalar_lea.hbm %s4616_s4, 16 }
  0x22   :  { %p3432_p3 = scmp.ne.s32.totalorder %s4616_s4, %s3431_s30  ;;  %p3435_p4 = scmp.lt.u32.totalorder %s3431_s30, %s4616_s4 }
  0x24   :  { %p3437_p5 = pnand %p3435_p4, %p3432_p3 }
  0x26   :  { %3440 = shalt.err (!%p3437_p5)
}
  0x27   :  { %s3441_s26 = scalar_lea.vmem %s61_s28, 16  ;;  %s3445_s2 = scalar_lea.vmem %s61_s28, 32 }
  0x28   :  { %p3442_p6 = scmp.ne.s32.totalorder %s61_s28, %s3441_s26  ;;  %p3446_p7 = scmp.lt.s32.totalorder %s61_s28, %s61_s28 }
  0x29   :  { %p3447_p8 = scmp.lt.s32.totalorder %s3445_s2, %s3441_s26 }
  0x2b   :  { %p3448_p9 = por %p3447_p8, %p3446_p7 }
  0x2d   :  { %p3449_p10 = pnand %p3448_p9, %p3442_p6 }
  0x2f   :  { %3452 = shalt.err (!%p3449_p10)
}
  0x30   :  { %63 = dma.hbm_to_vmem [thread:$0]  %s4616_s4, 16, %s61_s28, [#allocation9]  }
  0x31   :  { %s3453_s3 = scalar_lea.hbm %s4581_s8, 16 }
  0x32   :  { %p3454_p11 = scmp.ne.s32.totalorder %s4581_s8, %s3453_s3  ;;  %p3457_p12 = scmp.lt.u32.totalorder %s3453_s3, %s4581_s8 }
  0x34   :  { %p3459_p13 = pnand %p3457_p12, %p3454_p11 }
  0x36   :  { %3462 = shalt.err (!%p3459_p13)
}
  0x37   :  { %s3463_s5 = scalar_lea.vmem %s83_s17, 16  ;;  %s3467_s1 = scalar_lea.vmem %s83_s17, 32 }
  0x38   :  { %p3464_p0 = scmp.ne.s32.totalorder %s83_s17, %s3463_s5  ;;  %p3468_p1 = scmp.lt.s32.totalorder %s83_s17, %s83_s17 }
  0x39   :  { %p3469_p2 = scmp.lt.s32.totalorder %s3467_s1, %s3463_s5 }
  0x3b   :  { %p3470_p3 = por %p3469_p2, %p3468_p1 }
  0x3d   :  { %p3471_p4 = pnand %p3470_p3, %p3464_p0 }
  0x3f   :  { %3474 = shalt.err (!%p3471_p4)
}
  0x40   :  { %85 = dma.hbm_to_vmem [thread:$0]  %s4581_s8, 16, %s83_s17, [#allocation12]  }
  0x41   :  { %s3668_s26 = smov [#allocation14]   ;;  %s3669_s6 = smov [#allocation17]  }
  0x42   :  { %s106_s2 = sshll.u32 %s3668_s26, 4  ;;  %s128_s27 = sshll.u32 %s3669_s6, 4  ;;  %s107_s2 = int_to_ptr.vmem [resolvable:$true] %s106_s2  ;;  %s129_s27 = int_to_ptr.vmem [resolvable:$true] %s128_s27 }
  0x43   :  { %s3475_s3 = scalar_lea.hbm %s4585_s12, 16 }
  0x44   :  { %p3476_p5 = scmp.ne.s32.totalorder %s4585_s12, %s3475_s3  ;;  %p3479_p6 = scmp.lt.u32.totalorder %s3475_s3, %s4585_s12 }
  0x46   :  { %p3481_p7 = pnand %p3479_p6, %p3476_p5 }
  0x48   :  { %3484 = shalt.err (!%p3481_p7)
}
  0x49   :  { %s3485_s8 = scalar_lea.vmem %s107_s2, 16  ;;  %s3489_s17 = scalar_lea.vmem %s107_s2, 32 }
  0x4a   :  { %p3486_p8 = scmp.ne.s32.totalorder %s107_s2, %s3485_s8  ;;  %p3490_p9 = scmp.lt.s32.totalorder %s107_s2, %s107_s2 }
  0x4b   :  { %p3491_p10 = scmp.lt.s32.totalorder %s3489_s17, %s3485_s8 }
  0x4d   :  { %p3492_p11 = por %p3491_p10, %p3490_p9 }
  0x4f   :  { %p3493_p12 = pnand %p3492_p11, %p3486_p8 }
  0x51   :  { %3496 = shalt.err (!%p3493_p12)
}
  0x52   :  { %109 = dma.hbm_to_vmem [thread:$0]  %s4585_s12, 16, %s107_s2, [#allocation15]  }
  0x53   :  { %s3497_s26 = scalar_lea.hbm %s4588_s15, 16 }
  0x54   :  { %p3498_p13 = scmp.ne.s32.totalorder %s4588_s15, %s3497_s26  ;;  %p3501_p0 = scmp.lt.u32.totalorder %s3497_s26, %s4588_s15 }
  0x56   :  { %p3503_p1 = pnand %p3501_p0, %p3498_p13 }
  0x58   :  { %3506 = shalt.err (!%p3503_p1)
}
  0x59   :  { %s3507_s0 = scalar_lea.vmem %s129_s27, 16  ;;  %s3511_s30 = scalar_lea.vmem %s129_s27, 32 }
  0x5a   :  { %p3508_p2 = scmp.ne.s32.totalorder %s129_s27, %s3507_s0  ;;  %p3512_p3 = scmp.lt.s32.totalorder %s129_s27, %s129_s27 }
  0x5b   :  { %p3513_p4 = scmp.lt.s32.totalorder %s3511_s30, %s3507_s0 }
  0x5d   :  { %p3514_p5 = por %p3513_p4, %p3512_p3 }
  0x5f   :  { %p3515_p6 = pnand %p3514_p5, %p3508_p2 }
  0x61   :  { %3518 = shalt.err (!%p3515_p6)
}
  0x62   :  { %131 = dma.hbm_to_vmem [thread:$0]  %s4588_s15, 16, %s129_s27, [#allocation18]  }
  0x63   :  { %s3670_s24 = smov [#allocation5]   ;;  %s3671_s8 = smov [#allocation10]  }
  0x64   :  { %s50_s25 = sshll.u32 %s3670_s24, 4  ;;  %s70_s17 = sshll.u32 %s3671_s8, 4  ;;  %s51_s25 = int_to_ptr.vmem [resolvable:$true] %s50_s25  ;;  %s71_s17 = int_to_ptr.vmem [resolvable:$true] %s70_s17 }
  0x65   :  { %s4617_s28 = sld [smem:[#allocation32_spill]] }
  0x6b   :  { %s3519_s4 = scalar_lea.hbm %s4617_s28, 16 }
  0x6c   :  { %p3520_p7 = scmp.ne.s32.totalorder %s4617_s28, %s3519_s4  ;;  %p3523_p8 = scmp.lt.u32.totalorder %s3519_s4, %s4617_s28 }
  0x6e   :  { %p3525_p9 = pnand %p3523_p8, %p3520_p7 }
  0x70   :  { %3528 = shalt.err (!%p3525_p9)
}
  0x71   :  { %s3529_s15 = scalar_lea.vmem %s51_s25, 16  ;;  %s3533_s27 = scalar_lea.vmem %s51_s25, 32 }
  0x72   :  { %p3530_p10 = scmp.ne.s32.totalorder %s51_s25, %s3529_s15  ;;  %p3534_p11 = scmp.lt.s32.totalorder %s51_s25, %s51_s25 }
  0x73   :  { %p3535_p12 = scmp.lt.s32.totalorder %s3533_s27, %s3529_s15 }
  0x75   :  { %p3536_p13 = por %p3535_p12, %p3534_p11 }
  0x77   :  { %p3537_p0 = pnand %p3536_p13, %p3530_p10 }
  0x79   :  { %3540 = shalt.err (!%p3537_p0)
}
  0x7a   :  { %53 = dma.hbm_to_vmem [thread:$0]  %s4617_s28, 16, %s51_s25, [#allocation6]  }
  0x7b   :  { %s4618_s2 = sld [smem:[#allocation34_spill]] }
  0x81   :  { %s3541_s24 = scalar_lea.hbm %s4618_s2, 16 }
  0x82   :  { %p3542_p1 = scmp.ne.s32.totalorder %s4618_s2, %s3541_s24  ;;  %p3545_p2 = scmp.lt.u32.totalorder %s3541_s24, %s4618_s2 }
  0x84   :  { %p3547_p3 = pnand %p3545_p2, %p3542_p1 }
  0x86   :  { %3550 = shalt.err (!%p3547_p3)
}
  0x87   :  { %s3551_s26 = scalar_lea.vmem %s71_s17, 16  ;;  %s3555_s6 = scalar_lea.vmem %s71_s17, 32 }
  0x88   :  { %p3552_p4 = scmp.ne.s32.totalorder %s71_s17, %s3551_s26  ;;  %p3556_p5 = scmp.lt.s32.totalorder %s71_s17, %s71_s17 }
  0x89   :  { %p3557_p6 = scmp.lt.s32.totalorder %s3555_s6, %s3551_s26 }
  0x8b   :  { %p3558_p7 = por %p3557_p6, %p3556_p5 }
  0x8d   :  { %p3559_p8 = pnand %p3558_p7, %p3552_p4 }
  0x8f   :  { %3562 = shalt.err (!%p3559_p8)
}
  0x90   :  { %73 = dma.hbm_to_vmem [thread:$0]  %s4618_s2, 16, %s71_s17, [#allocation9]  }
  0x91   :  { %s3672_s7 = smov [#allocation13]   ;;  %s3673_s15 = smov [#allocation16]  }
  0x92   :  { %s94_s29 = sshll.u32 %s3672_s7, 4  ;;  %s118_s27 = sshll.u32 %s3673_s15, 4  ;;  %s95_s29 = int_to_ptr.vmem [resolvable:$true] %s94_s29  ;;  %s119_s27 = int_to_ptr.vmem [resolvable:$true] %s118_s27 }
  0x93   :  { %s3563_s30 = scalar_lea.hbm %s4583_s10, 16 }
  0x94   :  { %p3564_p9 = scmp.ne.s32.totalorder %s4583_s10, %s3563_s30  ;;  %p3567_p10 = scmp.lt.u32.totalorder %s3563_s30, %s4583_s10 }
  0x96   :  { %p3569_p11 = pnand %p3567_p10, %p3564_p9 }
  0x98   :  { %3572 = shalt.err (!%p3569_p11)
}
  0x99   :  { %s3573_s17 = scalar_lea.vmem %s95_s29, 16  ;;  %s3577_s2 = scalar_lea.vmem %s95_s29, 32 }
  0x9a   :  { %p3574_p12 = scmp.ne.s32.totalorder %s95_s29, %s3573_s17  ;;  %p3578_p13 = scmp.lt.s32.totalorder %s95_s29, %s95_s29 }
  0x9b   :  { %p3579_p0 = scmp.lt.s32.totalorder %s3577_s2, %s3573_s17 }
  0x9d   :  { %p3580_p1 = por %p3579_p0, %p3578_p13 }
  0x9f   :  { %p3581_p2 = pnand %p3580_p1, %p3574_p12 }
  0xa1   :  { %3584 = shalt.err (!%p3581_p2)
}
  0xa2   :  { %97 = dma.hbm_to_vmem [thread:$0]  %s4583_s10, 16, %s95_s29, [#allocation12]  }
  0xa3   :  { %s3585_s25 = scalar_lea.hbm %s4587_s14, 16 }
  0xa4   :  { %p3586_p3 = scmp.ne.s32.totalorder %s4587_s14, %s3585_s25  ;;  %p3589_p4 = scmp.lt.u32.totalorder %s3585_s25, %s4587_s14 }
  0xa6   :  { %p3591_p5 = pnand %p3589_p4, %p3586_p3 }
  0xa8   :  { %3594 = shalt.err (!%p3591_p5)
}
  0xa9   :  { %s3595_s0 = scalar_lea.vmem %s119_s27, 16  ;;  %s3599_s30 = scalar_lea.vmem %s119_s27, 32 }
  0xaa   :  { %p3596_p6 = scmp.ne.s32.totalorder %s119_s27, %s3595_s0  ;;  %p3600_p7 = scmp.lt.s32.totalorder %s119_s27, %s119_s27 }
  0xab   :  { %p3601_p8 = scmp.lt.s32.totalorder %s3599_s30, %s3595_s0 }
  0xad   :  { %p3602_p9 = por %p3601_p8, %p3600_p7 }
  0xaf   :  { %p3603_p10 = pnand %p3602_p9, %p3596_p6 }
  0xb1   :  { %3606 = shalt.err (!%p3603_p10)
}
  0xb2   :  { %121 = dma.hbm_to_vmem [thread:$0]  %s4587_s14, 16, %s119_s27, [#allocation15]  }
  0xb3   :  { %s3674_s12 = smov [#allocation19]   ;;  %s3607_s17 = scalar_lea.hbm %s4589_s16, 16 }
  0xb4   :  { %s138_s24 = sshll.u32 %s3674_s12, 4  ;;  %p3608_p11 = scmp.ne.s32.totalorder %s4589_s16, %s3607_s17  ;;  %s139_s24 = int_to_ptr.vmem [resolvable:$true] %s138_s24 }
  0xb5   :  { %p3611_p12 = scmp.lt.u32.totalorder %s3607_s17, %s4589_s16 }
  0xb7   :  { %p3613_p13 = pnand %p3611_p12, %p3608_p11 }
  0xb9   :  { %3616 = shalt.err (!%p3613_p13)
}
  0xba   :  { %s3617_s6 = scalar_lea.vmem %s139_s24, 16  ;;  %s3621_s14 = scalar_lea.vmem %s139_s24, 32 }
  0xbb   :  { %p3618_p0 = scmp.ne.s32.totalorder %s139_s24, %s3617_s6  ;;  %p3622_p1 = scmp.lt.s32.totalorder %s139_s24, %s139_s24 }
  0xbc   :  { %p3623_p2 = scmp.lt.s32.totalorder %s3621_s14, %s3617_s6 }
  0xbe   :  { %p3624_p3 = por %p3623_p2, %p3622_p1 }
  0xc0   :  { %p3625_p4 = pnand %p3624_p3, %p3618_p0 }
  0xc2   :  { %3628 = shalt.err (!%p3625_p4)
}
  0xc3   :  { %141 = dma.hbm_to_vmem [thread:$0]  %s4589_s16, 16, %s139_s24, [#allocation18]  }
  0xc4   :  { %3653 = dma.done.wait [#allocation6], 16  }
  0xc5   :  { %3654 = vsyncadd [#allocation6], 4294967280 }
  0xc6   :  { %3655 = dma.done.wait [#allocation9], 32  }
  0xc7   :  { %3656 = vsyncadd [#allocation9], 4294967264 }
  0xc8   :  { %3657 = dma.done.wait [#allocation12], 32  }
  0xc9   :  { %3658 = vsyncadd [#allocation12], 4294967264 }
  0xca   :  { %3659 = dma.done.wait [#allocation15], 32  }
  0xcb   :  { %3660 = vsyncadd [#allocation15], 4294967264 }
  0xcc   :  { %3661 = dma.done.wait [#allocation18], 32  }
  0xcd   :  { %3662 = vsyncadd [#allocation18], 4294967264  ;;  %vm333_vm0 = vcmask 261120   ;;  %vm339_vm1 = vcmask 130048   ;;  %s4619_s15 = sld [smem:[#allocation29_spill]]  ;;  %s4620_s10 = sld [smem:[#allocation31_spill]]  ;;  %v182_v39 = vlaneseq }
  0xce   :  { %s4621_s5 = sld [smem:[#allocation30_spill]]  ;;  %v3675_v8 = vmov 0.0   ;;  %vm3676_vm2 = vmmov 0   ;;  %s4622_s26 = sld [smem:[#allocation35_spill]]  ;;  %v3318_v15 = vld [vmem:[%s4582_s9] sm:$0xff]   ;;  %v3319_v16 = vld [vmem:[%s4582_s9 + $0x8] sm:$0xff]  }
  0xcf   :  { %3044 = vmatprep.subr.bf16.mxu1 %v3675_v8  ;;  %3046 = vmatprep.mubr.msk.bf16.mxu1 %vm3676_vm2, %v3675_v8  ;;  %v3996_v23 = vld [vmem:[#allocation13] ss:$0 sm:$0xff]  ;;  %v3998_v24 = vld [vmem:[#allocation11] ss:$0 sm:$0xff]  ;;  %v4014_v34 = vld [vmem:[%s4584_s11] sm:$0xff]   ;;  %v4034_v40 = vand.u32 127, %v182_v39 }
  0xd0   :  { %v4020_v35 = vld [vmem:[%s4584_s11 + $0x8] sm:$0xff]   ;;  %s187_s11 = sld [smem:[#allocation4]]  ;;  %v4036_v42 = vshrl.u32 %v182_v39, 7  ;;  %v3678_v44 = vmov -10000.0   ;;  %vm754_vm6 = vcmask 64512   ;;  %vm773_vm7 = vcmask 1043456  }
  0xd1   :  { %v4051_v62 = vld [vmem:[#allocation14] ss:$0 sm:$0xff]  ;;  %s2829_s17 = sld [smem:[#allocation4 + $0x1]]  ;;  %s4623_s4 = sld [smem:[#allocation36_spill]] }
  0xd2   :  { %vm188_vm3 = vcmp.le.s32.totalorder %v4034_v40, %v4036_v42 }
  0xd3   :  { %v331_v0 = vld [vmem:[%s4619_s15] sm:$0xff]  ;;  %v332_v1 = vld [vmem:[%s4619_s15 + $0x8] sm:$0xff]  ;;  %s3677_s15 = smov 112  }
  0xd4   :  { %v3932_v2 = vld [vmem:[%s4620_s10] sm:$0xff]  ;;  %334 = vst.msk [vmem:[#allocation2] sm:$0xff] %vm333_vm0, %v331_v0  ;;  %335 = vst.msk [vmem:[#allocation2 + $0x8] sm:$0xff] %vm333_vm0, %v332_v1  ;;  %v294_v6 = vld [vmem:[%s4620_s10 + $0x8] sm:$0xff] }
  0xd5   :  { %3010 = vmatprep.mubr.msk.f32.mxu0 %vm339_vm1, %v3932_v2  ;;  %v291_v7 = vld [vmem:[%s4621_s5] sm:$0xff]  ;;  %v292_v12 = vld [vmem:[%s4621_s5 + $0x8] sm:$0xff] }
  0xd6   :  { %v3316_v13 = vld [vmem:[%s4622_s26] sm:$0xff]   ;;  %v3317_v14 = vld [vmem:[%s4622_s26 + $0x8] sm:$0xff]   ;;  %v189_v41 = vstv %s187_s11 }
  0xd7   :  { %vm190_vm4 = vcmp.lt.s32.totalorder %v4034_v40, %v189_v41 }
  0xd8   :  { %vm191_vm5 = vmand %vm188_vm3, %vm190_vm4 }
  0xd9   :  { %v4045_v45 = vsel %vm191_vm5, 0.0, %v3678_v44 }
  0xdb   :  { %v3938_v3 = vld [vmem:[#allocation2] sm:$0xff]  ;;  %v3940_v4 = vld [vmem:[#allocation2 + $0x8] sm:$0xff] }
  0xdc   :  { %v3944_v5 = vpack.c.bf16 %v3940_v4, %v3938_v3 }
  0xde   :  { %3283 = vmatprep.subr.bf16.mxu0 %v3944_v5 }
  0xdf   :  { %3285 = vmatpush3.bf16.msra.mxu0 %v3944_v5 }
  0xe2   :  { %3011 = vmatmul.mubr.msk.f32.vlgmr.msra.gmra.mrb[0].mxu0 %vm339_vm1, %v294_v6 }
  0xe3   :  { %3017 = vmatprep.mubr.msk.f32.mxu0 %vm339_vm1, %v291_v7 }
 0x1b5   :  { %v3012_v9 = vpop.f32.mrb[0].mxu0 }
 0x1b6   :  { %v412_v10 = vpop.f32.mrb[1].mxu0 }
 0x1b7   :  { %v3286_v11 = vpack.c.bf16 %v3012_v9, %v412_v10 }
 0x1b9   :  { %3287 = vmatprep.subr.bf16.mxu0 %v3286_v11 }
 0x1ba   :  { %3289 = vmatpush3.bf16.msra.mxu0 %v3286_v11 }
 0x1bb   :  { %3020 = vmatprep.subr.bf16.mxu0 %v3675_v8 }
 0x1bd   :  { %3018 = vmatmul.mubr.msk.f32.vlgmr.msra.gmra.mrb[2].mxu0 %vm339_vm1, %v292_v12 }
 0x1be   :  { %3021 = vmatpush3.bf16.msra.mxu0 %v3316_v13  ;;  %3024 = vmatprep.mubr.msk.bf16.mxu0 %vm3676_vm2, %v3675_v8 }
 0x1bf   :  { %3022 = vmatprep.subr.bf16.mxu0 %v3675_v8 }
 0x1c2   :  { %3023 = vmatpush3.bf16.msra.mxu0 %v3317_v14 }
 0x1c3   :  { %3028 = vmatprep.subr.bf16.mxu0 %v3675_v8 }
 0x1c5   :  { %3025 = vmatmul.mubr.msk.bf16.vlgmr.msra.gmra.mrb[4].mxu0 %vm333_vm0, %v3944_v5 }
 0x1c6   :  { %3029 = vmatpush3.bf16.msra.mxu0 %v3318_v15  ;;  %3032 = vmatprep.mubr.msk.bf16.mxu0 %vm3676_vm2, %v3675_v8 }
 0x1c7   :  { %3030 = vmatprep.subr.bf16.mxu0 %v3675_v8 }
 0x1ca   :  { %3031 = vmatpush3.bf16.msra.mxu0 %v3319_v16 }
 0x1cb   :  { %3036 = vmatprep.subr.bf16.mxu0 %v3675_v8 }
 0x1cd   :  { %3033 = vmatmul.mubr.msk.bf16.vlgmr.msra.gmra.mrb[8].mxu0 %vm333_vm0, %v3944_v5 }
 0x1ce   :  { %3040 = vmatprep.mubr.msk.bf16.mxu0 %vm3676_vm2, %v3675_v8  ;;  %3037 = vmatpush3.bf16.msra.mxu0 %v4014_v34 }
 0x1cf   :  { %3038 = vmatprep.subr.bf16.mxu0 %v3675_v8 }
 0x1d2   :  { %3039 = vmatpush3.bf16.msra.mxu0 %v4020_v35 }
 0x1d3   :  { %3050 = vmatprep.subr.bf16.mxu0 %v3675_v8 }
 0x1d5   :  { %3041 = vmatmul.mubr.msk.bf16.vlgmr.msra.gmra.mrb[12].mxu0 %vm333_vm0, %v3944_v5 }
 0x1d6   :  { %3052 = vmatprep.mubr.msk.bf16.mxu0 %vm3676_vm2, %v3675_v8 }
 0x290   :  { %v3990_v17 = vpop.f32.mrb[2].mxu0 }
 0x291   :  { %v3992_v18 = vpop.f32.mrb[3].mxu0 }
 0x298   :  { %v590_v19 = vpop.f32.mrb[4].mxu0 }
 0x299   :  { %v3026_v20 = vpop.f32.mrb[5].mxu0  ;;  %v591_v29 = vadd.f32 %v3998_v24, %v590_v19 }
 0x29a   :  { %v3994_v21 = vpop.f32.mrb[6].mxu0 }
 0x29b   :  { %v3027_v22 = vpop.f32.mrb[7].mxu0  ;;  %v703_v33 = vpack.c.bf16 %v591_v29, %v591_v29  ;;  %v594_v20 = vadd.f32 %v3998_v24, %v3994_v21  ;;  %v4071_v21 = vld [vmem:[%s4586_s13 + $0x8] sm:$0xff]  }
 0x2a0   :  { %v643_v25 = vpop.f32.mrb[8].mxu0 }
 0x2a1   :  { %v644_v26 = vadd.f32 %v3996_v23, %v643_v25  ;;  %v3034_v27 = vpop.f32.mrb[9].mxu0  ;;  %v1035_v25 = vpack.c.bf16 %v594_v20, %v594_v20 }
 0x2a2   :  { %v4001_v28 = vpop.f32.mrb[10].mxu0 }
 0x2a3   :  { %v704_v30 = vpack.c.bf16 %v644_v26, %v644_v26  ;;  %v3035_v31 = vpop.f32.mrb[11].mxu0  ;;  %v647_v19 = vadd.f32 %v3996_v23, %v4001_v28 }
 0x2a5   :  { %822 = vrot.lane.b32.xlu0 %v704_v30, %s3677_s15  ;;  %v710_v32 = vsel %vm339_vm1, %v704_v30, 0  ;;  %v1036_v22 = vpack.c.bf16 %v647_v19, %v647_v19 }
 0x2a6   :  { %3045 = vmatpush3.bf16.xpose.msra.mxu1 %v710_v32 }
 0x2a7   :  { %3056 = vmatprep.subr.bf16.mxu1 %v3675_v8 }
 0x2a8   :  { %v696_v63 = vpop.f32.mrb[12].mxu0 }
 0x2a9   :  { %819 = vrot.lane.b32.xlu0 %v703_v33, %s3677_s15  ;;  %v697_v0 = vadd.f32 %v4051_v62, %v696_v63  ;;  %v3042_v1 = vpop.f32.mrb[13].mxu0 }
 0x2aa   :  { %v699_v10 = vpop.f32.mrb[14].mxu0 }
 0x2ab   :  { %v705_v5 = vpack.c.bf16 %v697_v0, %v697_v0  ;;  %v3043_v11 = vpop.f32.mrb[15].mxu0 }
 0x2ac   :  { %v204_v11 = vsub.s32 0, %v4036_v42 }
 0x2ad   :  { %3047 = vmatmul.mubr.msk.bf16.vlgmr.msra.gmra.mrb[0].mxu1 %vm339_vm1, %v703_v33  ;;  %v775_v6 = vsel %vm773_vm7, %v705_v5, 0 }
 0x2ae   :  { %3058 = vmatprep.mubr.msk.bf16.mxu1 %vm3676_vm2, %v3675_v8  ;;  %3051 = vmatpush3.bf16.msra.mxu0 %v775_v6 }
 0x2af   :  { %3062 = vmatprep.subr.bf16.mxu0 %v3675_v8 }
 0x317   :  { %v823_v36 = vpop.permute.xlu0 %822 }
 0x318   :  { %v828_v37 = vsel %vm339_vm1, %v823_v36, 0 }
 0x319   :  { %3057 = vmatpush3.bf16.xpose.msra.mxu1 %v828_v37 }
 0x31a   :  { %3068 = vmatprep.subr.bf16.mxu1 %v3675_v8 }
 0x31b   :  { %v820_v38 = vpop.permute.xlu0 %819 }
 0x320   :  { %3059 = vmatmul.mubr.msk.bf16.vlgmr.msra.gmra.mrb[4].mxu1 %vm339_vm1, %v820_v38 }
 0x321   :  { %3070 = vmatprep.mubr.msk.bf16.mxu1 %vm3676_vm2, %v3675_v8  ;;  %3069 = vmatpush3.bf16.msra.mxu1 %v4071_v21 }
 0x322   :  { %3080 = vmatprep.subr.bf16.mxu1 %v3675_v8 }
 0x380   :  { %v746_v43 = vpop.f32.mrb[0].mxu1 }
 0x381   :  { %v752_v46 = vmul.f32 0.25, %v746_v43  ;;  %v3048_v47 = vpop.f32.mrb[1].mxu1  ;;  %v4080_v43 = vld [vmem:[%s4586_s13] sm:$0xff]  }
 0x382   :  { %v749_v48 = vpop.f32.mrb[2].mxu1  ;;  %v700_v47 = vadd.f32 %v4051_v62, %v699_v10 }
 0x383   :  { %v3049_v49 = vpop.f32.mrb[3].mxu1  ;;  %v753_v50 = vadd.f32 %v752_v46, %v4045_v45 }
 0x384   :  { %v4088_v48 = vpack.c.bf16 %v700_v47, %v700_v47 }
 0x385   :  { %v755_v51 = vsel %vm754_vm6, %v753_v50, -inf }
 0x386   :  { %756 = vmax.xlane.f32.xlu1 %v755_v51 }
 0x3f3   :  { %v864_v52 = vpop.f32.mrb[4].mxu1 }
 0x3f4   :  { %v870_v53 = vmul.f32 0.25, %v864_v52  ;;  %v3060_v54 = vpop.f32.mrb[5].mxu1 }
 0x3f5   :  { %v867_v55 = vpop.f32.mrb[6].mxu1 }
 0x3f6   :  { %v3061_v56 = vpop.f32.mrb[7].mxu1  ;;  %v871_v57 = vadd.f32 %v870_v53, %v4045_v45  ;;  %v1105_v53 = vsel %vm773_vm7, %v4088_v48, 0 }
 0x3f8   :  { %v872_v58 = vsel %vm754_vm6, %v871_v57, -inf }
 0x3f9   :  { %873 = vmax.xlane.f32.xlu1 %v872_v58 }
 0x413   :  { %v757_v59 = vpop.xlane.xlu1 %756 }
 0x414   :  { %v758_v60 = vsub.f32 %v753_v50, %v757_v59  ;;  %v1042_v59 = vsel %vm339_vm1, %v1036_v22, 0 }
 0x416   :  { %v759_v61 = vmul.f32 1.442695, %v758_v60 }
 0x418   :  { %3334 = vpow2.f32 %v759_v61 }
 0x422   :  { %v3335_v7 = vpop.eup %3334 }
 0x423   :  { %v761_v9 = vsel %vm754_vm6, %v3335_v7, 0.0 }
 0x424   :  { %762 = vadd.xlane.f32.xlu0 %v761_v9  ;;  %v199_v9 = vld [vmem:[#allocation5] sm:$0x1] }
 0x425   :  { %v200_v10 = vmul.f32 %v199_v9, %v199_v9 }
 0x486   :  { %v874_v12 = vpop.xlane.xlu1 %873 }
 0x487   :  { %v875_v13 = vsub.f32 %v871_v57, %v874_v12  ;;  %v195_v12 = vstv %s2829_s17 }
 0x488   :  { %vm196_vm8 = vcmp.lt.s32.totalorder %v4034_v40, %v195_v12 }
 0x489   :  { %v876_v14 = vmul.f32 1.442695, %v875_v13  ;;  %vm197_vm9 = vmand %vm188_vm3, %vm196_vm8 }
 0x48b   :  { %3336 = vpow2.f32 %v876_v14  ;;  %v4112_v14 = vrot.slane %v200_v10, %v204_v11 }
 0x495   :  { %v3337_v15 = vpop.eup %3336 }
 0x496   :  { %v878_v16 = vsel %vm754_vm6, %v3337_v15, 0.0 }
 0x497   :  { %879 = vadd.xlane.f32.xlu1 %v878_v16 }
 0x4a8   :  { %888 = vrot.lane.b32.xlu1 %v705_v5, %s3677_s15 }
 0x4ac   :  { %1152 = vrot.lane.b32.xlu1 %v1036_v22, %s3677_s15 }
 0x4b0   :  { %1149 = vrot.lane.b32.xlu1 %v1035_v25, %s3677_s15 }
 0x4b1   :  { %v763_v26 = vpop.xlane.xlu0 %762 }
 0x4b2   :  { %3338 = vrcp.f32 %v763_v26 }
 0x4bc   :  { %v3339_v27 = vpop.eup %3338 }
 0x4bd   :  { %v765_v29 = vmul.f32 %v3339_v27, %v763_v26 }
 0x4bf   :  { %v766_v30 = vsub.f32 2.0, %v765_v29 }
 0x4c1   :  { %v767_v31 = vmul.f32 %v3339_v27, %v766_v30  ;;  %v4122_v27 = vsel %vm197_vm9, 0.0, %v3678_v44 }
 0x4c3   :  { %v768_v32 = vmul.f32 %v3335_v7, %v767_v31 }
 0x4c5   :  { %v769_v33 = vpack.c.bf16 %v768_v32, %v768_v32  ;;  %v4125_v32 = vld [vmem:[#allocation16] ss:$0 sm:$0xff] }
 0x4c7   :  { %3053 = vmatmul.mubr.msk.bf16.vlgmr.msra.gmra.mrb[16].mxu0 %vm754_vm6, %v769_v33 }
 0x4c8   :  { %3064 = vmatprep.mubr.msk.bf16.mxu0 %vm3676_vm2, %v3675_v8 }
 0x524   :  { %v880_v23 = vpop.xlane.xlu1 %879 }
 0x525   :  { %3340 = vrcp.f32 %v880_v23 }
 0x528   :  { %v889_v24 = vpop.permute.xlu1 %888 }
 0x529   :  { %v894_v28 = vsel %vm773_vm7, %v889_v24, 0 }
 0x52a   :  { %3063 = vmatpush3.bf16.msra.mxu0 %v894_v28 }
 0x52b   :  { %3074 = vmatprep.subr.bf16.mxu0 %v3675_v8 }
 0x52c   :  { %v1153_v61 = vpop.permute.xlu1 %1152 }
 0x52d   :  { %v1158_v63 = vsel %vm339_vm1, %v1153_v61, 0 }
 0x52f   :  { %v3341_v36 = vpop.eup %3340 }
 0x530   :  { %v882_v37 = vmul.f32 %v3341_v36, %v880_v23  ;;  %v1150_v0 = vpop.permute.xlu1 %1149 }
 0x532   :  { %v883_v38 = vsub.f32 2.0, %v882_v37 }
 0x534   :  { %v884_v39 = vmul.f32 %v3341_v36, %v883_v38 }
 0x536   :  { %v885_v41 = vmul.f32 %v3337_v15, %v884_v39  ;;  %v503_v15 = vsub.f32 %v3940_v4, %v3990_v17 }
 0x538   :  { %v886_v46 = vpack.c.bf16 %v885_v41, %v885_v41 }
 0x53a   :  { %3065 = vmatmul.mubr.msk.bf16.vlgmr.msra.gmra.mrb[20].mxu0 %vm754_vm6, %v886_v46 }
 0x53b   :  { %3075 = vmatpush3.bf16.msra.mxu0 %v4080_v43  ;;  %3076 = vmatprep.mubr.msk.bf16.mxu0 %vm3676_vm2, %v3675_v8 }
 0x53c   :  { %3086 = vmatprep.subr.bf16.mxu0 %v3675_v8 }
 0x59a   :  { %v811_v49 = vpop.f32.mrb[16].mxu0 }
 0x59b   :  { %v817_v50 = vpack.c.bf16 %v811_v49, %v811_v49  ;;  %v3054_v51 = vpop.f32.mrb[17].mxu0 }
 0x59c   :  { %v814_v52 = vpop.f32.mrb[18].mxu0 }
 0x59d   :  { %v3055_v54 = vpop.f32.mrb[19].mxu0  ;;  %3077 = vmatmul.mubr.msk.bf16.vlgmr.msra.gmra.mrb[24].mxu0 %vm339_vm1, %v817_v50 }
 0x59e   :  { %3087 = vmatpush3.bf16.msra.mxu0 %v1105_v53  ;;  %3088 = vmatprep.mubr.msk.bf16.mxu0 %vm3676_vm2, %v3675_v8 }
 0x59f   :  { %3098 = vmatprep.subr.bf16.mxu0 %v3675_v8 }
 0x60d   :  { %v930_v55 = vpop.f32.mrb[20].mxu0 }
 0x60e   :  { %v936_v56 = vpack.c.bf16 %v930_v55, %v930_v55  ;;  %v3066_v57 = vpop.f32.mrb[21].mxu0 }
 0x60f   :  { %v933_v58 = vpop.f32.mrb[22].mxu0 }
 0x610   :  { %v3067_v60 = vpop.f32.mrb[23].mxu0  ;;  %3071 = vmatmul.mubr.msk.bf16.vlgmr.msra.gmra.mrb[8].mxu1 %vm339_vm1, %v936_v56 }
 0x611   :  { %3081 = vmatpush3.bf16.xpose.msra.mxu1 %v1042_v59  ;;  %3082 = vmatprep.mubr.msk.bf16.mxu1 %vm3676_vm2, %v3675_v8  ;;  %v502_v60 = vsub.f32 %v3938_v3, %v3992_v18 }
 0x612   :  { %3092 = vmatprep.subr.bf16.mxu1 %v3675_v8 }
 0x613   :  { %v504_v61 = vmul.f32 %v502_v60, %v4112_v14 }
 0x618   :  { %3083 = vmatmul.mubr.msk.bf16.vlgmr.msra.gmra.mrb[12].mxu1 %vm339_vm1, %v1035_v25  ;;  %v505_v25 = vmul.f32 %v503_v15, %v4112_v14 }
 0x619   :  { %3093 = vmatpush3.bf16.xpose.msra.mxu1 %v1158_v63  ;;  %3094 = vmatprep.mubr.msk.bf16.mxu1 %vm3676_vm2, %v3675_v8  ;;  %v506_v63 = vadd.f32 %v504_v61, %v3992_v18 }
 0x61a   :  { %3104 = vmatprep.subr.bf16.mxu1 %v3675_v8  ;;  %v507_v29 = vadd.f32 %v3990_v17, %v505_v25 }
 0x61c   :  { %v4131_v40 = vadd.f32 %v507_v29, %v3940_v4 }
 0x61e   :  { %v513_v17 = vsel %vm333_vm0, %v4131_v40, 0.0 }
 0x620   :  { %3095 = vmatmul.mubr.msk.bf16.vlgmr.msra.gmra.mrb[16].mxu1 %vm339_vm1, %v1150_v0  ;;  %v508_v0 = vadd.f32 %v506_v63, %v3938_v3 }
 0x621   :  { %3105 = vmatpush3.bf16.msra.mxu1 %v4071_v21  ;;  %3106 = vmatprep.mubr.msk.bf16.mxu1 %vm3676_vm2, %v3675_v8 }
 0x622   :  { %3116 = vmatprep.subr.bf16.mxu1 %v3675_v8 }
 0x670   :  { %v1029_v1 = vpop.f32.mrb[24].mxu0 }
 0x671   :  { %v3078_v5 = vpop.f32.mrb[25].mxu0 }
 0x672   :  { %v1032_v6 = vpop.f32.mrb[26].mxu0 }
 0x673   :  { %v3079_v7 = vpop.f32.mrb[27].mxu0 }
 0x6e3   :  { %v980_v13 = vpop.f32.mrb[8].mxu1 }
 0x6e4   :  { %v1030_v16 = vadd.f32 %v1029_v1, %v980_v13  ;;  %v3072_v19 = vpop.f32.mrb[9].mxu1  ;;  %v510_v1 = vsel %vm333_vm0, %v508_v0, 0.0 }
 0x6e5   :  { %v983_v20 = vpop.f32.mrb[10].mxu1 }
 0x6e6   :  { %v3073_v22 = vpop.f32.mrb[11].mxu1  ;;  %v1353_v28 = vadd.f32 %v4125_v32, %v1030_v16 }
 0x6e8   :  { %v4136_v38 = vadd.f32 %v1353_v28, %v3938_v3 }
 0x6ea   :  { %v1357_v47 = vsel %vm333_vm0, %v4136_v38, 0.0 }
 0x6eb   :  { %v1078_v26 = vpop.f32.mrb[12].mxu1 }
 0x6ec   :  { %v1084_v30 = vmul.f32 0.25, %v1078_v26  ;;  %v3084_v31 = vpop.f32.mrb[13].mxu1 }
 0x6ed   :  { %v1081_v33 = vpop.f32.mrb[14].mxu1 }
 0x6ee   :  { %v3085_v23 = vpop.f32.mrb[15].mxu1  ;;  %v1085_v24 = vadd.f32 %v1084_v30, %v4122_v27 }
 0x6f0   :  { %v1086_v36 = vsel %vm754_vm6, %v1085_v24, -inf }
 0x6f1   :  { %1087 = vmax.xlane.f32.xlu1 %v1086_v36 }
 0x6f3   :  { %v1194_v42 = vpop.f32.mrb[16].mxu1 }
 0x6f4   :  { %v1200_v44 = vmul.f32 0.25, %v1194_v42  ;;  %v3096_v37 = vpop.f32.mrb[17].mxu1 }
 0x6f5   :  { %514 = vadd.xlane.f32.xlu1 %v513_v17  ;;  %v1197_v39 = vpop.f32.mrb[18].mxu1 }
 0x6f6   :  { %v3097_v41 = vpop.f32.mrb[19].mxu1  ;;  %v1201_v46 = vadd.f32 %v1200_v44, %v4122_v27 }
 0x6f8   :  { %v1202_v49 = vsel %vm754_vm6, %v1201_v46, -inf }
 0x6f9   :  { %1358 = vadd.xlane.f32.xlu1 %v1357_v47  ;;  %1203 = vmax.xlane.f32.xlu0 %v1202_v49 }
 0x77e   :  { %v1088_v50 = vpop.xlane.xlu1 %1087 }
 0x77f   :  { %v1089_v51 = vsub.f32 %v1085_v24, %v1088_v50 }
 0x781   :  { %v1090_v52 = vmul.f32 1.442695, %v1089_v51 }
 0x782   :  { %v515_v41 = vpop.xlane.xlu1 %514 }
 0x783   :  { %3342 = vpow2.f32 %v1090_v52  ;;  %v518_v52 = vmul.f32 0.03125, %v515_v41  ;;  %v4199_v41 = vld [vmem:[#allocation10] ss:$0 sm:$0xff] }
 0x786   :  { %v1204_v53 = vpop.xlane.xlu0 %1203 }
 0x787   :  { %v1205_v54 = vsub.f32 %v1201_v46, %v1204_v53 }
 0x789   :  { %v1206_v55 = vmul.f32 1.442695, %v1205_v54 }
 0x78b   :  { %3344 = vpow2.f32 %v1206_v55 }
 0x78d   :  { %v3343_v56 = vpop.eup %3342 }
 0x78e   :  { %v1092_v57 = vsel %vm754_vm6, %v3343_v56, 0.0 }
 0x78f   :  { %1093 = vadd.xlane.f32.xlu0 %v1092_v57 }
 0x795   :  { %v3345_v58 = vpop.eup %3344 }
 0x796   :  { %v1208_v59 = vsel %vm754_vm6, %v3345_v58, 0.0 }
 0x797   :  { %1209 = vadd.xlane.f32.xlu0 %v1208_v59 }
 0x7ad   :  { %1218 = vrot.lane.b32.xlu0 %v4088_v48, %s3677_s15 }
 0x7cc   :  { %511 = vadd.xlane.f32.xlu0 %v510_v1 }
 0x81c   :  { %v1094_v5 = vpop.xlane.xlu0 %1093 }
 0x81d   :  { %3346 = vrcp.f32 %v1094_v5 }
 0x824   :  { %v1210_v6 = vpop.xlane.xlu0 %1209 }
 0x825   :  { %3348 = vrcp.f32 %v1210_v6 }
 0x827   :  { %v3347_v7 = vpop.eup %3346 }
 0x828   :  { %v1096_v9 = vmul.f32 %v3347_v7, %v1094_v5  ;;  %v1219_v13 = vpop.permute.xlu0 %1218 }
 0x829   :  { %v1224_v18 = vsel %vm773_vm7, %v1219_v13, 0 }
 0x82a   :  { %v1097_v10 = vsub.f32 2.0, %v1096_v9 }
 0x82c   :  { %v1098_v48 = vmul.f32 %v3347_v7, %v1097_v10 }
 0x82e   :  { %v1099_v11 = vmul.f32 %v3343_v56, %v1098_v48  ;;  %v1359_v56 = vpop.xlane.xlu1 %1358  ;;  %v4186_v48 = vld [vmem:[%s4623_s4 + $0x8] sm:$0xff]  }
 0x82f   :  { %v3349_v12 = vpop.eup %3348  ;;  %v1363_v59 = vmul.f32 0.03125, %v1359_v56 }
 0x830   :  { %v1100_v15 = vpack.c.bf16 %v1099_v11, %v1099_v11  ;;  %v1212_v16 = vmul.f32 %v3349_v12, %v1210_v6 }
 0x831   :  { %v1365_v63 = vsub.f32 %v4136_v38, %v1363_v59  ;;  %v4180_v38 = vld [vmem:[%s4623_s4] sm:$0xff]  }
 0x832   :  { %v1213_v19 = vsub.f32 2.0, %v1212_v16  ;;  %3089 = vmatmul.mubr.msk.bf16.vlgmr.msra.gmra.mrb[28].mxu0 %vm754_vm6, %v1100_v15 }
 0x833   :  { %3099 = vmatpush3.bf16.msra.mxu0 %v1224_v18  ;;  %3100 = vmatprep.mubr.msk.bf16.mxu0 %vm3676_vm2, %v3675_v8 }
 0x834   :  { %v1214_v3 = vmul.f32 %v3349_v12, %v1213_v19  ;;  %3110 = vmatprep.subr.bf16.mxu0 %v3675_v8 }
 0x836   :  { %v1215_v20 = vmul.f32 %v3345_v58, %v1214_v3  ;;  %v520_v58 = vsub.f32 %v4131_v40, %v518_v52 }
 0x838   :  { %v1216_v22 = vpack.c.bf16 %v1215_v20, %v1215_v20  ;;  %v522_v5 = vmul.f32 %v520_v58, %v520_v58 }
 0x83a   :  { %3101 = vmatmul.mubr.msk.bf16.vlgmr.msra.gmra.mrb[32].mxu0 %vm754_vm6, %v1216_v22 }
 0x83b   :  { %3111 = vmatpush3.bf16.msra.mxu0 %v4080_v43  ;;  %3112 = vmatprep.mubr.msk.bf16.mxu0 %vm3676_vm2, %v3675_v8 }
 0x83c   :  { %3124 = vmatprep.subr.bf16.mxu0 %v3675_v8 }
 0x859   :  { %v512_v39 = vpop.xlane.xlu0 %511 }
 0x85a   :  { %v517_v46 = vmul.f32 0.03125, %v512_v39 }
 0x85c   :  { %v519_v53 = vsub.f32 %v508_v0, %v517_v46  ;;  %v526_v0 = vsel %vm333_vm0, %v522_v5, 0.0  ;;  %v4253_v5 = vld [vmem:[%s4592_s19 + $0x28] sm:$0xff]  }
 0x85e   :  { %v521_v61 = vmul.f32 %v519_v53, %v519_v53 }
 0x860   :  { %v523_v1 = vsel %vm333_vm0, %v521_v61, 0.0  ;;  %v4225_v61 = vld [vmem:[%s4592_s19 + $0x8] sm:$0xff]  }
 0x905   :  { %v1141_v25 = vpop.f32.mrb[28].mxu0 }
 0x906   :  { %v1147_v26 = vpack.c.bf16 %v1141_v25, %v1141_v25  ;;  %v3090_v29 = vpop.f32.mrb[29].mxu0 }
 0x907   :  { %v1144_v30 = vpop.f32.mrb[30].mxu0 }
 0x908   :  { %v3091_v31 = vpop.f32.mrb[31].mxu0  ;;  %3113 = vmatmul.mubr.msk.bf16.vlgmr.msra.gmra.mrb[36].mxu0 %vm339_vm1, %v1147_v26 }
 0x909   :  { %3140 = vmatprep.mubr.msk.bf16.mxu0 %vm3676_vm2, %v3675_v8 }
 0x90d   :  { %v1260_v33 = vpop.f32.mrb[32].mxu0 }
 0x90e   :  { %v1266_v23 = vpack.c.bf16 %v1260_v33, %v1260_v33  ;;  %v3102_v24 = vpop.f32.mrb[33].mxu0 }
 0x90f   :  { %v1263_v28 = vpop.f32.mrb[34].mxu0 }
 0x910   :  { %v3103_v36 = vpop.f32.mrb[35].mxu0  ;;  %3107 = vmatmul.mubr.msk.bf16.vlgmr.msra.gmra.mrb[20].mxu1 %vm339_vm1, %v1266_v23  ;;  %v4190_v23 = vld [vmem:[#allocation17] ss:$0 sm:$0xff] }
 0x911   :  { %3120 = vmatprep.mubr.msk.bf16.mxu1 %vm3676_vm2, %v3675_v8  ;;  %3117 = vmatpush3.bf16.msra.mxu1 %v4180_v38  ;;  %v4192_v36 = vld [vmem:[#allocation8] ss:$0 sm:$0xff] }
 0x912   :  { %3118 = vmatprep.subr.bf16.mxu1 %v3675_v8 }
 0x915   :  { %3119 = vmatpush3.bf16.msra.mxu1 %v4186_v48 }
 0x9db   :  { %v1347_v42 = vpop.f32.mrb[36].mxu0 }
 0x9dc   :  { %v3114_v44 = vpop.f32.mrb[37].mxu0 }
 0x9dd   :  { %v1350_v37 = vpop.f32.mrb[38].mxu0  ;;  %v4195_v44 = vld [vmem:[#allocation19] ss:$0 sm:$0xff] }
 0x9de   :  { %v3115_v17 = vpop.f32.mrb[39].mxu0 }
 0x9e3   :  { %v1304_v47 = vpop.f32.mrb[20].mxu1 }
 0x9e4   :  { %v1348_v49 = vadd.f32 %v1347_v42, %v1304_v47  ;;  %v3108_v50 = vpop.f32.mrb[21].mxu1 }
 0x9e5   :  { %v1307_v51 = vpop.f32.mrb[22].mxu1 }
 0x9e6   :  { %v1354_v54 = vadd.f32 %v4125_v32, %v1348_v49  ;;  %v3109_v55 = vpop.f32.mrb[23].mxu1  ;;  %v1367_v32 = vmul.f32 %v1365_v63, %v1365_v63 }
 0x9e8   :  { %v1356_v57 = vadd.f32 %v1354_v54, %v3940_v4  ;;  %v1369_v6 = vsel %vm333_vm0, %v1367_v32, 0.0  ;;  %v4267_v32 = vld [vmem:[%s4592_s19 + $0x38] sm:$0xff]  }
 0x9ea   :  { %v1360_v60 = vsel %vm333_vm0, %v1356_v57, 0.0 }
 0x9eb   :  { %1361 = vadd.xlane.f32.xlu1 %v1360_v60  ;;  %v4218_v60 = vld [vmem:[%s4592_s19] sm:$0xff]  }
 0x9ec   :  { %3125 = vmatpush3.bf16.msra.mxu0 %v4218_v60 }
 0x9ed   :  { %3126 = vmatprep.subr.bf16.mxu0 %v3675_v8 }
 0x9ef   :  { %524 = vadd.xlane.f32.xlu1 %v523_v1  ;;  %v4246_v1 = vld [vmem:[%s4592_s19 + $0x20] sm:$0xff]  }
 0x9f0   :  { %3127 = vmatpush3.bf16.msra.mxu0 %v4225_v61 }
 0x9f1   :  { %3128 = vmatprep.subr.bf16.mxu0 %v3675_v8 }
 0x9f3   :  { %527 = vadd.xlane.f32.xlu1 %v526_v0  ;;  %v4260_v0 = vld [vmem:[%s4592_s19 + $0x30] sm:$0xff]  }
 0x9f7   :  { %1370 = vadd.xlane.f32.xlu1 %v1369_v6  ;;  %v4274_v6 = vld [vmem:[%s4591_s18] ss:$0 sm:$0xff] }
 0xa78   :  { %v1362_v4 = vpop.xlane.xlu1 %1361 }
 0xa79   :  { %v1364_v40 = vmul.f32 0.03125, %v1362_v4 }
 0xa7b   :  { %v1366_v7 = vsub.f32 %v1356_v57, %v1364_v40 }
 0xa7c   :  { %v525_v11 = vpop.xlane.xlu1 %524 }
 0xa7d   :  { %v1368_v9 = vmul.f32 %v1366_v7, %v1366_v7  ;;  %v529_v16 = vmul.f32 0.03125, %v525_v11 }
 0xa7f   :  { %v1372_v10 = vsel %vm333_vm0, %v1368_v9, 0.0  ;;  %v531_v3 = vadd.f32 1e-12, %v529_v16 }
 0xa80   :  { %1373 = vadd.xlane.f32.xlu1 %v1372_v10  ;;  %v528_v12 = vpop.xlane.xlu1 %527 }
 0xa81   :  { %v530_v19 = vmul.f32 0.03125, %v528_v12 }
 0xa83   :  { %v532_v20 = vadd.f32 1e-12, %v530_v19 }
 0xa84   :  { %v1371_v13 = vpop.xlane.xlu1 %1370 }
 0xa85   :  { %v1375_v15 = vmul.f32 0.03125, %v1371_v13 }
 0xa87   :  { %v1377_v18 = vadd.f32 1e-12, %v1375_v15 }
 0xa89   :  { %3350 = vrsqrt.f32 %v1377_v18 }
 0xa8a   :  { %3352 = vrsqrt.f32 %v531_v3 }
 0xa8b   :  { %3354 = vrsqrt.f32 %v532_v20 }
 0xa93   :  { %v3351_v29 = vpop.eup %3350 }
 0xa94   :  { %v3353_v30 = vpop.eup %3352  ;;  %v1381_v33 = vmul.f32 %v3351_v29, %v1365_v63  ;;  %v4239_v63 = vld [vmem:[%s4592_s19 + $0x18] sm:$0xff]  }
 0xa95   :  { %v3355_v31 = vpop.eup %3354  ;;  %v535_v24 = vmul.f32 %v3353_v30, %v519_v53 }
 0xa96   :  { %v536_v28 = vmul.f32 %v3355_v31, %v520_v58  ;;  %v1383_v42 = vmul.f32 %v4190_v23, %v1381_v33 }
 0xa97   :  { %v537_v37 = vmul.f32 %v4192_v36, %v535_v24 }
 0xa98   :  { %v538_v17 = vmul.f32 %v4192_v36, %v536_v28  ;;  %v1385_v47 = vadd.f32 %v4195_v44, %v1383_v42 }
 0xa99   :  { %v539_v50 = vadd.f32 %v4199_v41, %v537_v37 }
 0xa9a   :  { %v540_v51 = vadd.f32 %v4199_v41, %v538_v17  ;;  %v1389_v53 = vmul.f32 0.3, %v1385_v47 }
 0xa9b   :  { %v1387_v54 = vmul.f32 0.7, %v539_v50 }
 0xa9c   :  { %v1388_v55 = vmul.f32 0.7, %v540_v51 }
 0xa9d   :  { %v4206_v57 = vadd.f32 %v1389_v53, %v1387_v54 }
 0xb0d   :  { %v1374_v22 = vpop.xlane.xlu1 %1373 }
 0xb0e   :  { %v1376_v25 = vmul.f32 0.03125, %v1374_v22 }
 0xb10   :  { %v1378_v26 = vadd.f32 1e-12, %v1376_v25 }
 0xb12   :  { %3356 = vrsqrt.f32 %v1378_v26 }
 0xb1c   :  { %v3357_v39 = vpop.eup %3356 }
 0xb1d   :  { %v1382_v46 = vmul.f32 %v3357_v39, %v1366_v7 }
 0xb1f   :  { %v1384_v49 = vmul.f32 %v4190_v23, %v1382_v46 }
 0xb21   :  { %v1386_v52 = vadd.f32 %v4195_v44, %v1384_v49 }
 0xb23   :  { %v1390_v56 = vmul.f32 0.3, %v1386_v52 }
 0xb25   :  { %v4208_v58 = vadd.f32 %v1390_v56, %v1388_v55 }
 0xb27   :  { %v1393_v59 = vpack.c.bf16 %v4208_v58, %v4206_v57 }
 0xb29   :  { %3121 = vmatmul.mubr.msk.bf16.vlgmr.msra.gmra.mrb[24].mxu1 %vm333_vm0, %v1393_v59 }
 0xb2a   :  { %3148 = vmatprep.mubr.msk.f32.mxu1 %vm339_vm1, %v3932_v2  ;;  %v4232_v2 = vld [vmem:[%s4592_s19 + $0x10] sm:$0xff]  }
 0xb2b   :  { %3129 = vmatpush3.bf16.msra.mxu0 %v4232_v2 }
 0xb2c   :  { %3130 = vmatprep.subr.bf16.mxu0 %v3675_v8 }
 0xb2f   :  { %3131 = vmatpush3.bf16.msra.mxu0 %v4239_v63 }
 0xb30   :  { %3132 = vmatprep.subr.bf16.mxu0 %v3675_v8 }
 0xb33   :  { %3133 = vmatpush3.bf16.msra.mxu0 %v4246_v1 }
 0xb34   :  { %3134 = vmatprep.subr.bf16.mxu0 %v3675_v8 }
 0xb37   :  { %3135 = vmatpush3.bf16.msra.mxu0 %v4253_v5 }
 0xb38   :  { %3136 = vmatprep.subr.bf16.mxu0 %v3675_v8 }
 0xb3b   :  { %3137 = vmatpush3.bf16.msra.mxu0 %v4260_v0 }
 0xb3c   :  { %3138 = vmatprep.subr.bf16.mxu0 %v3675_v8 }
 0xb3f   :  { %3139 = vmatpush3.bf16.msra.mxu0 %v4267_v32 }
 0xb40   :  { %3182 = vmatprep.subr.bf16.mxu0 %v3675_v8 }
 0xbfc   :  { %v1443_v4 = vpop.f32.mrb[24].mxu1 }
 0xbfd   :  { %v4277_v40 = vadd.f32 %v4274_v6, %v1443_v4  ;;  %v3122_v7 = vpop.f32.mrb[25].mxu1 }
 0xbfe   :  { %v1446_v9 = vpop.f32.mrb[26].mxu1 }
 0xbff   :  { %v1452_v10 = vmul.f32 0.70710677, %v4277_v40  ;;  %v1447_v11 = vadd.f32 %v4274_v6, %v1446_v9  ;;  %v3123_v12 = vpop.f32.mrb[27].mxu1 }
 0xc01   :  { %v1458_v13 = vand.u32 2147483647, %v1452_v10  ;;  %v1453_v15 = vmul.f32 0.70710677, %v1447_v11  ;;  %vm1454_vm10 = vcmp.ge.f32.partialorder %v1452_v10, 0.0 }
 0xc03   :  { %v1460_v16 = vmul.f32 0.3275911, %v1458_v13  ;;  %v1459_v19 = vand.u32 2147483647, %v1453_v15  ;;  %v1490_v26 = vsub.f32 0.0, %v1458_v13  ;;  %vm1455_vm11 = vcmp.ge.f32.partialorder %v1453_v15, 0.0 }
 0xc04   :  { %v4289_v15 = vld [vmem:[%s4593_s20] ss:$0 sm:$0xff] }
 0xc05   :  { %v1462_v18 = vadd.f32 1.0, %v1460_v16  ;;  %v1461_v3 = vmul.f32 0.3275911, %v1459_v19  ;;  %v1491_v24 = vsub.f32 0.0, %v1459_v19  ;;  %v1492_v28 = vmul.f32 %v1490_v26, %v1458_v13 }
 0xc06   :  { %v3679_v26 = vmov -1.0  }
 0xc07   :  { %3358 = vrcp.f32 %v1462_v18  ;;  %v1463_v20 = vadd.f32 1.0, %v1461_v3  ;;  %v1493_v46 = vmul.f32 %v1491_v24, %v1459_v19  ;;  %v1494_v47 = vmul.f32 1.442695, %v1492_v28 }
 0xc08   :  { %v1457_v28 = vsel %vm1455_vm11, 1.0, %v3679_v26 }
 0xc09   :  { %3360 = vrcp.f32 %v1463_v20  ;;  %v1496_v53 = vmul.f32 1.442695, %v1493_v46 }
 0xc0a   :  { %3362 = vpow2.f32 %v1494_v47 }
 0xc0b   :  { %3364 = vpow2.f32 %v1496_v53 }
 0xc11   :  { %v3359_v22 = vpop.eup %3358 }
 0xc12   :  { %v1466_v25 = vmul.f32 %v3359_v22, %v1462_v18 }
 0xc13   :  { %v3361_v29 = vpop.eup %3360 }
 0xc14   :  { %v1468_v30 = vsub.f32 2.0, %v1466_v25  ;;  %v1467_v31 = vmul.f32 %v3361_v29, %v1463_v20  ;;  %v3363_v18 = vpop.eup %3362 }
 0xc16   :  { %v1470_v33 = vmul.f32 %v3359_v22, %v1468_v30  ;;  %v1469_v42 = vsub.f32 2.0, %v1467_v31  ;;  %v3365_v22 = vpop.eup %3364 }
 0xc18   :  { %v1472_v37 = vmul.f32 1.0614054, %v1470_v33  ;;  %v1471_v17 = vmul.f32 %v3361_v29, %v1469_v42  ;;  %v1456_v29 = vsel %vm1454_vm10, 1.0, %v3679_v26 }
 0xc1a   :  { %v1474_v39 = vadd.f32 -1.4531521, %v1472_v37  ;;  %v1473_v49 = vmul.f32 1.0614054, %v1471_v17 }
 0xc1c   :  { %v1476_v50 = vmul.f32 %v1474_v39, %v1470_v33  ;;  %v1475_v51 = vadd.f32 -1.4531521, %v1473_v49  ;;  %v1451_v39 = vmul.f32 0.5, %v1447_v11 }
 0xc1e   :  { %v1478_v52 = vadd.f32 1.4214138, %v1476_v50  ;;  %v1477_v54 = vmul.f32 %v1475_v51, %v1471_v17 }
 0xc20   :  { %v1480_v55 = vmul.f32 %v1478_v52, %v1470_v33  ;;  %v1479_v56 = vadd.f32 1.4214138, %v1477_v54 }
 0xc22   :  { %v1482_v59 = vadd.f32 -0.28449672, %v1480_v55  ;;  %v1481_v4 = vmul.f32 %v1479_v56, %v1471_v17 }
 0xc24   :  { %v1484_v7 = vmul.f32 %v1482_v59, %v1470_v33  ;;  %v1483_v9 = vadd.f32 -0.28449672, %v1481_v4 }
 0xc26   :  { %v1486_v12 = vadd.f32 0.2548296, %v1484_v7  ;;  %v1485_v13 = vmul.f32 %v1483_v9, %v1471_v17 }
 0xc28   :  { %v1488_v16 = vmul.f32 %v1486_v12, %v1470_v33  ;;  %v1487_v19 = vadd.f32 0.2548296, %v1485_v13  ;;  %v1450_v33 = vmul.f32 0.5, %v4277_v40 }
 0xc2a   :  { %v1498_v3 = vmul.f32 %v3363_v18, %v1488_v16  ;;  %v1489_v20 = vmul.f32 %v1487_v19, %v1471_v17 }
 0xc2c   :  { %v1500_v25 = vsub.f32 1.0, %v1498_v3  ;;  %v1499_v30 = vmul.f32 %v3365_v22, %v1489_v20 }
 0xc2e   :  { %v1502_v31 = vmul.f32 %v1500_v25, %v1456_v29  ;;  %v1501_v24 = vsub.f32 1.0, %v1499_v30 }
 0xc30   :  { %v1504_v42 = vadd.f32 1.0, %v1502_v31  ;;  %v1503_v37 = vmul.f32 %v1501_v24, %v1457_v28  ;;  %v4302_v31 = vld [vmem:[%s4594_s21] ss:$0 sm:$0xff] }
 0xc32   :  { %v1505_v46 = vadd.f32 1.0, %v1503_v37  ;;  %v1506_v10 = vmul.f32 %v1504_v42, %v1450_v33  ;;  %v4307_v42 = vld [vmem:[%s4595_s22] ss:$0 sm:$0xff] }
 0xc34   :  { %v1507_v47 = vmul.f32 %v1505_v46, %v1451_v39 }
 0xc36   :  { %v1508_v17 = vpack.c.bf16 %v1507_v47, %v1506_v10 }
 0xc38   :  { %3141 = vmatmul.mubr.bf16.vlgmr.msra.gmra.mrb[40].mxu0 %v1508_v17 }
 0xc39   :  { %3184 = vmatprep.mubr.msk.bf16.mxu0 %vm3676_vm2, %v3675_v8 }
 0xd0b   :  { %v1591_v49 = vpop.f32.mrb[40].mxu0 }
 0xd0c   :  { %v1592_v50 = vadd.f32 %v4289_v15, %v1591_v49  ;;  %v3142_v51 = vpop.f32.mrb[41].mxu0 }
 0xd0d   :  { %v1594_v52 = vpop.f32.mrb[42].mxu0  ;;  %v3407_v51 = vld [vmem:[%s4621_s5] sm:$0xff] }
 0xd0e   :  { %v1595_v40 = vadd.f32 %v4289_v15, %v1594_v52  ;;  %v3143_v11 = vpop.f32.mrb[43].mxu0  ;;  %v1598_v53 = vadd.f32 %v1592_v50, %v4206_v57  ;;  %v3406_v50 = vld [vmem:[%s4620_s10 + $0x8] sm:$0xff] }
 0xd10   :  { %v1600_v54 = vsel %vm333_vm0, %v1598_v53, 0.0  ;;  %v1599_v55 = vadd.f32 %v1595_v40, %v4208_v58 }
 0xd11   :  { %1601 = vadd.xlane.f32.xlu1 %v1600_v54  ;;  %v3409_v54 = vld [vmem:[%s4622_s26] sm:$0xff]  }
 0xd12   :  { %v1603_v56 = vsel %vm333_vm0, %v1599_v55, 0.0 }
 0xd13   :  { %1604 = vadd.xlane.f32.xlu0 %v1603_v56  ;;  %v3411_v56 = vld [vmem:[%s4582_s9] sm:$0xff]  }
 0xd9e   :  { %v1602_v59 = vpop.xlane.xlu1 %1601 }
 0xd9f   :  { %v1606_v4 = vmul.f32 0.03125, %v1602_v59  ;;  %v3412_v59 = vld [vmem:[%s4582_s9 + $0x8] sm:$0xff]  }
 0xda0   :  { %v1605_v7 = vpop.xlane.xlu0 %1604 }
 0xda1   :  { %v1608_v9 = vsub.f32 %v1598_v53, %v1606_v4  ;;  %v1607_v12 = vmul.f32 0.03125, %v1605_v7  ;;  %v3408_v53 = vld [vmem:[%s4621_s5 + $0x8] sm:$0xff] }
 0xda3   :  { %v1609_v13 = vsub.f32 %v1599_v55, %v1607_v12  ;;  %v1610_v16 = vmul.f32 %v1608_v9, %v1608_v9  ;;  %v3410_v55 = vld [vmem:[%s4622_s26 + $0x8] sm:$0xff]  }
 0xda5   :  { %v1612_v18 = vsel %vm333_vm0, %v1610_v16, 0.0  ;;  %v1611_v19 = vmul.f32 %v1609_v13, %v1609_v13 }
 0xda6   :  { %1613 = vadd.xlane.f32.xlu1 %v1612_v18 }
 0xda7   :  { %v1615_v57 = vsel %vm333_vm0, %v1611_v19, 0.0 }
 0xda8   :  { %1616 = vadd.xlane.f32.xlu0 %v1615_v57  ;;  %v4370_v57 = vld [vmem:[#allocation13] ss:$0 sm:$0xff] }
 0xe33   :  { %v1614_v3 = vpop.xlane.xlu1 %1613 }
 0xe34   :  { %v1618_v58 = vmul.f32 0.03125, %v1614_v3 }
 0xe35   :  { %v1617_v20 = vpop.xlane.xlu0 %1616 }
 0xe36   :  { %v1620_v22 = vadd.f32 1e-12, %v1618_v58  ;;  %v1619_v25 = vmul.f32 0.03125, %v1617_v20 }
 0xe38   :  { %3366 = vrsqrt.f32 %v1620_v22  ;;  %v1621_v29 = vadd.f32 1e-12, %v1619_v25 }
 0xe3a   :  { %3368 = vrsqrt.f32 %v1621_v29 }
 0xe42   :  { %v3367_v30 = vpop.eup %3366 }
 0xe43   :  { %v1624_v24 = vmul.f32 %v3367_v30, %v1608_v9 }
 0xe44   :  { %v3369_v28 = vpop.eup %3368 }
 0xe45   :  { %v1626_v37 = vmul.f32 %v4302_v31, %v1624_v24  ;;  %v1625_v33 = vmul.f32 %v3369_v28, %v1609_v13 }
 0xe47   :  { %v1628_v39 = vadd.f32 %v4307_v42, %v1626_v37  ;;  %v1627_v46 = vmul.f32 %v4302_v31, %v1625_v33 }
 0xe49   :  { %1630 = vst.msk [vmem:[#allocation2] sm:$0xff] %vm333_vm0, %v1628_v39  ;;  %v1629_v10 = vadd.f32 %v4307_v42, %v1627_v46 }
 0xe4b   :  { %1631 = vst.msk [vmem:[#allocation2 + $0x8] sm:$0xff] %vm333_vm0, %v1629_v10 }
 0xe50   :  { %v4315_v47 = vld [vmem:[#allocation2] sm:$0xff] }
 0xe52   :  { %v4317_v17 = vld [vmem:[#allocation2 + $0x8] sm:$0xff] }
 0xe53   :  { %v1634_v49 = vpack.c.bf16 %v4317_v17, %v4315_v47 }
 0xe55   :  { %3291 = vmatprep.subr.bf16.mxu1 %v1634_v49 }
 0xe56   :  { %3293 = vmatpush3.bf16.msra.mxu1 %v1634_v49 }
 0xe59   :  { %3149 = vmatmul.mubr.msk.f32.vlgmr.msra.gmra.mrb[28].mxu1 %vm339_vm1, %v3406_v50 }
 0xe5a   :  { %3155 = vmatprep.mubr.msk.f32.mxu1 %vm339_vm1, %v3407_v51 }
 0xf2c   :  { %v3150_v52 = vpop.f32.mrb[28].mxu1 }
 0xf2d   :  { %v1701_v40 = vpop.f32.mrb[29].mxu1 }
 0xf2e   :  { %v3294_v11 = vpack.c.bf16 %v3150_v52, %v1701_v40 }
 0xf30   :  { %3295 = vmatprep.subr.bf16.mxu1 %v3294_v11 }
 0xf31   :  { %3297 = vmatpush3.bf16.msra.mxu1 %v3294_v11 }
 0xf32   :  { %3158 = vmatprep.subr.bf16.mxu1 %v3675_v8 }
 0xf34   :  { %3156 = vmatmul.mubr.msk.f32.vlgmr.msra.gmra.mrb[30].mxu1 %vm339_vm1, %v3408_v53 }
 0xf35   :  { %3159 = vmatpush3.bf16.msra.mxu1 %v3409_v54  ;;  %3162 = vmatprep.mubr.msk.bf16.mxu1 %vm3676_vm2, %v3675_v8 }
 0xf36   :  { %3160 = vmatprep.subr.bf16.mxu1 %v3675_v8 }
 0xf39   :  { %3161 = vmatpush3.bf16.msra.mxu1 %v3410_v55 }
 0xf3a   :  { %3166 = vmatprep.subr.bf16.mxu1 %v3675_v8 }
 0xf3c   :  { %3163 = vmatmul.mubr.msk.bf16.vlgmr.msra.gmra.mrb[32].mxu1 %vm333_vm0, %v1634_v49 }
 0xf3d   :  { %3167 = vmatpush3.bf16.msra.mxu1 %v3411_v56  ;;  %3170 = vmatprep.mubr.msk.bf16.mxu1 %vm3676_vm2, %v3675_v8 }
 0xf3e   :  { %3168 = vmatprep.subr.bf16.mxu1 %v3675_v8 }
 0xf41   :  { %3169 = vmatpush3.bf16.msra.mxu1 %v3412_v59 }
 0xf42   :  { %3174 = vmatprep.subr.bf16.mxu1 %v3675_v8 }
 0xf44   :  { %3171 = vmatmul.mubr.msk.bf16.vlgmr.msra.gmra.mrb[36].mxu1 %vm333_vm0, %v1634_v49 }
 0xf45   :  { %3175 = vmatpush3.bf16.msra.mxu1 %v4014_v34  ;;  %3178 = vmatprep.mubr.msk.bf16.mxu1 %vm3676_vm2, %v3675_v8  ;;  %v3413_v34 = vld [vmem:[#allocation11] ss:$0 sm:$0xff] }
 0xf46   :  { %3176 = vmatprep.subr.bf16.mxu1 %v3675_v8 }
 0xf49   :  { %3177 = vmatpush3.bf16.msra.mxu1 %v4020_v35 }
 0xf4a   :  { %3188 = vmatprep.subr.bf16.mxu1 %v3675_v8 }
 0xf4c   :  { %3179 = vmatmul.mubr.msk.bf16.vlgmr.msra.gmra.mrb[40].mxu1 %vm333_vm0, %v1634_v49 }
 0xf4d   :  { %3190 = vmatprep.mubr.msk.bf16.mxu1 %vm3676_vm2, %v3675_v8 }
0x1007   :  { %v4365_v4 = vpop.f32.mrb[30].mxu1 }
0x1008   :  { %v4367_v7 = vpop.f32.mrb[31].mxu1 }
0x100f   :  { %v1860_v9 = vpop.f32.mrb[32].mxu1 }
0x1010   :  { %v1861_v12 = vadd.f32 %v3413_v34, %v1860_v9  ;;  %v3164_v13 = vpop.f32.mrb[33].mxu1 }
0x1011   :  { %v1863_v16 = vpop.f32.mrb[34].mxu1 }
0x1012   :  { %v1949_v18 = vpack.c.bf16 %v1861_v12, %v1861_v12  ;;  %v3165_v19 = vpop.f32.mrb[35].mxu1 }
0x1014   :  { %2063 = vrot.lane.b32.xlu0 %v1949_v18, %s3677_s15 }
0x1017   :  { %v1901_v35 = vpop.f32.mrb[36].mxu1 }
0x1018   :  { %v1902_v3 = vadd.f32 %v4370_v57, %v1901_v35  ;;  %v3172_v58 = vpop.f32.mrb[37].mxu1 }
0x1019   :  { %v1904_v20 = vpop.f32.mrb[38].mxu1 }
0x101a   :  { %v1950_v22 = vpack.c.bf16 %v1902_v3, %v1902_v3  ;;  %v3173_v25 = vpop.f32.mrb[39].mxu1 }
0x101c   :  { %v1956_v29 = vsel %vm339_vm1, %v1950_v22, 0  ;;  %2066 = vrot.lane.b32.xlu1 %v1950_v22, %s3677_s15  ;;  %v1864_v22 = vadd.f32 %v3413_v34, %v1863_v16 }
0x101d   :  { %3183 = vmatpush3.bf16.xpose.msra.mxu0 %v1956_v29 }
0x101e   :  { %3194 = vmatprep.subr.bf16.mxu0 %v3675_v8  ;;  %v4397_v25 = vpack.c.bf16 %v1864_v22, %v1864_v22 }
0x101f   :  { %v1942_v30 = vpop.f32.mrb[40].mxu1 }
0x1020   :  { %v1943_v24 = vadd.f32 %v4051_v62, %v1942_v30  ;;  %v3180_v28 = vpop.f32.mrb[41].mxu1 }
0x1021   :  { %v4377_v37 = vpop.f32.mrb[42].mxu1 }
0x1022   :  { %v1951_v33 = vpack.c.bf16 %v1943_v24, %v1943_v24  ;;  %v3181_v39 = vpop.f32.mrb[43].mxu1 }
0x1023   :  { %v1905_v39 = vadd.f32 %v4370_v57, %v1904_v20 }
0x1024   :  { %v2019_v46 = vsel %vm773_vm7, %v1951_v33, 0  ;;  %3185 = vmatmul.mubr.msk.bf16.vlgmr.msra.gmra.mrb[44].mxu0 %vm339_vm1, %v1949_v18 }
0x1025   :  { %3189 = vmatpush3.bf16.msra.mxu1 %v2019_v46  ;;  %3196 = vmatprep.mubr.msk.bf16.mxu0 %vm3676_vm2, %v3675_v8  ;;  %v2268_v46 = vpack.c.bf16 %v1905_v39, %v1905_v39 }
0x1026   :  { %3200 = vmatprep.subr.bf16.mxu1 %v3675_v8 }
0x1027   :  { %v2274_v22 = vsel %vm339_vm1, %v2268_v46, 0 }
0x1086   :  { %v2064_v62 = vpop.permute.xlu0 %2063 }
0x108e   :  { %v2067_v10 = vpop.permute.xlu1 %2066 }
0x108f   :  { %v2072_v49 = vsel %vm339_vm1, %v2067_v10, 0 }
0x1090   :  { %3195 = vmatpush3.bf16.xpose.msra.mxu0 %v2072_v49 }
0x1091   :  { %3206 = vmatprep.subr.bf16.mxu0 %v3675_v8 }
0x1097   :  { %3197 = vmatmul.mubr.msk.bf16.vlgmr.msra.gmra.mrb[48].mxu0 %vm339_vm1, %v2064_v62 }
0x1098   :  { %3207 = vmatpush3.bf16.msra.mxu0 %v4071_v21  ;;  %3208 = vmatprep.mubr.msk.bf16.mxu0 %vm3676_vm2, %v3675_v8 }
0x1099   :  { %3218 = vmatprep.subr.bf16.mxu0 %v3675_v8 }
0x10f7   :  { %v1992_v50 = vpop.f32.mrb[44].mxu0 }
0x10f8   :  { %v1998_v51 = vmul.f32 0.25, %v1992_v50  ;;  %v3186_v52 = vpop.f32.mrb[45].mxu0 }
0x10f9   :  { %v1995_v40 = vpop.f32.mrb[46].mxu0 }
0x10fa   :  { %v3187_v11 = vpop.f32.mrb[47].mxu0  ;;  %v1999_v53 = vadd.f32 %v1998_v51, %v4045_v45 }
0x10fc   :  { %v2000_v54 = vsel %vm754_vm6, %v1999_v53, -inf }
0x10fd   :  { %2001 = vmax.xlane.f32.xlu1 %v2000_v54 }
0x116a   :  { %v2108_v55 = vpop.f32.mrb[48].mxu0 }
0x116b   :  { %v2114_v56 = vmul.f32 0.25, %v2108_v55  ;;  %v3198_v59 = vpop.f32.mrb[49].mxu0 }
0x116c   :  { %v2111_v9 = vpop.f32.mrb[50].mxu0 }
0x116d   :  { %v3199_v21 = vpop.f32.mrb[51].mxu0  ;;  %v2115_v12 = vadd.f32 %v2114_v56, %v4045_v45  ;;  %v3415_v56 = vld [vmem:[#allocation14] ss:$0 sm:$0xff] }
0x116e   :  { %v1946_v59 = vadd.f32 %v3415_v56, %v4377_v37 }
0x116f   :  { %v2116_v13 = vsel %vm754_vm6, %v2115_v12, -inf }
0x1170   :  { %2117 = vmax.xlane.f32.xlu0 %v2116_v13  ;;  %v4415_v9 = vpack.c.bf16 %v1946_v59, %v1946_v59 }
0x118a   :  { %v2002_v18 = vpop.xlane.xlu1 %2001 }
0x118b   :  { %v2003_v19 = vsub.f32 %v1999_v53, %v2002_v18 }
0x118d   :  { %v2004_v35 = vmul.f32 1.442695, %v2003_v19  ;;  %v2337_v19 = vsel %vm773_vm7, %v4415_v9, 0 }
0x118f   :  { %3370 = vpow2.f32 %v2004_v35 }
0x1199   :  { %v3371_v3 = vpop.eup %3370 }
0x119a   :  { %v2006_v58 = vsel %vm754_vm6, %v3371_v3, 0.0 }
0x119b   :  { %2007 = vadd.xlane.f32.xlu1 %v2006_v58 }
0x11ac   :  { %2132 = vrot.lane.b32.xlu1 %v1951_v33, %s3677_s15 }
0x11b0   :  { %2381 = vrot.lane.b32.xlu1 %v4397_v25, %s3677_s15 }
0x11fd   :  { %v2118_v45 = vpop.xlane.xlu0 %2117 }
0x11fe   :  { %v2119_v29 = vsub.f32 %v2115_v12, %v2118_v45 }
0x1200   :  { %v2120_v30 = vmul.f32 1.442695, %v2119_v29 }
0x1202   :  { %3372 = vpow2.f32 %v2120_v30 }
0x120c   :  { %v3373_v24 = vpop.eup %3372 }
0x120d   :  { %v2122_v28 = vsel %vm754_vm6, %v3373_v24, 0.0 }
0x120e   :  { %2123 = vadd.xlane.f32.xlu0 %v2122_v28  ;;  %v3416_v28 = vld [vmem:[%s4586_s13 + $0x8] sm:$0xff]  }
0x1224   :  { %2384 = vrot.lane.b32.xlu0 %v2268_v46, %s3677_s15 }
0x1228   :  { %v2008_v34 = vpop.xlane.xlu1 %2007 }
0x1229   :  { %3374 = vrcp.f32 %v2008_v34 }
0x122c   :  { %v2133_v50 = vpop.permute.xlu1 %2132 }
0x122d   :  { %v2138_v52 = vsel %vm773_vm7, %v2133_v50, 0 }
0x1233   :  { %v3375_v16 = vpop.eup %3374 }
0x1234   :  { %v2010_v33 = vmul.f32 %v3375_v16, %v2008_v34 }
0x1236   :  { %v2011_v10 = vsub.f32 2.0, %v2010_v33 }
0x1238   :  { %v2012_v49 = vmul.f32 %v3375_v16, %v2011_v10 }
0x123a   :  { %v2013_v62 = vmul.f32 %v3371_v3, %v2012_v49 }
0x123c   :  { %v2014_v51 = vpack.c.bf16 %v2013_v62, %v2013_v62 }
0x123e   :  { %3191 = vmatmul.mubr.msk.bf16.vlgmr.msra.gmra.mrb[44].mxu1 %vm754_vm6, %v2014_v51 }
0x123f   :  { %3201 = vmatpush3.bf16.msra.mxu1 %v2138_v52  ;;  %3202 = vmatprep.mubr.msk.bf16.mxu1 %vm3676_vm2, %v3675_v8 }
0x1240   :  { %3212 = vmatprep.subr.bf16.mxu1 %v3675_v8 }
0x129b   :  { %v2124_v57 = vpop.xlane.xlu0 %2123 }
0x129c   :  { %3376 = vrcp.f32 %v2124_v57 }
0x129f   :  { %v2385_v29 = vpop.permute.xlu0 %2384 }
0x12a0   :  { %v2390_v30 = vsel %vm339_vm1, %v2385_v29, 0 }
0x12a6   :  { %v3377_v20 = vpop.eup %3376 }
0x12a7   :  { %v2126_v40 = vmul.f32 %v3377_v20, %v2124_v57 }
0x12a9   :  { %v2127_v11 = vsub.f32 2.0, %v2126_v40 }
0x12ab   :  { %v2128_v53 = vmul.f32 %v3377_v20, %v2127_v11 }
0x12ad   :  { %v2129_v54 = vmul.f32 %v3373_v24, %v2128_v53  ;;  %v2382_v24 = vpop.permute.xlu1 %2381 }
0x12af   :  { %v2130_v55 = vpack.c.bf16 %v2129_v54, %v2129_v54 }
0x12b1   :  { %3203 = vmatmul.mubr.msk.bf16.vlgmr.msra.gmra.mrb[48].mxu1 %vm754_vm6, %v2130_v55 }
0x12b2   :  { %3213 = vmatpush3.bf16.msra.mxu1 %v4080_v43  ;;  %3214 = vmatprep.mubr.msk.bf16.mxu1 %vm3676_vm2, %v3675_v8 }
0x12b3   :  { %3224 = vmatprep.subr.bf16.mxu1 %v3675_v8 }
0x1311   :  { %v2055_v21 = vpop.f32.mrb[44].mxu1 }
0x1312   :  { %v2061_v12 = vpack.c.bf16 %v2055_v21, %v2055_v21  ;;  %v3192_v13 = vpop.f32.mrb[45].mxu1 }
0x1313   :  { %v2058_v18 = vpop.f32.mrb[46].mxu1 }
0x1314   :  { %v3193_v35 = vpop.f32.mrb[47].mxu1  ;;  %3215 = vmatmul.mubr.msk.bf16.vlgmr.msra.gmra.mrb[52].mxu1 %vm339_vm1, %v2061_v12 }
0x1315   :  { %3225 = vmatpush3.bf16.msra.mxu1 %v2337_v19  ;;  %3226 = vmatprep.mubr.msk.bf16.mxu1 %vm3676_vm2, %v3675_v8 }
0x1316   :  { %3236 = vmatprep.subr.bf16.mxu1 %v3675_v8 }
0x1384   :  { %v2174_v43 = vpop.f32.mrb[48].mxu1 }
0x1385   :  { %v2180_v37 = vpack.c.bf16 %v2174_v43, %v2174_v43  ;;  %v3204_v3 = vpop.f32.mrb[49].mxu1 }
0x1386   :  { %v2177_v58 = vpop.f32.mrb[50].mxu1  ;;  %v1785_v3 = vsub.f32 %v4315_v47, %v4367_v7 }
0x1387   :  { %v3205_v45 = vpop.f32.mrb[51].mxu1  ;;  %3209 = vmatmul.mubr.msk.bf16.vlgmr.msra.gmra.mrb[52].mxu0 %vm339_vm1, %v2180_v37 }
0x1388   :  { %3219 = vmatpush3.bf16.xpose.msra.mxu0 %v2274_v22  ;;  %3220 = vmatprep.mubr.msk.bf16.mxu0 %vm3676_vm2, %v3675_v8  ;;  %v1786_v22 = vsub.f32 %v4317_v17, %v4365_v4 }
0x1389   :  { %3230 = vmatprep.subr.bf16.mxu0 %v3675_v8 }
0x138a   :  { %v1788_v29 = vmul.f32 %v1786_v22, %v4112_v14 }
0x138f   :  { %3221 = vmatmul.mubr.msk.bf16.vlgmr.msra.gmra.mrb[56].mxu0 %vm339_vm1, %v4397_v25 }
0x1390   :  { %3231 = vmatpush3.bf16.xpose.msra.mxu0 %v2390_v30  ;;  %3232 = vmatprep.mubr.msk.bf16.mxu0 %vm3676_vm2, %v3675_v8 }
0x1391   :  { %3242 = vmatprep.subr.bf16.mxu0 %v3675_v8 }
0x1397   :  { %3233 = vmatmul.mubr.msk.bf16.vlgmr.msra.gmra.mrb[60].mxu0 %vm339_vm1, %v2382_v24 }
0x1398   :  { %3243 = vmatpush3.bf16.msra.mxu0 %v3416_v28  ;;  %3244 = vmatprep.mubr.msk.bf16.mxu0 %vm3676_vm2, %v3675_v8  ;;  %v1790_v28 = vadd.f32 %v4365_v4, %v1788_v29 }
0x1399   :  { %3254 = vmatprep.subr.bf16.mxu0 %v3675_v8 }
0x13e7   :  { %v2261_v25 = vpop.f32.mrb[52].mxu1 }
0x13e8   :  { %v3216_v39 = vpop.f32.mrb[53].mxu1 }
0x13e9   :  { %v2264_v46 = vpop.f32.mrb[54].mxu1 }
0x13ea   :  { %v3217_v34 = vpop.f32.mrb[55].mxu1  ;;  %v4458_v46 = vld [vmem:[#allocation16] ss:$0 sm:$0xff] }
0x145a   :  { %v2218_v16 = vpop.f32.mrb[52].mxu0 }
0x145b   :  { %v2262_v33 = vadd.f32 %v2261_v25, %v2218_v16  ;;  %v3210_v10 = vpop.f32.mrb[53].mxu0 }
0x145c   :  { %v2221_v49 = vpop.f32.mrb[54].mxu0 }
0x145d   :  { %v3211_v62 = vpop.f32.mrb[55].mxu0  ;;  %v2585_v34 = vadd.f32 %v4458_v46, %v2262_v33 }
0x1462   :  { %v2310_v50 = vpop.f32.mrb[56].mxu0 }
0x1463   :  { %v2316_v51 = vmul.f32 0.25, %v2310_v50  ;;  %v3222_v52 = vpop.f32.mrb[57].mxu0 }
0x1464   :  { %v2313_v57 = vpop.f32.mrb[58].mxu0 }
0x1465   :  { %v3223_v20 = vpop.f32.mrb[59].mxu0  ;;  %v2317_v40 = vadd.f32 %v2316_v51, %v4122_v27 }
0x1467   :  { %v2318_v11 = vsel %vm754_vm6, %v2317_v40, -inf }
0x1468   :  { %2319 = vmax.xlane.f32.xlu1 %v2318_v11 }
0x146a   :  { %v2426_v53 = vpop.f32.mrb[60].mxu0 }
0x146b   :  { %v2432_v54 = vmul.f32 0.25, %v2426_v53  ;;  %v3234_v55 = vpop.f32.mrb[61].mxu0 }
0x146c   :  { %v2429_v56 = vpop.f32.mrb[62].mxu0 }
0x146d   :  { %v3235_v59 = vpop.f32.mrb[63].mxu0  ;;  %v2433_v21 = vadd.f32 %v2432_v54, %v4122_v27  ;;  %v1787_v27 = vmul.f32 %v1785_v3, %v4112_v14  ;;  %v4464_v14 = vadd.f32 %v1790_v28, %v4317_v17 }
0x146f   :  { %v2434_v12 = vsel %vm754_vm6, %v2433_v21, -inf  ;;  %v1789_v30 = vadd.f32 %v1787_v27, %v4367_v7  ;;  %v1796_v4 = vsel %vm333_vm0, %v4464_v14, 0.0  ;;  %v2587_v7 = vadd.f32 %v2585_v34, %v4315_v47 }
0x1470   :  { %2435 = vmax.xlane.f32.xlu0 %v2434_v12 }
0x1471   :  { %v4456_v39 = vadd.f32 %v1789_v30, %v4315_v47  ;;  %v2589_v10 = vsel %vm333_vm0, %v2587_v7, 0.0 }
0x1473   :  { %v1793_v16 = vsel %vm333_vm0, %v4456_v39, 0.0 }
0x14f5   :  { %v2320_v13 = vpop.xlane.xlu1 %2319 }
0x14f6   :  { %v2321_v18 = vsub.f32 %v2317_v40, %v2320_v13 }
0x14f8   :  { %v2322_v19 = vmul.f32 1.442695, %v2321_v18 }
0x14fa   :  { %3378 = vpow2.f32 %v2322_v19 }
0x14fd   :  { %v2436_v35 = vpop.xlane.xlu0 %2435 }
0x14fe   :  { %v2437_v43 = vsub.f32 %v2433_v21, %v2436_v35 }
0x1500   :  { %v2438_v37 = vmul.f32 1.442695, %v2437_v43  ;;  %v3418_v43 = vld [vmem:[%s4586_s13] sm:$0xff]   ;;  %s3680_s13 = smov [#allocation20]  }
0x1501   :  { %s2813_s17 = sshll.u32 %s3680_s13, 4  ;;  %s2814_s17 = int_to_ptr.vmem [resolvable:$true] %s2813_s17 }
0x1502   :  { %3380 = vpow2.f32 %v2438_v37  ;;  %s3629_s2 = scalar_lea.vmem %s2814_s17, 256  ;;  %p3634_p6 = scmp.lt.s32.totalorder %s2814_s17, %s2814_s17 }
0x1503   :  { %p3630_p5 = scmp.ne.s32.totalorder %s2814_s17, %s3629_s2  ;;  %p3635_p7 = scmp.lt.s32.totalorder %s3629_s2, %s3629_s2 }
0x1504   :  { %v3379_v58 = vpop.eup %3378 }
0x1505   :  { %v2324_v45 = vsel %vm754_vm6, %v3379_v58, 0.0  ;;  %p3636_p8 = por %p3635_p7, %p3634_p6 }
0x1506   :  { %2325 = vadd.xlane.f32.xlu0 %v2324_v45 }
0x1507   :  { %p3637_p9 = pnand %p3636_p8, %p3630_p5 }
0x150c   :  { %v3381_v24 = vpop.eup %3380 }
0x150d   :  { %v2440_v25 = vsel %vm754_vm6, %v3381_v24, 0.0 }
0x150e   :  { %2441 = vadd.xlane.f32.xlu1 %v2440_v25 }
0x1512   :  { %1794 = vadd.xlane.f32.xlu1 %v1793_v16 }
0x1516   :  { %1797 = vadd.xlane.f32.xlu1 %v1796_v4 }
0x151a   :  { %2590 = vadd.xlane.f32.xlu1 %v2589_v10 }
0x151c   :  { %2450 = vrot.lane.b32.xlu0 %v4415_v9, %s3677_s15 }
0x1593   :  { %v2326_v33 = vpop.xlane.xlu0 %2325 }
0x1594   :  { %3382 = vrcp.f32 %v2326_v33 }
0x1597   :  { %v2451_v11 = vpop.permute.xlu0 %2450 }
0x1598   :  { %v2456_v9 = vsel %vm773_vm7, %v2451_v11, 0 }
0x159b   :  { %v2442_v49 = vpop.xlane.xlu1 %2441 }
0x159c   :  { %3384 = vrcp.f32 %v2442_v49 }
0x159e   :  { %v3383_v62 = vpop.eup %3382 }
0x159f   :  { %v2328_v50 = vmul.f32 %v3383_v62, %v2326_v33  ;;  %v4472_v51 = vpop.xlane.xlu1 %1794 }
0x15a1   :  { %v2329_v52 = vsub.f32 2.0, %v2328_v50 }
0x15a3   :  { %v2330_v57 = vmul.f32 %v3383_v62, %v2329_v52  ;;  %v4474_v20 = vpop.xlane.xlu1 %1797 }
0x15a4   :  { %v1800_v16 = vmul.f32 0.03125, %v4474_v20 }
0x15a5   :  { %v2331_v47 = vmul.f32 %v3379_v58, %v2330_v57 }
0x15a6   :  { %v3385_v40 = vpop.eup %3384 }
0x15a7   :  { %v2332_v53 = vpack.c.bf16 %v2331_v47, %v2331_v47  ;;  %v2444_v54 = vmul.f32 %v3385_v40, %v2442_v49  ;;  %v2591_v55 = vpop.xlane.xlu1 %2590 }
0x15a8   :  { %v2595_v56 = vmul.f32 0.03125, %v2591_v55 }
0x15a9   :  { %v2445_v59 = vsub.f32 2.0, %v2444_v54  ;;  %3227 = vmatmul.mubr.msk.bf16.vlgmr.msra.gmra.mrb[56].mxu1 %vm754_vm6, %v2332_v53 }
0x15aa   :  { %v4478_v21 = vsub.f32 %v2587_v7, %v2595_v56  ;;  %3237 = vmatpush3.bf16.msra.mxu1 %v2456_v9  ;;  %3238 = vmatprep.mubr.msk.bf16.mxu1 %vm3676_vm2, %v3675_v8 }
0x15ab   :  { %v2446_v12 = vmul.f32 %v3385_v40, %v2445_v59  ;;  %3248 = vmatprep.subr.bf16.mxu1 %v3675_v8 }
0x15ac   :  { %v2599_v13 = vmul.f32 %v4478_v21, %v4478_v21 }
0x15ad   :  { %v2447_v18 = vmul.f32 %v3381_v24, %v2446_v12 }
0x15ae   :  { %v2601_v19 = vsel %vm333_vm0, %v2599_v13, 0.0 }
0x15af   :  { %v2448_v35 = vpack.c.bf16 %v2447_v18, %v2447_v18  ;;  %2602 = vadd.xlane.f32.xlu0 %v2601_v19 }
0x15b1   :  { %3239 = vmatmul.mubr.msk.bf16.vlgmr.msra.gmra.mrb[60].mxu1 %vm754_vm6, %v2448_v35 }
0x15b2   :  { %3249 = vmatpush3.bf16.msra.mxu1 %v3418_v43  ;;  %3250 = vmatprep.mubr.msk.bf16.mxu1 %vm3676_vm2, %v3675_v8 }
0x15b3   :  { %3262 = vmatprep.subr.bf16.mxu1 %v3675_v8 }
0x167c   :  { %v2373_v37 = vpop.f32.mrb[56].mxu1 }
0x167d   :  { %v2379_v3 = vpack.c.bf16 %v2373_v37, %v2373_v37  ;;  %v3228_v58 = vpop.f32.mrb[57].mxu1 }
0x167e   :  { %v2376_v22 = vpop.f32.mrb[58].mxu1 }
0x167f   :  { %v3229_v27 = vpop.f32.mrb[59].mxu1  ;;  %3251 = vmatmul.mubr.msk.bf16.vlgmr.msra.gmra.mrb[64].mxu1 %vm339_vm1, %v2379_v3 }
0x1680   :  { %3263 = vmatpush3.bf16.msra.mxu1 %v4218_v60  ;;  %3278 = vmatprep.mubr.msk.bf16.mxu1 %vm3676_vm2, %v3675_v8 }
0x1681   :  { %3264 = vmatprep.subr.bf16.mxu1 %v3675_v8 }
0x1684   :  { %v2492_v45 = vpop.f32.mrb[60].mxu1  ;;  %3265 = vmatpush3.bf16.msra.mxu1 %v4225_v61 }
0x1685   :  { %v2498_v29 = vpack.c.bf16 %v2492_v45, %v2492_v45  ;;  %v3240_v30 = vpop.f32.mrb[61].mxu1  ;;  %3266 = vmatprep.subr.bf16.mxu1 %v3675_v8 }
0x1686   :  { %v2495_v24 = vpop.f32.mrb[62].mxu1 }
0x1687   :  { %v3241_v28 = vpop.f32.mrb[63].mxu1  ;;  %3245 = vmatmul.mubr.msk.bf16.vlgmr.msra.gmra.mrb[64].mxu0 %vm339_vm1, %v2498_v29  ;;  %v3419_v29 = vld [vmem:[#allocation17] ss:$0 sm:$0xff] }
0x1688   :  { %3255 = vmatpush3.bf16.msra.mxu0 %v4180_v38  ;;  %3258 = vmatprep.mubr.msk.bf16.mxu0 %vm3676_vm2, %v3675_v8  ;;  %v3420_v28 = vld [vmem:[#allocation19] ss:$0 sm:$0xff] }
0x1689   :  { %3256 = vmatprep.subr.bf16.mxu0 %v3675_v8  ;;  %3267 = vmatpush3.bf16.msra.mxu1 %v4232_v2  ;;  %v1799_v2 = vmul.f32 0.03125, %v4472_v51 }
0x168a   :  { %3268 = vmatprep.subr.bf16.mxu1 %v3675_v8 }
0x168c   :  { %3257 = vmatpush3.bf16.msra.mxu0 %v4186_v48 }
0x168d   :  { %3269 = vmatpush3.bf16.msra.mxu1 %v4239_v63 }
0x168e   :  { %3270 = vmatprep.subr.bf16.mxu1 %v3675_v8 }
0x1691   :  { %3271 = vmatpush3.bf16.msra.mxu1 %v4246_v1 }
0x1692   :  { %3272 = vmatprep.subr.bf16.mxu1 %v3675_v8 }
0x1695   :  { %3273 = vmatpush3.bf16.msra.mxu1 %v4253_v5  ;;  %v1801_v5 = vsub.f32 %v4456_v39, %v1799_v2 }
0x1696   :  { %3274 = vmatprep.subr.bf16.mxu1 %v3675_v8 }
0x1697   :  { %v1803_v10 = vmul.f32 %v1801_v5, %v1801_v5 }
0x1699   :  { %3275 = vmatpush3.bf16.msra.mxu1 %v4260_v0  ;;  %v1805_v33 = vsel %vm333_vm0, %v1803_v10, 0.0 }
0x169a   :  { %3276 = vmatprep.subr.bf16.mxu1 %v3675_v8 }
0x169d   :  { %3277 = vmatpush3.bf16.msra.mxu1 %v4267_v32  ;;  %v1802_v32 = vsub.f32 %v4464_v14, %v1800_v16  ;;  %v2603_v14 = vpop.xlane.xlu0 %2602 }
0x169e   :  { %v2607_v47 = vmul.f32 0.03125, %v2603_v14 }
0x169f   :  { %v1804_v49 = vmul.f32 %v1802_v32, %v1802_v32 }
0x16a0   :  { %v2609_v53 = vadd.f32 1e-12, %v2607_v47 }
0x16a1   :  { %v1808_v62 = vsel %vm333_vm0, %v1804_v49, 0.0 }
0x1752   :  { %v2579_v38 = vpop.f32.mrb[64].mxu1 }
0x1753   :  { %v3252_v48 = vpop.f32.mrb[65].mxu1 }
0x1754   :  { %v2582_v60 = vpop.f32.mrb[66].mxu1 }
0x1755   :  { %v3253_v61 = vpop.f32.mrb[67].mxu1 }
0x175a   :  { %v2536_v63 = vpop.f32.mrb[64].mxu0 }
0x175b   :  { %v2580_v1 = vadd.f32 %v2579_v38, %v2536_v63  ;;  %v3246_v25 = vpop.f32.mrb[65].mxu0 }
0x175c   :  { %v2539_v34 = vpop.f32.mrb[66].mxu0 }
0x175d   :  { %v2586_v0 = vadd.f32 %v4458_v46, %v2580_v1  ;;  %v3247_v4 = vpop.f32.mrb[67].mxu0 }
0x175f   :  { %v2588_v8 = vadd.f32 %v2586_v0, %v4317_v17 }
0x1761   :  { %v2592_v7 = vsel %vm333_vm0, %v2588_v8, 0.0 }
0x1762   :  { %2593 = vadd.xlane.f32.xlu1 %v2592_v7 }
0x1766   :  { %1806 = vadd.xlane.f32.xlu1 %v1805_v33 }
0x176a   :  { %1809 = vadd.xlane.f32.xlu1 %v1808_v62 }
0x17ef   :  { %v2594_v39 = vpop.xlane.xlu1 %2593 }
0x17f0   :  { %v2596_v50 = vmul.f32 0.03125, %v2594_v39 }
0x17f2   :  { %v2598_v51 = vsub.f32 %v2588_v8, %v2596_v50 }
0x17f3   :  { %v1807_v17 = vpop.xlane.xlu1 %1806 }
0x17f4   :  { %v2600_v46 = vmul.f32 %v2598_v51, %v2598_v51  ;;  %v1811_v20 = vmul.f32 0.03125, %v1807_v17 }
0x17f6   :  { %v2604_v52 = vsel %vm333_vm0, %v2600_v46, 0.0  ;;  %v1813_v11 = vadd.f32 1e-12, %v1811_v20 }
0x17f7   :  { %2605 = vadd.xlane.f32.xlu1 %v2604_v52  ;;  %v1810_v57 = vpop.xlane.xlu1 %1809 }
0x17f8   :  { %v1812_v40 = vmul.f32 0.03125, %v1810_v57  ;;  %3386 = vrsqrt.f32 %v1813_v11 }
0x17f9   :  { %3388 = vrsqrt.f32 %v2609_v53 }
0x17fa   :  { %v1814_v54 = vadd.f32 1e-12, %v1812_v40 }
0x17fc   :  { %3390 = vrsqrt.f32 %v1814_v54 }
0x1802   :  { %v3387_v59 = vpop.eup %3386 }
0x1803   :  { %v3389_v12 = vpop.eup %3388  ;;  %v1817_v18 = vmul.f32 %v3387_v59, %v1801_v5 }
0x1804   :  { %v2613_v19 = vmul.f32 %v3389_v12, %v4478_v21 }
0x1805   :  { %v1819_v43 = vmul.f32 %v4192_v36, %v1817_v18 }
0x1806   :  { %v3391_v13 = vpop.eup %3390  ;;  %v2615_v37 = vmul.f32 %v4190_v23, %v2613_v19 }
0x1807   :  { %v1818_v35 = vmul.f32 %v3391_v13, %v1802_v32  ;;  %v1821_v27 = vadd.f32 %v4199_v41, %v1819_v43 }
0x1808   :  { %v2617_v45 = vadd.f32 %v4195_v44, %v2615_v37 }
0x1809   :  { %v1820_v3 = vmul.f32 %v4192_v36, %v1818_v35  ;;  %v2619_v21 = vmul.f32 0.7, %v1821_v27 }
0x180a   :  { %v2621_v60 = vmul.f32 0.3, %v2617_v45 }
0x180b   :  { %v1822_v24 = vadd.f32 %v4199_v41, %v1820_v3 }
0x180c   :  { %v4534_v2 = vadd.f32 %v2621_v60, %v2619_v21 }
0x180d   :  { %v2620_v48 = vmul.f32 0.7, %v1822_v24 }
0x1884   :  { %v2606_v55 = vpop.xlane.xlu1 %2605 }
0x1885   :  { %v2608_v56 = vmul.f32 0.03125, %v2606_v55 }
0x1887   :  { %v2610_v9 = vadd.f32 1e-12, %v2608_v56 }
0x1889   :  { %3392 = vrsqrt.f32 %v2610_v9 }
0x1893   :  { %v3393_v58 = vpop.eup %3392 }
0x1894   :  { %v2614_v22 = vmul.f32 %v3393_v58, %v2598_v51 }
0x1896   :  { %v2616_v30 = vmul.f32 %v3419_v29, %v2614_v22 }
0x1898   :  { %v2618_v38 = vadd.f32 %v3420_v28, %v2616_v30 }
0x189a   :  { %v2622_v61 = vmul.f32 0.3, %v2618_v38 }
0x189c   :  { %v4536_v23 = vadd.f32 %v2622_v61, %v2620_v48 }
0x189e   :  { %v2625_v36 = vpack.c.bf16 %v4536_v23, %v4534_v2 }
0x18a0   :  { %3259 = vmatmul.mubr.msk.bf16.vlgmr.msra.gmra.mrb[68].mxu0 %vm333_vm0, %v2625_v36 }
0x1973   :  { %v2663_v44 = vpop.f32.mrb[68].mxu0 }
0x1974   :  { %v2664_v63 = vadd.f32 %v4274_v6, %v2663_v44  ;;  %v3260_v1 = vpop.f32.mrb[69].mxu0 }
0x1975   :  { %v2666_v41 = vpop.f32.mrb[70].mxu0 }
0x1976   :  { %v2672_v25 = vmul.f32 0.70710677, %v2664_v63  ;;  %v2667_v34 = vadd.f32 %v4274_v6, %v2666_v41  ;;  %v3261_v5 = vpop.f32.mrb[71].mxu0  ;;  %v2670_v36 = vmul.f32 0.5, %v2664_v63 }
0x1978   :  { %v2678_v16 = vand.u32 2147483647, %v2672_v25  ;;  %v2673_v0 = vmul.f32 0.70710677, %v2667_v34  ;;  %vm2674_vm12 = vcmp.ge.f32.partialorder %v2672_v25, 0.0  ;;  %v2671_v44 = vmul.f32 0.5, %v2667_v34 }
0x1979   :  { %v2676_v24 = vsel %vm2674_vm12, 1.0, %v3679_v26 }
0x197a   :  { %v2680_v4 = vmul.f32 0.3275911, %v2678_v16  ;;  %v2679_v8 = vand.u32 2147483647, %v2673_v0  ;;  %v2710_v62 = vsub.f32 0.0, %v2678_v16  ;;  %vm2675_vm13 = vcmp.ge.f32.partialorder %v2673_v0, 0.0 }
0x197b   :  { %v2677_v48 = vsel %vm2675_vm13, 1.0, %v3679_v26 }
0x197c   :  { %v2682_v32 = vadd.f32 1.0, %v2680_v4  ;;  %v2681_v7 = vmul.f32 0.3275911, %v2679_v8  ;;  %v2711_v52 = vsub.f32 0.0, %v2679_v8  ;;  %v2712_v17 = vmul.f32 %v2710_v62, %v2678_v16 }
0x197e   :  { %3394 = vrcp.f32 %v2682_v32  ;;  %v2683_v10 = vadd.f32 1.0, %v2681_v7  ;;  %v2713_v47 = vmul.f32 %v2711_v52, %v2679_v8  ;;  %v2714_v40 = vmul.f32 1.442695, %v2712_v17 }
0x1980   :  { %3396 = vrcp.f32 %v2683_v10  ;;  %v2716_v56 = vmul.f32 1.442695, %v2713_v47 }
0x1981   :  { %3398 = vpow2.f32 %v2714_v40 }
0x1982   :  { %3400 = vpow2.f32 %v2716_v56 }
0x1988   :  { %v3395_v33 = vpop.eup %3394 }
0x1989   :  { %v2686_v49 = vmul.f32 %v3395_v33, %v2682_v32 }
0x198a   :  { %v3397_v39 = vpop.eup %3396 }
0x198b   :  { %v2688_v50 = vsub.f32 2.0, %v2686_v49  ;;  %v2687_v51 = vmul.f32 %v3397_v39, %v2683_v10  ;;  %v3399_v58 = vpop.eup %3398 }
0x198c   :  { %v3401_v29 = vpop.eup %3400 }
0x198d   :  { %v2690_v46 = vmul.f32 %v3395_v33, %v2688_v50  ;;  %v2689_v6 = vsub.f32 2.0, %v2687_v51 }
0x198f   :  { %v2692_v14 = vmul.f32 1.0614054, %v2690_v46  ;;  %v2691_v57 = vmul.f32 %v3397_v39, %v2689_v6 }
0x1991   :  { %v2694_v20 = vadd.f32 -1.4531521, %v2692_v14  ;;  %v2693_v11 = vmul.f32 1.0614054, %v2691_v57 }
0x1993   :  { %v2696_v53 = vmul.f32 %v2694_v20, %v2690_v46  ;;  %v2695_v54 = vadd.f32 -1.4531521, %v2693_v11 }
0x1995   :  { %v2698_v55 = vadd.f32 1.4214138, %v2696_v53  ;;  %v2697_v9 = vmul.f32 %v2695_v54, %v2691_v57 }
0x1997   :  { %v2700_v59 = vmul.f32 %v2698_v55, %v2690_v46  ;;  %v2699_v12 = vadd.f32 1.4214138, %v2697_v9 }
0x1999   :  { %v2702_v13 = vadd.f32 -0.28449672, %v2700_v59  ;;  %v2701_v18 = vmul.f32 %v2699_v12, %v2691_v57 }
0x199b   :  { %v2704_v19 = vmul.f32 %v2702_v13, %v2690_v46  ;;  %v2703_v35 = vadd.f32 -0.28449672, %v2701_v18 }
0x199d   :  { %v2706_v43 = vadd.f32 0.2548296, %v2704_v19  ;;  %v2705_v37 = vmul.f32 %v2703_v35, %v2691_v57 }
0x199f   :  { %v2708_v3 = vmul.f32 %v2706_v43, %v2690_v46  ;;  %v2707_v22 = vadd.f32 0.2548296, %v2705_v37 }
0x19a1   :  { %v2718_v27 = vmul.f32 %v3399_v58, %v2708_v3  ;;  %v2709_v45 = vmul.f32 %v2707_v22, %v2691_v57 }
0x19a3   :  { %v2720_v30 = vsub.f32 1.0, %v2718_v27  ;;  %v2719_v28 = vmul.f32 %v3401_v29, %v2709_v45 }
0x19a5   :  { %v2722_v38 = vmul.f32 %v2720_v30, %v2676_v24  ;;  %v2721_v21 = vsub.f32 1.0, %v2719_v28 }
0x19a7   :  { %v2724_v60 = vadd.f32 1.0, %v2722_v38  ;;  %v2723_v61 = vmul.f32 %v2721_v21, %v2677_v48 }
0x19a9   :  { %v2725_v1 = vadd.f32 1.0, %v2723_v61  ;;  %v2726_v41 = vmul.f32 %v2724_v60, %v2670_v36 }
0x19ab   :  { %v2727_v5 = vmul.f32 %v2725_v1, %v2671_v44 }
0x19ad   :  { %v2728_v25 = vpack.c.bf16 %v2727_v5, %v2726_v41 }
0x19af   :  { %3279 = vmatmul.mubr.bf16.vlgmr.msra.gmra.mrb[68].mxu1 %v2728_v25 }
0x1a82   :  { %v2763_v16 = vpop.f32.mrb[68].mxu1 }
0x1a83   :  { %v2764_v4 = vadd.f32 %v4289_v15, %v2763_v16  ;;  %v3280_v8 = vpop.f32.mrb[69].mxu1 }
0x1a84   :  { %v2766_v32 = vpop.f32.mrb[70].mxu1 }
0x1a85   :  { %v2767_v0 = vadd.f32 %v4289_v15, %v2766_v32  ;;  %v3281_v7 = vpop.f32.mrb[71].mxu1  ;;  %v2770_v10 = vadd.f32 %v2764_v4, %v4534_v2 }
0x1a87   :  { %v2772_v26 = vsel %vm333_vm0, %v2770_v10, 0.0  ;;  %v2771_v63 = vadd.f32 %v2767_v0, %v4536_v23 }
0x1a88   :  { %2773 = vadd.xlane.f32.xlu1 %v2772_v26 }
0x1a89   :  { %v2775_v34 = vsel %vm333_vm0, %v2771_v63, 0.0 }
0x1a8c   :  { %2776 = vadd.xlane.f32.xlu1 %v2775_v34 }
0x1b15   :  { %v2774_v33 = vpop.xlane.xlu1 %2773 }
0x1b16   :  { %v2778_v49 = vmul.f32 0.03125, %v2774_v33 }
0x1b18   :  { %v2780_v62 = vsub.f32 %v2770_v10, %v2778_v49 }
0x1b19   :  { %v2777_v39 = vpop.xlane.xlu1 %2776 }
0x1b1a   :  { %v2779_v50 = vmul.f32 0.03125, %v2777_v39  ;;  %v2782_v51 = vmul.f32 %v2780_v62, %v2780_v62 }
0x1b1c   :  { %v2781_v46 = vsub.f32 %v2771_v63, %v2779_v50  ;;  %v2784_v15 = vsel %vm333_vm0, %v2782_v51, 0.0 }
0x1b1d   :  { %2785 = vadd.xlane.f32.xlu1 %v2784_v15 }
0x1b1e   :  { %v2783_v52 = vmul.f32 %v2781_v46, %v2781_v46 }
0x1b20   :  { %v2787_v2 = vsel %vm333_vm0, %v2783_v52, 0.0 }
0x1b21   :  { %2788 = vadd.xlane.f32.xlu1 %v2787_v2 }
0x1baa   :  { %v2786_v17 = vpop.xlane.xlu1 %2785 }
0x1bab   :  { %v2790_v23 = vmul.f32 0.03125, %v2786_v17 }
0x1bad   :  { %v2792_v6 = vadd.f32 1e-12, %v2790_v23 }
0x1bae   :  { %v2789_v14 = vpop.xlane.xlu1 %2788 }
0x1baf   :  { %3402 = vrsqrt.f32 %v2792_v6  ;;  %v2791_v57 = vmul.f32 0.03125, %v2789_v14 }
0x1bb1   :  { %v2793_v20 = vadd.f32 1e-12, %v2791_v57 }
0x1bb3   :  { %3404 = vrsqrt.f32 %v2793_v20 }
0x1bb9   :  { %v3403_v47 = vpop.eup %3402 }
0x1bba   :  { %v2796_v40 = vmul.f32 %v3403_v47, %v2780_v62 }
0x1bbc   :  { %v2798_v11 = vmul.f32 %v4302_v31, %v2796_v40 }
0x1bbd   :  { %v3405_v53 = vpop.eup %3404 }
0x1bbe   :  { %v2800_v54 = vadd.f32 %v4307_v42, %v2798_v11  ;;  %v2797_v55 = vmul.f32 %v3405_v53, %v2781_v46 }
0x1bc0   :  { %2802 = vst.msk [vmem:[#allocation2] sm:$0xff] %vm333_vm0, %v2800_v54  ;;  %v2799_v56 = vmul.f32 %v4302_v31, %v2797_v55 }
0x1bc2   :  { %v2801_v9 = vadd.f32 %v4307_v42, %v2799_v56 }
0x1bc4   :  { %2803 = vst.msk [vmem:[#allocation2 + $0x8] sm:$0xff] %vm333_vm0, %v2801_v9 }
0x1bc7   :  { %v2804_v59 = vld [vmem:[#allocation2] sm:$0xff] }
0x1bc8   :  { %2806 = vst.msk [vmem:[#allocation20] sm:$0xff] %vm333_vm0, %v2804_v59 }
0x1bcb   :  { %v2805_v12 = vld [vmem:[#allocation2 + $0x8] sm:$0xff] }
0x1bcc   :  { %2807 = vst.msk [vmem:[#allocation20 + $0x8] sm:$0xff] %vm333_vm0, %v2805_v12 }
0x1bcd   :  { %3640 = shalt.err (!%p3637_p9)
}
0x1bce   :  { %s3641_s6 = scalar_lea.hbm %s4596_s23, 256 }
0x1bcf   :  { %p3642_p10 = scmp.ne.s32.totalorder %s4596_s23, %s3641_s6  ;;  %p3645_p11 = scmp.lt.u32.totalorder %s3641_s6, %s4596_s23 }
0x1bd1   :  { %p3647_p12 = pnand %p3645_p11, %p3642_p10 }
0x1bd3   :  { %3650 = shalt.err (!%p3647_p12)
}
0x1bd4   :  { %s3681_s27 = smov 128   ;;  %s3682_s25 = smov 8  }
0x1bd5   :  { %2819 = dma.vmem_to_hbm [thread:$0]  %s2814_s17, 256, %s4596_s23, [#allocation7], %s3681_s27, %s3681_s27, %s3682_s25  }
0x1bd6   :  { %3663 = dma.done.wait [#allocation7], 256  }
0x1bd7   :  { %3664 = vsyncadd [#allocation7], 4294967040 }
0x1bd8   :  { %2823 = vsyncpa [#allocation6], 1 }
0x1bd9   :  { %2824 = vsyncpa [#allocation9], 1 }
0x1bda   :  { %2825 = vsyncpa [#allocation12], 1 }
0x1bdb   :  { %2826 = vsyncpa [#allocation15], 1 }
0x1bdc   :  { %2827 = vsyncpa [#allocation18], 1 }
0x1bdd   :  { %2828 = vsyncpa [#allocation7], 1 }

</bundles_post_ra>
